<compile_context>
chip_gen: v6e
topology: v6e:2x2x1
jax: 0.10.0
libtpu: 0.0.40
codegen_flags: <defaults>
</compile_context>

<pallas_src>
import functools

import numpy as np
import jax
import jax.numpy as jnp
from jax.experimental import pallas as pl
from jax.experimental.pallas import tpu as pltpu

# Images per grid step.  A multiple of 8 keeps every sublane structure
# tile-aligned: conv1 slab 8*32=256 rows, conv2 slab 8*15=120 rows, fc1 input
# 6*8=48 rows with aligned (8, 208) slices.
IMG_BLOCK = 8


# ----------------------------------------------------------------------------
# Fused whole-net kernel.  One grid step == one block of `bb` images, batched
# into the sublane (M) dimension.
# ----------------------------------------------------------------------------
def _lenet_kernel(x_ref, g1_ref, bc1_ref, sh1_ref, sw1_ref,
                  g2_ref, bc2_ref, sh2p_ref, w1f_ref,
                  b1_ref, w2_ref, b2_ref, w3_ref, b3_ref,
                  o_ref, *, bb):
    f32, bf16 = jnp.float32, jnp.bfloat16

    def shift_up(v, s, axis):
        # y[.., i, ..] = v[.., (i + s) % n, ..]  -- XLU rotate (free slot vs
        # VPU/MXU).  Wrapped rows/cols only land in slab positions that the
        # pool / fc selectors never read (invariant checked in prepare_params).
        n = v.shape[axis]
        return pltpu.roll(v, shift=(n - s) % n, axis=axis)

    def conv_relu_poolmax(a, g_ref, bc_ref):
        # a: (rows, Cin*W) f32 channel-stacked slab, images stacked along rows.
        # g_ref: (3, Cin*W, Cout*Wout) bf16 with kx taps pre-folded, so a 3x3
        # VALID conv is 3 MXU matmuls on the whole batched slab.
        acc = jnp.dot(a.astype(bf16), g_ref[0], preferred_element_type=f32)
        for ky in (1, 2):
            acc += jnp.dot(shift_up(a, ky, 0).astype(bf16), g_ref[ky],
                           preferred_element_type=f32)
        act = jnp.maximum(acc + bc_ref[...], 0.0)
        # 2x2 sliding max via two rolls (lane roll = x+1, sublane roll = y+1).
        m = jnp.maximum(act, shift_up(act, 1, 1))
        m = jnp.maximum(m, shift_up(m, 1, 0))
        return m.astype(bf16)

    # ---- layer 1: conv1(1->6, 3x3) + relu + maxpool(2,2) --------------------
    m1 = conv_relu_poolmax(x_ref[...], g1_ref, bc1_ref)       # (bb*32, 180)
    # Stride-2 downsample for ALL images/channels at once: block-diagonal 0/1
    # row selector (over images) then column selector (over channels).
    p1 = jnp.dot(
        jnp.dot(sh1_ref[...], m1, preferred_element_type=f32).astype(bf16),
        sw1_ref[...], preferred_element_type=f32)             # (bb*15, 90) f32

    # ---- layer 2: conv2(6->16, 3x3) + relu + maxpool(2,2) -------------------
    m2 = conv_relu_poolmax(p1, g2_ref, bc2_ref)               # (bb*15, 208)

    # Row downsample in (pool-row-major, image-minor) order so the fc1
    # contraction below uses contiguous 8-sublane-aligned slices.  The column
    # downsample + torch flatten permutation are folded into w1f host-side, so
    # there is NO per-image sublane->lane concat glue.
    r = jnp.dot(sh2p_ref[...], m2,
                preferred_element_type=f32).astype(bf16)      # (6*bb, 208)

    # TODO(synk): drop1/drop2 are eval-mode identity; training-mode dropout RNG
    # masking (pltpu.prng_*) not implemented.

    # ---- fc head ------------------------------------------------------------
    h1 = jnp.dot(r[0:bb, :], w1f_ref[0], preferred_element_type=f32)
    for p2 in range(1, 6):
        h1 += jnp.dot(r[p2 * bb:(p2 + 1) * bb, :], w1f_ref[p2],
                      preferred_element_type=f32)
    h1 = jnp.maximum(h1 + b1_ref[...], 0.0)                   # (bb, 120)
    h2 = jnp.maximum(jnp.dot(h1.astype(bf16), w2_ref[...],
                             preferred_element_type=f32) + b2_ref[...], 0.0)
    logits = (jnp.dot(h2.astype(bf16), w3_ref[...],
                      preferred_element_type=f32) + b3_ref[...])   # (bb, 2)

    # Softmax over 2 classes; EUP approx reciprocal + one Newton step.
    z = logits - jnp.max(logits, axis=-1, keepdims=True)
    e = jnp.exp(z)
    s = jnp.sum(e, axis=-1, keepdims=True)
    rinv = pl.reciprocal(s, approx=True)
    rinv = rinv * (2.0 - s * rinv)
    # N=2 lane store; padding logits to 128 lanes is possible but not worth it.
    o_ref[...] = e * rinv


# ----------------------------------------------------------------------------
# One-time host-side weight packing (hoisted out of the jitted forward).
# ----------------------------------------------------------------------------
def prepare_params(params, bb=IMG_BLOCK):
    c1w = np.asarray(params["conv1_w"], np.float32)    # (6, 1, 3, 3)
    c1b = np.asarray(params["conv1_b"], np.float32)
    c2w = np.asarray(params["conv2_w"], np.float32)    # (16, 6, 3, 3)
    c2b = np.asarray(params["conv2_b"], np.float32)
    f1w = np.asarray(params["fc1_w"], np.float32)      # (120, 576)
    f1b = np.asarray(params["fc1_b"], np.float32)
    f2w = np.asarray(params["fc2_w"], np.float32)      # (84, 120)
    f2b = np.asarray(params["fc2_b"], np.float32)
    f3w = np.asarray(params["fc3_w"], np.float32)      # (2, 84)
    f3b = np.asarray(params["fc3_b"], np.float32)

    def conv_taps_kx_folded(w, w_in):
        # G[ky][ci*W_in + x + kx, co*W_out + x] = w[co, ci, ky, kx], summed
        # over kx (the kx shift lives in the row index so all three kx taps
        # share the same LHS slab): 3 matmuls per conv instead of 9.
        cout, cin, kh, kw = w.shape
        wout = w_in - kw + 1
        g = np.zeros((kh, cin * w_in, cout * wout), np.float32)
        xs = np.arange(wout)
        for ky in range(kh):
            for kx in range(kw):
                for ci in range(cin):
                    for co in range(cout):
                        g[ky, ci * w_in + xs + kx, co * wout + xs] += \
                            w[co, ci, ky, kx]
        return g

    # Pool-selector validity invariant (3x3 VALID conv + 2x2/stride-2 floor
    # pool): the rolled 4-way max at (row, col) also reads (row+1, col+1), so
    # every selected source row 2p / col 2q must satisfy 2p+1 <= H_conv-1 and
    # 2q+1 <= W_conv-1; then roll-wrap rows/cols and channel-seam columns are
    # never selected.  This breaks silently if pool mode/kernel sizes change.
    for dim_conv in (30, 13):
        assert 2 * (dim_conv // 2 - 1) + 1 <= dim_conv - 1

    # Layer 1 selectors: block-diag over images (rows), block-diag over
    # channels (cols); exact 0/1 so bf16 is lossless.
    sh1 = np.zeros((bb * 15, bb * 32), np.float32)
    for b in range(bb):
        sh1[b * 15 + np.arange(15), b * 32 + 2 * np.arange(15)] = 1.0
    sw1 = np.zeros((6 * 30, 6 * 15), np.float32)
    for c in range(6):
        sw1[c * 30 + 2 * np.arange(15), c * 15 + np.arange(15)] = 1.0

    # Layer 2 row selector in (pool-row-major, image-minor) order so the fc1
    # accumulation uses contiguous, 8-sublane-aligned (bb, 208) slices.
    sh2p = np.zeros((6 * bb, bb * 15), np.float32)
    for p2 in range(6):
        for b in range(bb):
            sh2p[p2 * bb + b, b * 15 + 2 * p2] = 1.0

    # fc1 weight with the layer-2 column pool selector and torch's
    # x.view(-1, 16*6*6) (c, p, q) flatten order folded in:
    #   w1f[p2, c2*13 + 2*q2, j] = fc1_w[j, c2*36 + p2*6 + q2]
    w1f = np.zeros((6, 16 * 13, 120), np.float32)
    f1r = f1w.reshape(120, 16, 6, 6)
    for p2 in range(6):
        for q2 in range(6):
            w1f[p2, np.arange(16) * 13 + 2 * q2, :] = f1r[:, :, p2, q2].T

    j = jnp.asarray
    bf = lambda a: j(a).astype(jnp.bfloat16)
    return {
        "g1": bf(conv_taps_kx_folded(c1w, 32)),    # (3, 32, 180) bf16
        "bc1": j(np.repeat(c1b, 30)[None, :]),     # (1, 180) f32
        "sh1": bf(sh1),                            # (bb*15, bb*32)
        "sw1": bf(sw1),                            # (180, 90)
        "g2": bf(conv_taps_kx_folded(c2w, 15)),    # (3, 90, 208) bf16
        "bc2": j(np.repeat(c2b, 13)[None, :]),     # (1, 208) f32
        "sh2p": bf(sh2p),                          # (6*bb, bb*15)
        "w1f": bf(w1f),                            # (6, 208, 120)
        "b1": j(f1b[None, :]),                     # (1, 120) f32
        "w2": bf(f2w.T),                           # (120, 84)
        "b2": j(f2b[None, :]),
        "w3": bf(f3w.T),                           # (84, 2)
        "b3": j(f3b[None, :]),
    }


# ----------------------------------------------------------------------------
# Forward pass
# ----------------------------------------------------------------------------
@jax.jit
def lenet_forward(x, packed):
    # x: (B, 1, 32, 32) NCHW float32
    B = x.shape[0]
    bb = IMG_BLOCK
    nblk = (B + bb - 1) // bb
    bpad = nblk * bb
    # NOTE(v7x): with B <= bb the grid is a single step so only one TensorCore
    # is used; for larger B the "parallel" grid axis shards blocks across TCs.
    x3 = x.reshape(B, 32, 32)
    if bpad != B:
        x3 = jnp.pad(x3, ((0, bpad - B), (0, 0), (0, 0)))
    x2d = x3.reshape(bpad * 32, 32)     # images stacked along the sublane dim

    def const_spec(a):
        zeros = (0,) * a.ndim
        return pl.BlockSpec(a.shape, lambda i, _z=zeros: _z)

    wkeys = ("g1", "bc1", "sh1", "sw1", "g2", "bc2", "sh2p", "w1f",
             "b1", "w2", "b2", "w3", "b3")
    in_specs = ([pl.BlockSpec((bb * 32, 32), lambda i: (i, 0))]
                + [const_spec(packed[k]) for k in wkeys])

    out = pl.pallas_call(
        functools.partial(_lenet_kernel, bb=bb),
        out_shape=jax.ShapeDtypeStruct((bpad, 2), jnp.float32),
        grid=(nblk,),
        in_specs=in_specs,
        out_specs=pl.BlockSpec((bb, 2), lambda i: (i, 0)),
        compiler_params=pltpu.CompilerParams(
            dimension_semantics=("parallel",)),
    )(x2d, *[packed[k] for k in wkeys])
    return out[:B]


# ----------------------------------------------------------------------------
# Parameter init (PyTorch layouts) and a pure-JAX reference for validation.
# ----------------------------------------------------------------------------
def init_params(key):
    ks = jax.random.split(key, 10)

    def w(k, shape, scale):
        return jax.random.normal(k, shape, jnp.float32) * scale

    return {
        "conv1_w": w(ks[0], (6, 1, 3, 3), 0.3),
        "conv1_b": w(ks[1], (6,), 0.1),
        "conv2_w": w(ks[2], (16, 6, 3, 3), 0.15),
        "conv2_b": w(ks[3], (16,), 0.1),
        "fc1_w":  w(ks[4], (120, 16 * 6 * 6), 0.05),
        "fc1_b":  w(ks[5], (120,), 0.05),
        "fc2_w":  w(ks[6], (84, 120), 0.1),
        "fc2_b":  w(ks[7], (84,), 0.05),
        "fc3_w":  w(ks[8], (2, 84), 0.1),
        "fc3_b":  w(ks[9], (2,), 0.05),
    }


def lenet_reference(x, params):
    """Pure-JAX reference (f32 convs, bf16-operand FCs like the kernel)."""
    hi = jax.lax.Precision.HIGHEST
    dn = ("NCHW", "OIHW", "NCHW")
    a = jax.lax.conv_general_dilated(x, params["conv1_w"], (1, 1), "VALID",
                                     dimension_numbers=dn, precision=hi)
    a = jnp.maximum(a + params["conv1_b"][None, :, None, None], 0.0)
    a = jax.lax.reduce_window(a, -jnp.inf, jax.lax.max,
                              (1, 1, 2, 2), (1, 1, 2, 2), "VALID")
    a = jax.lax.conv_general_dilated(a, params["conv2_w"], (1, 1), "VALID",
                                     dimension_numbers=dn, precision=hi)
    a = jnp.maximum(a + params["conv2_b"][None, :, None, None], 0.0)
    a = jax.lax.reduce_window(a, -jnp.inf, jax.lax.max,
                              (1, 1, 2, 2), (1, 1, 2, 2), "VALID")
    h = a.reshape(a.shape[0], 16 * 6 * 6)

    def fc(v, w, b):
        return jnp.dot(v.astype(jnp.bfloat16), w.T.astype(jnp.bfloat16),
                       preferred_element_type=jnp.float32) + b

    h = jnp.maximum(fc(h, params["fc1_w"], params["fc1_b"]), 0.0)
    h = jnp.maximum(fc(h, params["fc2_w"], params["fc2_b"]), 0.0)
    logits = fc(h, params["fc3_w"], params["fc3_b"])
    return jax.nn.softmax(logits, axis=1)


if __name__ == "__main__":
    key = jax.random.PRNGKey(0)
    pkey, xkey = jax.random.split(key)
    params = init_params(pkey)
    packed = prepare_params(params)          # one-time host-side packing
    x = jax.random.normal(xkey, (2, 1, 32, 32), jnp.float32)

    out = jax.block_until_ready(lenet_forward(x, packed))

    assert out.shape == (2, 2), out.shape
    assert bool(jnp.all(jnp.isfinite(out)))
    # softmax rows must sum to 1 (Newton-refined approx reciprocal)
    assert bool(jnp.allclose(jnp.sum(out, axis=1), 1.0, atol=1e-4))

    ref = jax.block_until_ready(lenet_reference(x, params))
    assert bool(jnp.allclose(out, ref, atol=5e-2)), (out, ref)
    print("KERNEL_OK")
</pallas_src>

<mosaic_0001>
module attributes {stable_mosaic.version = 11 : i64} {
  func.func @_lenet_kernel(%arg0: i32, %arg1: memref<256x32xf32, #tpu.memory_space<vmem>>, %arg2: memref<3x32x180xbf16, #tpu.memory_space<vmem>>, %arg3: memref<1x180xf32, #tpu.memory_space<vmem>>, %arg4: memref<120x256xbf16, #tpu.memory_space<vmem>>, %arg5: memref<180x90xbf16, #tpu.memory_space<vmem>>, %arg6: memref<3x90x208xbf16, #tpu.memory_space<vmem>>, %arg7: memref<1x208xf32, #tpu.memory_space<vmem>>, %arg8: memref<48x120xbf16, #tpu.memory_space<vmem>>, %arg9: memref<6x208x120xbf16, #tpu.memory_space<vmem>>, %arg10: memref<1x120xf32, #tpu.memory_space<vmem>>, %arg11: memref<120x84xbf16, #tpu.memory_space<vmem>>, %arg12: memref<1x84xf32, #tpu.memory_space<vmem>>, %arg13: memref<84x2xbf16, #tpu.memory_space<vmem>>, %arg14: memref<1x2xf32, #tpu.memory_space<vmem>>, %arg15: memref<8x2xf32, #tpu.memory_space<vmem>>) attributes {dimension_semantics = [#tpu.dimension_semantics<parallel>], iteration_bounds = array<i64: 1>, scalar_prefetch = 0 : i64, scratch_operands = 0 : i64, tpu.core_type = #tpu.core_type<tc>, window_params = [{transform_indices = @transform_0, window_bounds = array<i64: 256, 32>}, {pipeline_mode = #tpu.pipeline_mode<synchronous>, transform_indices = @transform_1, window_bounds = array<i64: 3, 32, 180>}, {pipeline_mode = #tpu.pipeline_mode<synchronous>, transform_indices = @transform_2, window_bounds = array<i64: 1, 180>}, {pipeline_mode = #tpu.pipeline_mode<synchronous>, transform_indices = @transform_3, window_bounds = array<i64: 120, 256>}, {pipeline_mode = #tpu.pipeline_mode<synchronous>, transform_indices = @transform_4, window_bounds = array<i64: 180, 90>}, {pipeline_mode = #tpu.pipeline_mode<synchronous>, transform_indices = @transform_5, window_bounds = array<i64: 3, 90, 208>}, {pipeline_mode = #tpu.pipeline_mode<synchronous>, transform_indices = @transform_6, window_bounds = array<i64: 1, 208>}, {pipeline_mode = #tpu.pipeline_mode<synchronous>, transform_indices = @transform_7, window_bounds = array<i64: 48, 120>}, {pipeline_mode = #tpu.pipeline_mode<synchronous>, transform_indices = @transform_8, window_bounds = array<i64: 6, 208, 120>}, {pipeline_mode = #tpu.pipeline_mode<synchronous>, transform_indices = @transform_9, window_bounds = array<i64: 1, 120>}, {pipeline_mode = #tpu.pipeline_mode<synchronous>, transform_indices = @transform_10, window_bounds = array<i64: 120, 84>}, {pipeline_mode = #tpu.pipeline_mode<synchronous>, transform_indices = @transform_11, window_bounds = array<i64: 1, 84>}, {pipeline_mode = #tpu.pipeline_mode<synchronous>, transform_indices = @transform_12, window_bounds = array<i64: 84, 2>}, {pipeline_mode = #tpu.pipeline_mode<synchronous>, transform_indices = @transform_13, window_bounds = array<i64: 1, 2>}, {transform_indices = @transform_14, window_bounds = array<i64: 8, 2>}]} {
    %c0 = arith.constant 0 : index
    %c0_0 = arith.constant 0 : index
    %0 = vector.load %arg1[%c0, %c0_0] : memref<256x32xf32, #tpu.memory_space<vmem>>, vector<256x32xf32>
    %1 = arith.truncf %0 : vector<256x32xf32> to vector<256x32xbf16>
    %c0_1 = arith.constant 0 : index
    %c0_2 = arith.constant 0 : index
    %c0_3 = arith.constant 0 : index
    %2 = vector.load %arg2[%c0_1, %c0_2, %c0_3] : memref<3x32x180xbf16, #tpu.memory_space<vmem>>, vector<1x32x180xbf16>
    %3 = vector.shape_cast %2 : vector<1x32x180xbf16> to vector<32x180xbf16>
    %cst = arith.constant dense<0.000000e+00> : vector<256x180xf32>
    %4 = tpu.matmul %1, %3, %cst {dimension_numbers = #tpu.dot_dimension_numbers<[1], [0], [0], [1], [0, 0, 1, 1], [], []>} : vector<256x32xbf16>, vector<32x180xbf16>, vector<256x180xf32> -> vector<256x180xf32>
    %c255_i32 = arith.constant 255 : i32
    %5 = tpu.dynamic_rotate %0 by %c255_i32 dim 0 : vector<256x32xf32>, i32 -> vector<256x32xf32>
    %6 = arith.truncf %5 : vector<256x32xf32> to vector<256x32xbf16>
    %c1 = arith.constant 1 : index
    %c0_4 = arith.constant 0 : index
    %c0_5 = arith.constant 0 : index
    %7 = vector.load %arg2[%c1, %c0_4, %c0_5] : memref<3x32x180xbf16, #tpu.memory_space<vmem>>, vector<1x32x180xbf16>
    %8 = vector.shape_cast %7 : vector<1x32x180xbf16> to vector<32x180xbf16>
    %cst_6 = arith.constant dense<0.000000e+00> : vector<256x180xf32>
    %9 = tpu.matmul %6, %8, %cst_6 {dimension_numbers = #tpu.dot_dimension_numbers<[1], [0], [0], [1], [0, 0, 1, 1], [], []>} : vector<256x32xbf16>, vector<32x180xbf16>, vector<256x180xf32> -> vector<256x180xf32>
    %10 = arith.addf %4, %9 : vector<256x180xf32>
    %c254_i32 = arith.constant 254 : i32
    %11 = tpu.dynamic_rotate %0 by %c254_i32 dim 0 : vector<256x32xf32>, i32 -> vector<256x32xf32>
    %12 = arith.truncf %11 : vector<256x32xf32> to vector<256x32xbf16>
    %c2 = arith.constant 2 : index
    %c0_7 = arith.constant 0 : index
    %c0_8 = arith.constant 0 : index
    %13 = vector.load %arg2[%c2, %c0_7, %c0_8] : memref<3x32x180xbf16, #tpu.memory_space<vmem>>, vector<1x32x180xbf16>
    %14 = vector.shape_cast %13 : vector<1x32x180xbf16> to vector<32x180xbf16>
    %cst_9 = arith.constant dense<0.000000e+00> : vector<256x180xf32>
    %15 = tpu.matmul %12, %14, %cst_9 {dimension_numbers = #tpu.dot_dimension_numbers<[1], [0], [0], [1], [0, 0, 1, 1], [], []>} : vector<256x32xbf16>, vector<32x180xbf16>, vector<256x180xf32> -> vector<256x180xf32>
    %16 = arith.addf %10, %15 : vector<256x180xf32>
    %c0_10 = arith.constant 0 : index
    %c0_11 = arith.constant 0 : index
    %17 = vector.load %arg3[%c0_10, %c0_11] : memref<1x180xf32, #tpu.memory_space<vmem>>, vector<1x180xf32>
    %18 = vector.broadcast %17 : vector<1x180xf32> to vector<256x180xf32>
    %19 = arith.addf %16, %18 : vector<256x180xf32>
    %cst_12 = arith.constant 0.000000e+00 : f32
    %20 = vector.broadcast %cst_12 : f32 to vector<256x180xf32>
    %21 = arith.maximumf %19, %20 : vector<256x180xf32>
    %c179_i32 = arith.constant 179 : i32
    %22 = tpu.dynamic_rotate %21 by %c179_i32 dim 1 : vector<256x180xf32>, i32 -> vector<256x180xf32>
    %23 = arith.maximumf %21, %22 : vector<256x180xf32>
    %c255_i32_13 = arith.constant 255 : i32
    %24 = tpu.dynamic_rotate %23 by %c255_i32_13 dim 0 : vector<256x180xf32>, i32 -> vector<256x180xf32>
    %25 = arith.maximumf %23, %24 : vector<256x180xf32>
    %26 = arith.truncf %25 : vector<256x180xf32> to vector<256x180xbf16>
    %c0_14 = arith.constant 0 : index
    %c0_15 = arith.constant 0 : index
    %27 = vector.load %arg4[%c0_14, %c0_15] : memref<120x256xbf16, #tpu.memory_space<vmem>>, vector<120x256xbf16>
    %cst_16 = arith.constant dense<0.000000e+00> : vector<120x180xf32>
    %28 = tpu.matmul %27, %26, %cst_16 {dimension_numbers = #tpu.dot_dimension_numbers<[1], [0], [0], [1], [0, 0, 1, 1], [], []>} : vector<120x256xbf16>, vector<256x180xbf16>, vector<120x180xf32> -> vector<120x180xf32>
    %29 = arith.truncf %28 : vector<120x180xf32> to vector<120x180xbf16>
    %c0_17 = arith.constant 0 : index
    %c0_18 = arith.constant 0 : index
    %30 = vector.load %arg5[%c0_17, %c0_18] : memref<180x90xbf16, #tpu.memory_space<vmem>>, vector<180x90xbf16>
    %cst_19 = arith.constant dense<0.000000e+00> : vector<120x90xf32>
    %31 = tpu.matmul %29, %30, %cst_19 {dimension_numbers = #tpu.dot_dimension_numbers<[1], [0], [0], [1], [0, 0, 1, 1], [], []>} : vector<120x180xbf16>, vector<180x90xbf16>, vector<120x90xf32> -> vector<120x90xf32>
    %32 = arith.truncf %31 : vector<120x90xf32> to vector<120x90xbf16>
    %c0_20 = arith.constant 0 : index
    %c0_21 = arith.constant 0 : index
    %c0_22 = arith.constant 0 : index
    %33 = vector.load %arg6[%c0_20, %c0_21, %c0_22] : memref<3x90x208xbf16, #tpu.memory_space<vmem>>, vector<1x90x208xbf16>
    %34 = vector.shape_cast %33 : vector<1x90x208xbf16> to vector<90x208xbf16>
    %cst_23 = arith.constant dense<0.000000e+00> : vector<120x208xf32>
    %35 = tpu.matmul %32, %34, %cst_23 {dimension_numbers = #tpu.dot_dimension_numbers<[1], [0], [0], [1], [0, 0, 1, 1], [], []>} : vector<120x90xbf16>, vector<90x208xbf16>, vector<120x208xf32> -> vector<120x208xf32>
    %c119_i32 = arith.constant 119 : i32
    %36 = tpu.dynamic_rotate %31 by %c119_i32 dim 0 : vector<120x90xf32>, i32 -> vector<120x90xf32>
    %37 = arith.truncf %36 : vector<120x90xf32> to vector<120x90xbf16>
    %c1_24 = arith.constant 1 : index
    %c0_25 = arith.constant 0 : index
    %c0_26 = arith.constant 0 : index
    %38 = vector.load %arg6[%c1_24, %c0_25, %c0_26] : memref<3x90x208xbf16, #tpu.memory_space<vmem>>, vector<1x90x208xbf16>
    %39 = vector.shape_cast %38 : vector<1x90x208xbf16> to vector<90x208xbf16>
    %cst_27 = arith.constant dense<0.000000e+00> : vector<120x208xf32>
    %40 = tpu.matmul %37, %39, %cst_27 {dimension_numbers = #tpu.dot_dimension_numbers<[1], [0], [0], [1], [0, 0, 1, 1], [], []>} : vector<120x90xbf16>, vector<90x208xbf16>, vector<120x208xf32> -> vector<120x208xf32>
    %41 = arith.addf %35, %40 : vector<120x208xf32>
    %c118_i32 = arith.constant 118 : i32
    %42 = tpu.dynamic_rotate %31 by %c118_i32 dim 0 : vector<120x90xf32>, i32 -> vector<120x90xf32>
    %43 = arith.truncf %42 : vector<120x90xf32> to vector<120x90xbf16>
    %c2_28 = arith.constant 2 : index
    %c0_29 = arith.constant 0 : index
    %c0_30 = arith.constant 0 : index
    %44 = vector.load %arg6[%c2_28, %c0_29, %c0_30] : memref<3x90x208xbf16, #tpu.memory_space<vmem>>, vector<1x90x208xbf16>
    %45 = vector.shape_cast %44 : vector<1x90x208xbf16> to vector<90x208xbf16>
    %cst_31 = arith.constant dense<0.000000e+00> : vector<120x208xf32>
    %46 = tpu.matmul %43, %45, %cst_31 {dimension_numbers = #tpu.dot_dimension_numbers<[1], [0], [0], [1], [0, 0, 1, 1], [], []>} : vector<120x90xbf16>, vector<90x208xbf16>, vector<120x208xf32> -> vector<120x208xf32>
    %47 = arith.addf %41, %46 : vector<120x208xf32>
    %c0_32 = arith.constant 0 : index
    %c0_33 = arith.constant 0 : index
    %48 = vector.load %arg7[%c0_32, %c0_33] : memref<1x208xf32, #tpu.memory_space<vmem>>, vector<1x208xf32>
    %49 = vector.broadcast %48 : vector<1x208xf32> to vector<120x208xf32>
    %50 = arith.addf %47, %49 : vector<120x208xf32>
    %cst_34 = arith.constant 0.000000e+00 : f32
    %51 = vector.broadcast %cst_34 : f32 to vector<120x208xf32>
    %52 = arith.maximumf %50, %51 : vector<120x208xf32>
    %c207_i32 = arith.constant 207 : i32
    %53 = tpu.dynamic_rotate %52 by %c207_i32 dim 1 : vector<120x208xf32>, i32 -> vector<120x208xf32>
    %54 = arith.maximumf %52, %53 : vector<120x208xf32>
    %c119_i32_35 = arith.constant 119 : i32
    %55 = tpu.dynamic_rotate %54 by %c119_i32_35 dim 0 : vector<120x208xf32>, i32 -> vector<120x208xf32>
    %56 = arith.maximumf %54, %55 : vector<120x208xf32>
    %57 = arith.truncf %56 : vector<120x208xf32> to vector<120x208xbf16>
    %c0_36 = arith.constant 0 : index
    %c0_37 = arith.constant 0 : index
    %58 = vector.load %arg8[%c0_36, %c0_37] : memref<48x120xbf16, #tpu.memory_space<vmem>>, vector<48x120xbf16>
    %cst_38 = arith.constant dense<0.000000e+00> : vector<48x208xf32>
    %59 = tpu.matmul %58, %57, %cst_38 {dimension_numbers = #tpu.dot_dimension_numbers<[1], [0], [0], [1], [0, 0, 1, 1], [], []>} : vector<48x120xbf16>, vector<120x208xbf16>, vector<48x208xf32> -> vector<48x208xf32>
    %60 = arith.truncf %59 : vector<48x208xf32> to vector<48x208xbf16>
    %61 = vector.extract_strided_slice %60 {offsets = [0, 0], sizes = [8, 208], strides = [1, 1]} : vector<48x208xbf16> to vector<8x208xbf16>
    %c0_39 = arith.constant 0 : index
    %c0_40 = arith.constant 0 : index
    %c0_41 = arith.constant 0 : index
    %62 = vector.load %arg9[%c0_39, %c0_40, %c0_41] : memref<6x208x120xbf16, #tpu.memory_space<vmem>>, vector<1x208x120xbf16>
    %63 = vector.shape_cast %62 : vector<1x208x120xbf16> to vector<208x120xbf16>
    %cst_42 = arith.constant dense<0.000000e+00> : vector<8x120xf32>
    %64 = tpu.matmul %61, %63, %cst_42 {dimension_numbers = #tpu.dot_dimension_numbers<[1], [0], [0], [1], [0, 0, 1, 1], [], []>} : vector<8x208xbf16>, vector<208x120xbf16>, vector<8x120xf32> -> vector<8x120xf32>
    %65 = vector.extract_strided_slice %60 {offsets = [8, 0], sizes = [8, 208], strides = [1, 1]} : vector<48x208xbf16> to vector<8x208xbf16>
    %c1_43 = arith.constant 1 : index
    %c0_44 = arith.constant 0 : index
    %c0_45 = arith.constant 0 : index
    %66 = vector.load %arg9[%c1_43, %c0_44, %c0_45] : memref<6x208x120xbf16, #tpu.memory_space<vmem>>, vector<1x208x120xbf16>
    %67 = vector.shape_cast %66 : vector<1x208x120xbf16> to vector<208x120xbf16>
    %cst_46 = arith.constant dense<0.000000e+00> : vector<8x120xf32>
    %68 = tpu.matmul %65, %67, %cst_46 {dimension_numbers = #tpu.dot_dimension_numbers<[1], [0], [0], [1], [0, 0, 1, 1], [], []>} : vector<8x208xbf16>, vector<208x120xbf16>, vector<8x120xf32> -> vector<8x120xf32>
    %69 = arith.addf %64, %68 : vector<8x120xf32>
    %70 = vector.extract_strided_slice %60 {offsets = [16, 0], sizes = [8, 208], strides = [1, 1]} : vector<48x208xbf16> to vector<8x208xbf16>
    %c2_47 = arith.constant 2 : index
    %c0_48 = arith.constant 0 : index
    %c0_49 = arith.constant 0 : index
    %71 = vector.load %arg9[%c2_47, %c0_48, %c0_49] : memref<6x208x120xbf16, #tpu.memory_space<vmem>>, vector<1x208x120xbf16>
    %72 = vector.shape_cast %71 : vector<1x208x120xbf16> to vector<208x120xbf16>
    %cst_50 = arith.constant dense<0.000000e+00> : vector<8x120xf32>
    %73 = tpu.matmul %70, %72, %cst_50 {dimension_numbers = #tpu.dot_dimension_numbers<[1], [0], [0], [1], [0, 0, 1, 1], [], []>} : vector<8x208xbf16>, vector<208x120xbf16>, vector<8x120xf32> -> vector<8x120xf32>
    %74 = arith.addf %69, %73 : vector<8x120xf32>
    %75 = vector.extract_strided_slice %60 {offsets = [24, 0], sizes = [8, 208], strides = [1, 1]} : vector<48x208xbf16> to vector<8x208xbf16>
    %c3 = arith.constant 3 : index
    %c0_51 = arith.constant 0 : index
    %c0_52 = arith.constant 0 : index
    %76 = vector.load %arg9[%c3, %c0_51, %c0_52] : memref<6x208x120xbf16, #tpu.memory_space<vmem>>, vector<1x208x120xbf16>
    %77 = vector.shape_cast %76 : vector<1x208x120xbf16> to vector<208x120xbf16>
    %cst_53 = arith.constant dense<0.000000e+00> : vector<8x120xf32>
    %78 = tpu.matmul %75, %77, %cst_53 {dimension_numbers = #tpu.dot_dimension_numbers<[1], [0], [0], [1], [0, 0, 1, 1], [], []>} : vector<8x208xbf16>, vector<208x120xbf16>, vector<8x120xf32> -> vector<8x120xf32>
    %79 = arith.addf %74, %78 : vector<8x120xf32>
    %80 = vector.extract_strided_slice %60 {offsets = [32, 0], sizes = [8, 208], strides = [1, 1]} : vector<48x208xbf16> to vector<8x208xbf16>
    %c4 = arith.constant 4 : index
    %c0_54 = arith.constant 0 : index
    %c0_55 = arith.constant 0 : index
    %81 = vector.load %arg9[%c4, %c0_54, %c0_55] : memref<6x208x120xbf16, #tpu.memory_space<vmem>>, vector<1x208x120xbf16>
    %82 = vector.shape_cast %81 : vector<1x208x120xbf16> to vector<208x120xbf16>
    %cst_56 = arith.constant dense<0.000000e+00> : vector<8x120xf32>
    %83 = tpu.matmul %80, %82, %cst_56 {dimension_numbers = #tpu.dot_dimension_numbers<[1], [0], [0], [1], [0, 0, 1, 1], [], []>} : vector<8x208xbf16>, vector<208x120xbf16>, vector<8x120xf32> -> vector<8x120xf32>
    %84 = arith.addf %79, %83 : vector<8x120xf32>
    %85 = vector.extract_strided_slice %60 {offsets = [40, 0], sizes = [8, 208], strides = [1, 1]} : vector<48x208xbf16> to vector<8x208xbf16>
    %c5 = arith.constant 5 : index
    %c0_57 = arith.constant 0 : index
    %c0_58 = arith.constant 0 : index
    %86 = vector.load %arg9[%c5, %c0_57, %c0_58] : memref<6x208x120xbf16, #tpu.memory_space<vmem>>, vector<1x208x120xbf16>
    %87 = vector.shape_cast %86 : vector<1x208x120xbf16> to vector<208x120xbf16>
    %cst_59 = arith.constant dense<0.000000e+00> : vector<8x120xf32>
    %88 = tpu.matmul %85, %87, %cst_59 {dimension_numbers = #tpu.dot_dimension_numbers<[1], [0], [0], [1], [0, 0, 1, 1], [], []>} : vector<8x208xbf16>, vector<208x120xbf16>, vector<8x120xf32> -> vector<8x120xf32>
    %89 = arith.addf %84, %88 : vector<8x120xf32>
    %c0_60 = arith.constant 0 : index
    %c0_61 = arith.constant 0 : index
    %90 = vector.load %arg10[%c0_60, %c0_61] : memref<1x120xf32, #tpu.memory_space<vmem>>, vector<1x120xf32>
    %91 = vector.broadcast %90 : vector<1x120xf32> to vector<8x120xf32>
    %92 = arith.addf %89, %91 : vector<8x120xf32>
    %cst_62 = arith.constant 0.000000e+00 : f32
    %93 = vector.broadcast %cst_62 : f32 to vector<8x120xf32>
    %94 = arith.maximumf %92, %93 : vector<8x120xf32>
    %95 = arith.truncf %94 : vector<8x120xf32> to vector<8x120xbf16>
    %c0_63 = arith.constant 0 : index
    %c0_64 = arith.constant 0 : index
    %96 = vector.load %arg11[%c0_63, %c0_64] : memref<120x84xbf16, #tpu.memory_space<vmem>>, vector<120x84xbf16>
    %cst_65 = arith.constant dense<0.000000e+00> : vector<8x84xf32>
    %97 = tpu.matmul %95, %96, %cst_65 {dimension_numbers = #tpu.dot_dimension_numbers<[1], [0], [0], [1], [0, 0, 1, 1], [], []>} : vector<8x120xbf16>, vector<120x84xbf16>, vector<8x84xf32> -> vector<8x84xf32>
    %c0_66 = arith.constant 0 : index
    %c0_67 = arith.constant 0 : index
    %98 = vector.load %arg12[%c0_66, %c0_67] : memref<1x84xf32, #tpu.memory_space<vmem>>, vector<1x84xf32>
    %99 = vector.broadcast %98 : vector<1x84xf32> to vector<8x84xf32>
    %100 = arith.addf %97, %99 : vector<8x84xf32>
    %cst_68 = arith.constant 0.000000e+00 : f32
    %101 = vector.broadcast %cst_68 : f32 to vector<8x84xf32>
    %102 = arith.maximumf %100, %101 : vector<8x84xf32>
    %103 = arith.truncf %102 : vector<8x84xf32> to vector<8x84xbf16>
    %c0_69 = arith.constant 0 : index
    %c0_70 = arith.constant 0 : index
    %104 = vector.load %arg13[%c0_69, %c0_70] : memref<84x2xbf16, #tpu.memory_space<vmem>>, vector<84x2xbf16>
    %cst_71 = arith.constant dense<0.000000e+00> : vector<8x2xf32>
    %105 = tpu.matmul %103, %104, %cst_71 {dimension_numbers = #tpu.dot_dimension_numbers<[1], [0], [0], [1], [0, 0, 1, 1], [], []>} : vector<8x84xbf16>, vector<84x2xbf16>, vector<8x2xf32> -> vector<8x2xf32>
    %c0_72 = arith.constant 0 : index
    %c0_73 = arith.constant 0 : index
    %106 = vector.load %arg14[%c0_72, %c0_73] : memref<1x2xf32, #tpu.memory_space<vmem>>, vector<1x2xf32>
    %107 = vector.broadcast %106 : vector<1x2xf32> to vector<8x2xf32>
    %108 = arith.addf %105, %107 : vector<8x2xf32>
    %cst_74 = arith.constant dense<0xFF800000> : vector<8xf32>
    %109 = vector.multi_reduction <maximumf>, %108, %cst_74 [1] : vector<8x2xf32> to vector<8xf32>
    %110 = vector.shape_cast %109 : vector<8xf32> to vector<8x1xf32>
    %111 = vector.broadcast %110 : vector<8x1xf32> to vector<8x2xf32>
    %112 = arith.subf %108, %111 : vector<8x2xf32>
    %113 = math.exp %112 : vector<8x2xf32>
    %cst_75 = arith.constant dense<0.000000e+00> : vector<8xf32>
    %114 = vector.multi_reduction <add>, %113, %cst_75 [1] : vector<8x2xf32> to vector<8xf32>
    %115 = vector.shape_cast %114 : vector<8xf32> to vector<8x1xf32>
    %116 = tpu.reciprocal %115 {approx = true} : vector<8x1xf32> -> vector<8x1xf32>
    %117 = arith.mulf %115, %116 : vector<8x1xf32>
    %cst_76 = arith.constant 2.000000e+00 : f32
    %118 = vector.broadcast %cst_76 : f32 to vector<8x1xf32>
    %119 = arith.subf %118, %117 : vector<8x1xf32>
    %120 = arith.mulf %116, %119 : vector<8x1xf32>
    %121 = vector.broadcast %120 : vector<8x1xf32> to vector<8x2xf32>
    %122 = arith.mulf %113, %121 : vector<8x2xf32>
    %c0_77 = arith.constant 0 : index
    %c0_78 = arith.constant 0 : index
    %123 = vector.load %arg15[%c0_77, %c0_78] : memref<8x2xf32, #tpu.memory_space<vmem>>, vector<8x2xf32>
    tpu.vector_store %arg15[%c0_77, %c0_78], %122 {strides = array<i32>} : memref<8x2xf32, #tpu.memory_space<vmem>>, vector<8x2xf32>,
    return
  }
  func.func @transform_0(%arg0: i32) -> (i32, i32) {
    %c0_i32 = arith.constant 0 : i32
    %c0_i32_0 = arith.constant 0 : i32
    return %arg0, %c0_i32 : i32, i32
  }
  func.func @transform_1(%arg0: i32) -> (i32, i32, i32) {
    %c0_i32 = arith.constant 0 : i32
    %c0_i32_0 = arith.constant 0 : i32
    %c0_i32_1 = arith.constant 0 : i32
    %c0_i32_2 = arith.constant 0 : i32
    return %c0_i32, %c0_i32_0, %c0_i32_1 : i32, i32, i32
  }
  func.func @transform_2(%arg0: i32) -> (i32, i32) {
    %c0_i32 = arith.constant 0 : i32
    %c0_i32_0 = arith.constant 0 : i32
    %c0_i32_1 = arith.constant 0 : i32
    return %c0_i32, %c0_i32_0 : i32, i32
  }
  func.func @transform_3(%arg0: i32) -> (i32, i32) {
    %c0_i32 = arith.constant 0 : i32
    %c0_i32_0 = arith.constant 0 : i32
    %c0_i32_1 = arith.constant 0 : i32
    return %c0_i32, %c0_i32_0 : i32, i32
  }
  func.func @transform_4(%arg0: i32) -> (i32, i32) {
    %c0_i32 = arith.constant 0 : i32
    %c0_i32_0 = arith.constant 0 : i32
    %c0_i32_1 = arith.constant 0 : i32
    return %c0_i32, %c0_i32_0 : i32, i32
  }
  func.func @transform_5(%arg0: i32) -> (i32, i32, i32) {
    %c0_i32 = arith.constant 0 : i32
    %c0_i32_0 = arith.constant 0 : i32
    %c0_i32_1 = arith.constant 0 : i32
    %c0_i32_2 = arith.constant 0 : i32
    return %c0_i32, %c0_i32_0, %c0_i32_1 : i32, i32, i32
  }
  func.func @transform_6(%arg0: i32) -> (i32, i32) {
    %c0_i32 = arith.constant 0 : i32
    %c0_i32_0 = arith.constant 0 : i32
    %c0_i32_1 = arith.constant 0 : i32
    return %c0_i32, %c0_i32_0 : i32, i32
  }
  func.func @transform_7(%arg0: i32) -> (i32, i32) {
    %c0_i32 = arith.constant 0 : i32
    %c0_i32_0 = arith.constant 0 : i32
    %c0_i32_1 = arith.constant 0 : i32
    return %c0_i32, %c0_i32_0 : i32, i32
  }
  func.func @transform_8(%arg0: i32) -> (i32, i32, i32) {
    %c0_i32 = arith.constant 0 : i32
    %c0_i32_0 = arith.constant 0 : i32
    %c0_i32_1 = arith.constant 0 : i32
    %c0_i32_2 = arith.constant 0 : i32
    return %c0_i32, %c0_i32_0, %c0_i32_1 : i32, i32, i32
  }
  func.func @transform_9(%arg0: i32) -> (i32, i32) {
    %c0_i32 = arith.constant 0 : i32
    %c0_i32_0 = arith.constant 0 : i32
    %c0_i32_1 = arith.constant 0 : i32
    return %c0_i32, %c0_i32_0 : i32, i32
  }
  func.func @transform_10(%arg0: i32) -> (i32, i32) {
    %c0_i32 = arith.constant 0 : i32
    %c0_i32_0 = arith.constant 0 : i32
    %c0_i32_1 = arith.constant 0 : i32
    return %c0_i32, %c0_i32_0 : i32, i32
  }
  func.func @transform_11(%arg0: i32) -> (i32, i32) {
    %c0_i32 = arith.constant 0 : i32
    %c0_i32_0 = arith.constant 0 : i32
    %c0_i32_1 = arith.constant 0 : i32
    return %c0_i32, %c0_i32_0 : i32, i32
  }
  func.func @transform_12(%arg0: i32) -> (i32, i32) {
    %c0_i32 = arith.constant 0 : i32
    %c0_i32_0 = arith.constant 0 : i32
    %c0_i32_1 = arith.constant 0 : i32
    return %c0_i32, %c0_i32_0 : i32, i32
  }
  func.func @transform_13(%arg0: i32) -> (i32, i32) {
    %c0_i32 = arith.constant 0 : i32
    %c0_i32_0 = arith.constant 0 : i32
    %c0_i32_1 = arith.constant 0 : i32
    return %c0_i32, %c0_i32_0 : i32, i32
  }
  func.func @transform_14(%arg0: i32) -> (i32, i32) {
    %c0_i32 = arith.constant 0 : i32
    %c0_i32_0 = arith.constant 0 : i32
    return %arg0, %c0_i32 : i32, i32
  }
}

</mosaic_0001>

<bundles_post_ra>
// kernel: lenet_forward.1
= control target key start
LH: loop header
LB: loop body
LE: loop exit
PB: predicated region body
PF: predicated region fallthrough
CT: control target
= control target key end

     0   :  { %19 = vsyncpa [#allocation3], 0  ;;  %s9062_s0 = inlined_call_operand.vmem [shape: f32[256,32], index: 0, kind: input, shape index: {}]   ;;  %s9063_s1 = inlined_call_operand.hbm [shape: bf16[3,32,180], index: 1, kind: input, shape index: {}]   ;;  %s9064_s2 = inlined_call_operand.vmem [shape: f32[1,180], index: 2, kind: input, shape index: {}]   ;;  %s9065_s3 = inlined_call_operand.vmem [shape: bf16[120,256], index: 3, kind: input, shape index: {}]   ;;  %s9066_s4 = inlined_call_operand.hbm [shape: bf16[180,90], index: 4, kind: input, shape index: {}]   ;;  %s9067_s5 = inlined_call_operand.vmem [shape: bf16[3,90,208], index: 5, kind: input, shape index: {}]   ;;  %s9068_s6 = inlined_call_operand.vmem [shape: f32[1,208], index: 6, kind: input, shape index: {}]   ;;  %s9069_s7 = inlined_call_operand.vmem [shape: bf16[48,120], index: 7, kind: input, shape index: {}]   ;;  %s9070_s8 = inlined_call_operand.hbm [shape: bf16[6,208,120], index: 8, kind: input, shape index: {}]   ;;  %s9071_s9 = inlined_call_operand.vmem [shape: f32[1,120], index: 9, kind: input, shape index: {}]   ;;  %s9072_s10 = inlined_call_operand.vmem [shape: bf16[120,84], index: 10, kind: input, shape index: {}]   ;;  %s9073_s11 = inlined_call_operand.vmem [shape: f32[1,84], index: 11, kind: input, shape index: {}]   ;;  %s9074_s12 = inlined_call_operand.vmem [shape: bf16[84,2], index: 12, kind: input, shape index: {}]   ;;  %s9075_s13 = inlined_call_operand.vmem [shape: f32[1,2], index: 13, kind: input, shape index: {}]   ;;  %s9076_s14 = inlined_call_operand.vmem [shape: f32[8,2], index: 14, kind: output, shape index: {}]  }
   0x1   :  { %20 = vsyncpa [#allocation5], 0  ;;  %s5790_s29 = smov [#allocation4]  }
   0x2   :  { %s44_s30 = sshll.u32 %s5790_s29, 4  ;;  %s45_s30 = int_to_ptr.vmem [resolvable:$true] %s44_s30 }
   0x3   :  { %s5734_s15 = scalar_lea.vmem %s45_s30, 1472  ;;  %p5739_p1 = scmp.lt.s32.totalorder %s45_s30, %s45_s30 }
   0x4   :  { %p5735_p0 = scmp.ne.s32.totalorder %s45_s30, %s5734_s15  ;;  %p5740_p2 = scmp.lt.s32.totalorder %s5734_s15, %s5734_s15 }
   0x6   :  { %p5741_p3 = por %p5740_p2, %p5739_p1 }
   0x8   :  { %p5742_p4 = pnand %p5741_p3, %p5735_p0 }
   0xa   :  { %5745 = shalt.err (!%p5742_p4)
}
   0xb   :  { %s5791_s16 = smov 64   ;;  %s5792_s17 = smov 4  }
   0xc   :  { %50 = dma.hbm_to_vmem [thread:$0]  %s9066_s4, 1472, %s45_s30, [#allocation5], %s5791_s16, %s5791_s16, %s5792_s17  }
   0xd   :  { %s5793_s20 = smov [#allocation2]  }
   0xe   :  { %s28_s21 = sshll.u32 %s5793_s20, 4  ;;  %s29_s21 = int_to_ptr.vmem [resolvable:$true] %s28_s21 }
   0xf   :  { %s5754_s22 = scalar_lea.vmem %s29_s21, 1536  ;;  %p5759_p6 = scmp.lt.s32.totalorder %s29_s21, %s29_s21 }
  0x10   :  { %p5755_p5 = scmp.ne.s32.totalorder %s29_s21, %s5754_s22  ;;  %p5760_p7 = scmp.lt.s32.totalorder %s5754_s22, %s5754_s22 }
  0x12   :  { %p5761_p8 = por %p5760_p7, %p5759_p6 }
  0x14   :  { %p5762_p9 = pnand %p5761_p8, %p5755_p5 }
  0x16   :  { %5765 = shalt.err (!%p5762_p9)
}
  0x17   :  { %s5794_s23 = smov 128   ;;  %s5795_s24 = smov 8  }
  0x18   :  { %34 = dma.hbm_to_vmem [thread:$0]  %s9063_s1, 1536, %s29_s21, [#allocation3], %s5794_s23, %s5794_s23, %s5795_s24  }
  0x19   :  { %s5796_s27 = smov [#allocation6]  }
  0x1a   :  { %s62_s28 = sshll.u32 %s5796_s27, 4  ;;  %s63_s28 = int_to_ptr.vmem [resolvable:$true] %s62_s28 }
  0x1b   :  { %s5774_s4 = scalar_lea.vmem %s63_s28, 9984  ;;  %p5779_p11 = scmp.lt.s32.totalorder %s63_s28, %s63_s28 }
  0x1c   :  { %p5775_p10 = scmp.ne.s32.totalorder %s63_s28, %s5774_s4  ;;  %p5780_p12 = scmp.lt.s32.totalorder %s5774_s4, %s5774_s4 }
  0x1e   :  { %p5781_p13 = por %p5780_p12, %p5779_p11 }
  0x20   :  { %p5782_p0 = pnand %p5781_p13, %p5775_p10 }
  0x22   :  { %5785 = shalt.err (!%p5782_p0)
}
  0x23   :  { %68 = dma.hbm_to_vmem [thread:$0]  %s9070_s8, 9984, %s63_s28, [#allocation5], %s5791_s16, %s5791_s16, %s5792_s17  }
  0x24   :  { %5786 = dma.done.wait [#allocation3], 1536  }
  0x25   :  { %5787 = vsyncadd [#allocation3], 4294965760 }
  0x26   :  { %5788 = dma.done.wait [#allocation5], 11456  }
  0x27   :  { %5789 = vsyncadd [#allocation5], 4294955840  ;;  %v9077_v0 = vmov 0   ;;  %v173_v1 = vlaneseq  ;;  %v5520_v2 = vld [vmem:[#allocation2 + $0x34] ss:$8 sps:$4 sm:$0xff]   ;;  %v5894_v11 = vld [vmem:[%s9062_s0] sm:$0xff] }
  0x28   :  { %330 = vmatprep.mubr.bf16.mxu0 %v9077_v0  ;;  %591 = vmatprep.mubr.bf16.mxu1 %v9077_v0  ;;  %v5522_v3 = vld [vmem:[#allocation2 + $0x14] ss:$8 sps:$4 sm:$0xff]   ;;  %v5524_v5 = vld [vmem:[#allocation2 + $0x30] ss:$8 sps:$4 sm:$0xff]   ;;  %v5526_v7 = vld [vmem:[#allocation2 + $0x24] ss:$8 sps:$4 sm:$0xff]  }
  0x29   :  { %v5889_v4 = vshrl.u32 %v173_v1, 7  ;;  %310 = vmatprep.subr.bf16.mxu0 %v5520_v2  ;;  %v5525_v6 = vld [vmem:[#allocation2 + $0x10] ss:$8 sps:$4 sm:$0xff]   ;;  %571 = vmatprep.subr.bf16.mxu1 %v5522_v3  ;;  %v5528_v8 = vld [vmem:[#allocation2 + $0x4] ss:$8 sps:$4 sm:$0xff]   ;;  %v141_v14 = vrot.slane %v5894_v11, 1 }
  0x2a   :  { %311 = vmatpush1.bf16.msra.mxu0 %v5524_v5  ;;  %572 = vmatpush1.bf16.msra.mxu1 %v5525_v6  ;;  %v5530_v9 = vld [vmem:[#allocation2 + $0x20] ss:$8 sps:$4 sm:$0xff]   ;;  %v5905_v13 = vld [vmem:[%s9062_s0 + $0x10] sm:$0xff]  ;;  %v5912_v16 = vld [vmem:[%s9062_s0 + $0x18] sm:$0xff]  ;;  %vm249_vm1 = vcmask 261120   ;;  %v752_v49 = vrot.slane %v5894_v11, 2 }
  0x2b   :  { %312 = vmatprep.subr.bf16.mxu0 %v5526_v7  ;;  %v5531_v10 = vld [vmem:[#allocation2] ss:$8 sps:$4 sm:$0xff]   ;;  %vm175_vm0 = vcmp.lt.s32.totalorder %v5889_v4, 7  ;;  %573 = vmatprep.subr.bf16.mxu1 %v5528_v8  ;;  %v143_v17 = vrot.slane %v5905_v13, 1  ;;  %v144_v22 = vrot.slane %v5912_v16, 1  ;;  %v95_v30 = vld [vmem:[%s9062_s0 + $0x30] sm:$0xff]  ;;  %v122_v31 = vpack.c.bf16 %v5912_v16, %v5905_v13 }
  0x2c   :  { %v5899_v12 = vld [vmem:[%s9062_s0 + $0x8] sm:$0xff]  ;;  %v5920_v19 = vld [vmem:[%s9062_s0 + $0x20] sm:$0xff]  ;;  %v5532_v25 = vld [vmem:[#allocation2 + $0x50] ss:$8 sps:$4 sm:$0xff]   ;;  %v147_v34 = vrot.slane %v95_v30, 1  ;;  %v754_v47 = vrot.slane %v5905_v13, 2 }
  0x2d   :  { %v142_v15 = vrot.slane %v5899_v12, 1  ;;  %v121_v18 = vpack.c.bf16 %v5899_v12, %v5894_v11  ;;  %v145_v23 = vrot.slane %v5920_v19, 1  ;;  %v5534_v26 = vld [vmem:[#allocation2 + $0x54] ss:$8 sps:$4 sm:$0xff]   ;;  %v204_v28 = vsel %vm175_vm0, %v143_v17, %v144_v22  ;;  %v94_v29 = vld [vmem:[%s9062_s0 + $0x28] sm:$0xff]  ;;  %v5953_v38 = vld [vmem:[%s9062_s0 + $0x40] sm:$0xff] }
  0x2e   :  { %313 = vmatpush1.bf16.msra.mxu0 %v5530_v9  ;;  %574 = vmatpush1.bf16.msra.mxu1 %v5531_v10  ;;  %v146_v33 = vrot.slane %v94_v29, 1  ;;  %v5535_v35 = vld [vmem:[#allocation2 + $0x40] ss:$8 sps:$4 sm:$0xff]   ;;  %v5537_v36 = vld [vmem:[#allocation2 + $0x44] ss:$8 sps:$4 sm:$0xff]   ;;  %v96_v37 = vld [vmem:[%s9062_s0 + $0x38] sm:$0xff]  ;;  %v123_v43 = vpack.c.bf16 %v94_v29, %v5920_v19 }
  0x2f   :  { %v206_v20 = vsel %vm175_vm0, %v141_v14, %v142_v15  ;;  %v205_v21 = vsel %vm175_vm0, %v142_v15, %v143_v17  ;;  %v203_v27 = vsel %vm175_vm0, %v144_v22, %v145_v23  ;;  %918 = vmatprep.subr.bf16.mxu0 %v5534_v26  ;;  %v5965_v41 = vld [vmem:[%s9062_s0 + $0x48] sm:$0xff]  ;;  %v753_v42 = vrot.slane %v5899_v12, 2  ;;  %v5974_v48 = vld [vmem:[%s9062_s0 + $0x50] sm:$0xff]  ;;  %v100_v9 = vld [vmem:[%s9062_s0 + $0x58] sm:$0xff]  ;;  %s5799_s21 = smov 127  }
  0x30   :  { %v208_v24 = vpack.c.bf16 %v205_v21, %v206_v20  ;;  %v209_v32 = vpack.c.bf16 %v203_v27, %v204_v28  ;;  %v201_v39 = vsel %vm175_vm0, %v146_v33, %v147_v34  ;;  %v202_v40 = vsel %vm175_vm0, %v145_v23, %v146_v33  ;;  %v101_v13 = vld [vmem:[%s9062_s0 + $0x60] sm:$0xff]  ;;  %v102_v15 = vld [vmem:[%s9062_s0 + $0x68] sm:$0xff]  ;;  %v6060_v20 = vld [vmem:[%s9062_s0 + $0x78] sm:$0xff] }
  0x31   :  { %4836 = vmatmul.mubr.msk.bf16.vlgmr.msra.gmra.mxu1 %vm249_vm1, %v121_v18  ;;  %v148_v44 = vrot.slane %v96_v37, 1  ;;  %v210_v45 = vpack.c.bf16 %v201_v39, %v202_v40  ;;  %v149_v46 = vrot.slane %v5953_v38, 1  ;;  %vm784_vm2 = vcmp.lt.s32.totalorder %v5889_v4, 6  ;;  %v6065_v21 = vld [vmem:[%s9062_s0 + $0x80] sm:$0xff]  ;;  %v6082_v26 = vld [vmem:[%s9062_s0 + $0x98] sm:$0xff] }
  0x32   :  { %4816 = vmatmul.mubr.msk.bf16.vlgmr.msra.gmra.mxu0 %vm249_vm1, %v208_v24  ;;  %601 = vmatprep.mubr.bf16.mxu1 %v9077_v0  ;;  %v150_v50 = vrot.slane %v5965_v41, 1  ;;  %v151_v53 = vrot.slane %v5974_v48, 1  ;;  %v5990_v54 = vsel %vm784_vm2, %v753_v42, %v754_v47  ;;  %v124_v55 = vpack.c.bf16 %v96_v37, %v95_v30  ;;  %v6072_v24 = vld [vmem:[%s9062_s0 + $0x88] sm:$0xff]  ;;  %v6089_v28 = vld [vmem:[%s9062_s0 + $0xa0] sm:$0xff] }
  0x33   :  { %340 = vmatprep.mubr.bf16.mxu0 %v9077_v0  ;;  %919 = vmatpush1.bf16.msra.mxu0 %v5532_v25  ;;  %v199_v51 = vsel %vm175_vm0, %v148_v44, %v149_v46  ;;  %v200_v52 = vsel %vm175_vm0, %v147_v34, %v148_v44  ;;  %v5996_v56 = vsel %vm784_vm2, %v752_v49, %v753_v42  ;;  %v755_v59 = vrot.slane %v5912_v16, 2  ;;  %v6077_v25 = vld [vmem:[%s9062_s0 + $0x90] sm:$0xff] }
  0x34   :  { %920 = vmatprep.subr.bf16.mxu0 %v5537_v36  ;;  %v211_v57 = vpack.c.bf16 %v199_v51, %v200_v52  ;;  %v817_v58 = vpack.c.bf16 %v5990_v54, %v5996_v56  ;;  %v756_v60 = vrot.slane %v5920_v19, 2  ;;  %v757_v61 = vrot.slane %v94_v29, 2  ;;  %v6055_v19 = vld [vmem:[%s9062_s0 + $0x70] sm:$0xff]  ;;  %v6094_v29 = vld [vmem:[%s9062_s0 + $0xa8] sm:$0xff] }
  0x35   :  { %v758_v62 = vrot.slane %v95_v30, 2  ;;  %v759_v63 = vrot.slane %v96_v37, 2  ;;  %v760_v1 = vrot.slane %v5953_v38, 2  ;;  %v6009_v3 = vsel %vm784_vm2, %v754_v47, %v755_v59  ;;  %v6099_v30 = vld [vmem:[%s9062_s0 + $0xb0] sm:$0xff] }
  0x36   :  { %v6005_v2 = vsel %vm784_vm2, %v755_v59, %v756_v60  ;;  %v6019_v7 = vsel %vm784_vm2, %v756_v60, %v757_v61  ;;  %v197_v17 = vsel %vm175_vm0, %v150_v50, %v151_v53  ;;  %v198_v18 = vsel %vm175_vm0, %v149_v46, %v150_v50 }
  0x37   :  { %921 = vmatpush1.bf16.msra.mxu0 %v5535_v35  ;;  %v818_v5 = vpack.c.bf16 %v6005_v2, %v6009_v3  ;;  %v6015_v6 = vsel %vm784_vm2, %v757_v61, %v758_v62  ;;  %v6023_v8 = vsel %vm784_vm2, %v759_v63, %v760_v1  ;;  %v6033_v12 = vsel %vm784_vm2, %v758_v62, %v759_v63 }
  0x38   :  { %v819_v10 = vpack.c.bf16 %v6015_v6, %v6019_v7  ;;  %v820_v16 = vpack.c.bf16 %v6023_v8, %v6033_v12  ;;  %v761_v22 = vrot.slane %v5965_v41, 2  ;;  %v762_v23 = vrot.slane %v5974_v48, 2 }
  0x39   :  { %4837 = vmatmul.mubr.msk.bf16.gmra.mxu1 %vm249_vm1, %v122_v31  ;;  %v125_v27 = vpack.c.bf16 %v5965_v41, %v5953_v38  ;;  %v212_v33 = vpack.c.bf16 %v197_v17, %v198_v18  ;;  %v152_v34 = vrot.slane %v100_v9, 1  ;;  %v153_v36 = vrot.slane %v101_v13, 1 }
  0x3a   :  { %4817 = vmatmul.mubr.msk.bf16.gmra.mxu0 %vm249_vm1, %v209_v32  ;;  %611 = vmatprep.mubr.bf16.mxu1 %v9077_v0  ;;  %v6103_v31 = vsel %vm784_vm2, %v761_v22, %v762_v23  ;;  %v6107_v32 = vsel %vm784_vm2, %v760_v1, %v761_v22  ;;  %v154_v37 = vrot.slane %v102_v15, 1  ;;  %v155_v38 = vrot.slane %v6055_v19, 1 }
  0x3b   :  { %350 = vmatprep.mubr.bf16.mxu0 %v9077_v0  ;;  %v821_v35 = vpack.c.bf16 %v6103_v31, %v6107_v32  ;;  %v156_v39 = vrot.slane %v6060_v20, 1  ;;  %v157_v40 = vrot.slane %v6065_v21, 1  ;;  %v158_v41 = vrot.slane %v6072_v24, 1 }
  0x3c   :  { %v159_v42 = vrot.slane %v6077_v25, 1  ;;  %v161_v44 = vrot.slane %v6089_v28, 1  ;;  %v163_v46 = vrot.slane %v6099_v30, 1  ;;  %v195_v47 = vsel %vm175_vm0, %v152_v34, %v153_v36 }
  0x3d   :  { %v196_v50 = vsel %vm175_vm0, %v151_v53, %v152_v34  ;;  %v763_v51 = vrot.slane %v100_v9, 2  ;;  %v764_v52 = vrot.slane %v101_v13, 2  ;;  %v194_v53 = vsel %vm175_vm0, %v153_v36, %v154_v37 }
  0x3e   :  { %v213_v60 = vpack.c.bf16 %v195_v47, %v196_v50  ;;  %v765_v62 = vrot.slane %v102_v15, 2  ;;  %v766_v63 = vrot.slane %v6055_v19, 2  ;;  %v127_v1 = vpack.c.bf16 %v102_v15, %v101_v13 }
  0x3f   :  { %v6137_v59 = vsel %vm784_vm2, %v762_v23, %v763_v51  ;;  %v191_v13 = vsel %vm175_vm0, %v156_v39, %v157_v40  ;;  %v192_v15 = vsel %vm175_vm0, %v155_v38, %v156_v39  ;;  %v767_v23 = vrot.slane %v6060_v20, 2 }
  0x40   :  { %v6156_v17 = vsel %vm784_vm2, %v764_v52, %v765_v62  ;;  %v769_v39 = vrot.slane %v6072_v24, 2  ;;  %v770_v50 = vrot.slane %v6077_v25, 2  ;;  %v774_v12 = vrot.slane %v6099_v30, 2 }
  0x41   :  { %4838 = vmatmul.mubr.msk.bf16.gmra.mxu1 %vm249_vm1, %v123_v43  ;;  %v160_v43 = vrot.slane %v6082_v26, 1  ;;  %v6178_v36 = vsel %vm784_vm2, %v766_v63, %v767_v23  ;;  %vm1303_vm3 = vcmask 1047968   ;;  %vm1592_vm4 = vcmask 1039360  }
  0x42   :  { %4818 = vmatmul.mubr.msk.bf16.gmra.mxu0 %vm249_vm1, %v210_v45  ;;  %621 = vmatprep.mubr.bf16.mxu1 %v9077_v0  ;;  %v162_v45 = vrot.slane %v6094_v29, 1  ;;  %vm2313_vm5 = vcmask 1041408   ;;  %vm2567_vm6 = vcmask 1044480   ;;  %vm2288_vm7 = vcmask 424960  }
  0x43   :  { %360 = vmatprep.mubr.bf16.mxu0 %v9077_v0  ;;  %vm2542_vm8 = vcmask 736256   ;;  %vm3236_vm9 = vcmask 1048192   ;;  %vm3584_vm10 = vcmask 1043456   ;;  %vm3574_vm11 = vcmask 982016  }
  0x44   :  { %vm3796_vm12 = vcmask 654336   ;;  %vm5802_vm13 = vmmov 0   ;;  %vm4743_vm14 = vcmask 687104   ;;  %vm4790_vm15 = vcmask 15360  }
  0x49   :  { %4839 = vmatmul.mubr.msk.bf16.gmra.mxu1 %vm249_vm1, %v124_v55  ;;  %v126_v55 = vpack.c.bf16 %v100_v9, %v5974_v48  ;;  %v193_v48 = vsel %vm175_vm0, %v154_v37, %v155_v38  ;;  %v6152_v9 = vsel %vm784_vm2, %v765_v62, %v766_v63  ;;  %v215_v37 = vpack.c.bf16 %v191_v13, %v192_v15 }
  0x4a   :  { %4819 = vmatmul.mubr.msk.bf16.gmra.mxu0 %vm249_vm1, %v211_v57  ;;  %631 = vmatprep.mubr.bf16.mxu1 %v9077_v0  ;;  %v6133_v57 = vsel %vm784_vm2, %v763_v51, %v764_v52  ;;  %v214_v18 = vpack.c.bf16 %v193_v48, %v194_v53  ;;  %v823_v22 = vpack.c.bf16 %v6152_v9, %v6156_v17  ;;  %v772_v48 = vrot.slane %v6089_v28, 2 }
  0x4b   :  { %370 = vmatprep.mubr.bf16.mxu0 %v9077_v0  ;;  %v822_v61 = vpack.c.bf16 %v6133_v57, %v6137_v59  ;;  %v129_v38 = vpack.c.bf16 %v6072_v24, %v6065_v21  ;;  %v6196_v52 = vsel %vm784_vm2, %v769_v39, %v770_v50  ;;  %v188_v24 = vsel %vm175_vm0, %v159_v42, %v160_v43 }
  0x51   :  { %4840 = vmatmul.mubr.msk.bf16.gmra.mxu1 %vm249_vm1, %v125_v27  ;;  %v768_v27 = vrot.slane %v6065_v21, 2  ;;  %v187_v21 = vsel %vm175_vm0, %v160_v43, %v161_v44  ;;  %v185_v43 = vsel %vm175_vm0, %v162_v45, %v163_v46 }
  0x52   :  { %4820 = vmatmul.mubr.msk.bf16.gmra.mxu0 %vm249_vm1, %v212_v33  ;;  %641 = vmatprep.mubr.bf16.mxu1 %v9077_v0  ;;  %v128_v33 = vpack.c.bf16 %v6060_v20, %v6055_v19  ;;  %v189_v19 = vsel %vm175_vm0, %v158_v41, %v159_v42  ;;  %v190_v20 = vsel %vm175_vm0, %v157_v40, %v158_v41  ;;  %v771_v41 = vrot.slane %v6082_v26, 2  ;;  %v6231_v42 = vld [vmem:[%s9062_s0 + $0xb8] sm:$0xff] }
  0x53   :  { %380 = vmatprep.mubr.bf16.mxu0 %v9077_v0  ;;  %v6174_v34 = vsel %vm784_vm2, %v767_v23, %v768_v27  ;;  %v216_v51 = vpack.c.bf16 %v189_v19, %v190_v20  ;;  %v130_v40 = vpack.c.bf16 %v6082_v26, %v6077_v25  ;;  %v217_v53 = vpack.c.bf16 %v187_v21, %v188_v24  ;;  %v6236_v25 = vld [vmem:[%s9062_s0 + $0xc0] sm:$0xff] }
  0x54   :  { %v824_v47 = vpack.c.bf16 %v6174_v34, %v6178_v36  ;;  %v6222_v62 = vsel %vm784_vm2, %v771_v41, %v772_v48  ;;  %v6226_v63 = vsel %vm784_vm2, %v770_v50, %v771_v41  ;;  %v164_v13 = vrot.slane %v6231_v42, 1  ;;  %v6292_v50 = vld [vmem:[%s9062_s0 + $0xe0] sm:$0xff] }
  0x55   :  { %v826_v26 = vpack.c.bf16 %v6222_v62, %v6226_v63  ;;  %v165_v15 = vrot.slane %v6236_v25, 1  ;;  %v775_v36 = vrot.slane %v6231_v42, 2 }
  0x57   :  { %v793_v62 = vsel %vm784_vm2, %v774_v12, %v775_v36 }
  0x59   :  { %4841 = vmatmul.mubr.msk.bf16.gmra.mxu1 %vm249_vm1, %v126_v55  ;;  %v6200_v55 = vsel %vm784_vm2, %v768_v27, %v769_v39  ;;  %v6263_v27 = vld [vmem:[%s9062_s0 + $0xc8] sm:$0xff]  ;;  %v6287_v39 = vld [vmem:[%s9062_s0 + $0xd8] sm:$0xff] }
  0x5a   :  { %4821 = vmatmul.mubr.msk.bf16.gmra.mxu0 %vm249_vm1, %v213_v60  ;;  %651 = vmatprep.mubr.bf16.mxu1 %v9077_v0  ;;  %v825_v60 = vpack.c.bf16 %v6196_v52, %v6200_v55  ;;  %v166_v19 = vrot.slane %v6263_v27, 1  ;;  %v133_v21 = vpack.c.bf16 %v6263_v27, %v6236_v25  ;;  %v168_v24 = vrot.slane %v6287_v39, 1 }
  0x5b   :  { %390 = vmatprep.mubr.bf16.mxu0 %v9077_v0 }
  0x61   :  { %4842 = vmatmul.mubr.msk.bf16.gmra.mxu1 %vm249_vm1, %v127_v1  ;;  %v186_v1 = vsel %vm175_vm0, %v161_v44, %v162_v45  ;;  %v183_v44 = vsel %vm175_vm0, %v164_v13, %v165_v15  ;;  %v184_v45 = vsel %vm175_vm0, %v163_v46, %v164_v13 }
  0x62   :  { %4822 = vmatmul.mubr.msk.bf16.gmra.mxu0 %vm249_vm1, %v214_v18  ;;  %661 = vmatprep.mubr.bf16.mxu1 %v9077_v0  ;;  %v131_v18 = vpack.c.bf16 %v6094_v29, %v6089_v28  ;;  %v218_v23 = vpack.c.bf16 %v185_v43, %v186_v1  ;;  %v6317_v1 = vld [vmem:[%s9062_s0 + $0xe8] sm:$0xff] }
  0x63   :  { %400 = vmatprep.mubr.bf16.mxu0 %v9077_v0 }
  0x69   :  { %4843 = vmatmul.mubr.msk.bf16.gmra.mxu1 %vm249_vm1, %v128_v33  ;;  %v6268_v33 = vld [vmem:[%s9062_s0 + $0xd0] sm:$0xff] }
  0x6a   :  { %4823 = vmatmul.mubr.msk.bf16.gmra.mxu0 %vm249_vm1, %v215_v37  ;;  %671 = vmatprep.mubr.bf16.mxu1 %v9077_v0  ;;  %v132_v37 = vpack.c.bf16 %v6231_v42, %v6099_v30  ;;  %v167_v20 = vrot.slane %v6268_v33, 1  ;;  %v134_v13 = vpack.c.bf16 %v6287_v39, %v6268_v33 }
  0x6b   :  { %410 = vmatprep.mubr.bf16.mxu0 %v9077_v0 }
  0x6c   :  { %v181_v46 = vsel %vm175_vm0, %v166_v19, %v167_v20  ;;  %v180_v43 = vsel %vm175_vm0, %v167_v20, %v168_v24  ;;  %v135_v20 = vpack.c.bf16 %v6317_v1, %v6292_v50 }
  0x71   :  { %4844 = vmatmul.mubr.msk.bf16.gmra.mxu1 %vm249_vm1, %v129_v38  ;;  %v219_v38 = vpack.c.bf16 %v183_v44, %v184_v45 }
  0x72   :  { %4824 = vmatmul.mubr.msk.bf16.gmra.mxu0 %vm249_vm1, %v216_v51  ;;  %681 = vmatprep.mubr.bf16.mxu1 %v9077_v0  ;;  %v182_v51 = vsel %vm175_vm0, %v165_v15, %v166_v19  ;;  %v6339_v19 = vld [vmem:[%s9062_s0 + $0xf8] sm:$0xff] }
  0x73   :  { %420 = vmatprep.mubr.bf16.mxu0 %v9077_v0  ;;  %v220_v41 = vpack.c.bf16 %v181_v46, %v182_v51  ;;  %v172_v46 = vrot.slane %v6339_v19, 1 }
  0x79   :  { %4845 = vmatmul.mubr.msk.bf16.gmra.mxu1 %vm249_vm1, %v130_v40  ;;  %v169_v40 = vrot.slane %v6292_v50, 1 }
  0x7a   :  { %4825 = vmatmul.mubr.msk.bf16.gmra.mxu0 %vm249_vm1, %v217_v53  ;;  %691 = vmatprep.mubr.bf16.mxu1 %v9077_v0 }
  0x7b   :  { %430 = vmatprep.mubr.bf16.mxu0 %v9077_v0  ;;  %v179_v53 = vsel %vm175_vm0, %v168_v24, %v169_v40 }
  0x7c   :  { %v221_v15 = vpack.c.bf16 %v179_v53, %v180_v43  ;;  %v777_v43 = vrot.slane %v6263_v27, 2 }
  0x81   :  { %4846 = vmatmul.mubr.msk.bf16.gmra.mxu1 %vm249_vm1, %v131_v18  ;;  %v6322_v18 = vld [vmem:[%s9062_s0 + $0xf0] sm:$0xff] }
  0x82   :  { %4826 = vmatmul.mubr.msk.bf16.gmra.mxu0 %vm249_vm1, %v218_v23  ;;  %701 = vmatprep.mubr.bf16.mxu1 %v9077_v0  ;;  %v170_v23 = vrot.slane %v6317_v1, 1  ;;  %v171_v44 = vrot.slane %v6322_v18, 1  ;;  %v136_v24 = vpack.c.bf16 %v6339_v19, %v6322_v18 }
  0x83   :  { %440 = vmatprep.mubr.bf16.mxu0 %v9077_v0 }
  0x84   :  { %v177_v45 = vsel %vm175_vm0, %v170_v23, %v171_v44  ;;  %v176_v51 = vsel %vm175_vm0, %v171_v44, %v172_v46 }
  0x89   :  { %4847 = vmatmul.mubr.msk.bf16.gmra.mxu1 %vm249_vm1, %v132_v37  ;;  %v178_v37 = vsel %vm175_vm0, %v169_v40, %v170_v23 }
  0x8a   :  { %4827 = vmatmul.mubr.msk.bf16.gmra.mxu0 %vm249_vm1, %v219_v38  ;;  %711 = vmatprep.mubr.bf16.mxu1 %v9077_v0  ;;  %v222_v38 = vpack.c.bf16 %v177_v45, %v178_v37 }
  0x8b   :  { %450 = vmatprep.mubr.bf16.mxu0 %v9077_v0 }
  0x91   :  { %4848 = vmatmul.mubr.msk.bf16.gmra.mxu1 %vm249_vm1, %v133_v21  ;;  %v207_v21 = vsel %vm175_vm0, %v172_v46, %v141_v14 }
  0x92   :  { %4828 = vmatmul.mubr.msk.bf16.gmra.mxu0 %vm249_vm1, %v220_v41  ;;  %721 = vmatprep.mubr.bf16.mxu1 %v9077_v0  ;;  %v223_v40 = vpack.c.bf16 %v207_v21, %v176_v51 }
  0x93   :  { %460 = vmatprep.mubr.bf16.mxu0 %v9077_v0 }
  0x99   :  { %4849 = vmatmul.mubr.msk.bf16.gmra.mxu1 %vm249_vm1, %v134_v13  ;;  %v778_v13 = vrot.slane %v6268_v33, 2 }
  0x9a   :  { %4829 = vmatmul.mubr.msk.bf16.gmra.mxu0 %vm249_vm1, %v221_v15  ;;  %731 = vmatprep.mubr.bf16.mxu1 %v9077_v0 }
  0x9b   :  { %470 = vmatprep.mubr.bf16.mxu0 %v9077_v0  ;;  %v790_v37 = vsel %vm784_vm2, %v777_v43, %v778_v13 }
  0xa1   :  { %4850 = vmatmul.mubr.msk.bf16.gmra.mxu1 %vm249_vm1, %v135_v20 }
  0xa2   :  { %4830 = vmatmul.mubr.msk.bf16.gmra.mxu0 %vm249_vm1, %v222_v38  ;;  %741 = vmatprep.mubr.bf16.mxu1 %v9077_v0 }
  0xa3   :  { %480 = vmatprep.mubr.bf16.mxu0 %v9077_v0 }
  0xa9   :  { %4851 = vmatmul.mubr.msk.bf16.gmra.mxu1 %vm249_vm1, %v136_v24  ;;  %v779_v24 = vrot.slane %v6287_v39, 2 }
  0xaa   :  { %4831 = vmatmul.mubr.msk.bf16.gmra.mxu0 %vm249_vm1, %v223_v40  ;;  %v780_v40 = vrot.slane %v6292_v50, 2 }
  0xab   :  { %938 = vmatprep.mubr.bf16.mxu0 %v9077_v0 }
  0xb2   :  { %4856 = vmatmul.mubr.msk.bf16.vlgmr.msra.gmra.mxu0 %vm249_vm1, %v817_v58 }
  0xb3   :  { %948 = vmatprep.mubr.bf16.mxu0 %v9077_v0 }
  0xba   :  { %4857 = vmatmul.mubr.msk.bf16.gmra.mxu0 %vm249_vm1, %v818_v5 }
  0xbb   :  { %958 = vmatprep.mubr.bf16.mxu0 %v9077_v0 }
  0xc2   :  { %4858 = vmatmul.mubr.msk.bf16.gmra.mxu0 %vm249_vm1, %v819_v10  ;;  %v773_v10 = vrot.slane %v6094_v29, 2 }
  0xc3   :  { %968 = vmatprep.mubr.bf16.mxu0 %v9077_v0 }
  0xc4   :  { %v794_v59 = vsel %vm784_vm2, %v773_v10, %v774_v12  ;;  %v795_v29 = vsel %vm784_vm2, %v772_v48, %v773_v10 }
  0xca   :  { %4859 = vmatmul.mubr.msk.bf16.gmra.mxu0 %vm249_vm1, %v820_v16 }
  0xcb   :  { %978 = vmatprep.mubr.bf16.mxu0 %v9077_v0 }
  0xd2   :  { %4860 = vmatmul.mubr.msk.bf16.gmra.mxu0 %vm249_vm1, %v821_v35 }
  0xd3   :  { %988 = vmatprep.mubr.bf16.mxu0 %v9077_v0 }
  0xda   :  { %4861 = vmatmul.mubr.msk.bf16.gmra.mxu0 %vm249_vm1, %v822_v61 }
  0xdb   :  { %998 = vmatprep.mubr.bf16.mxu0 %v9077_v0 }
  0xe2   :  { %4862 = vmatmul.mubr.msk.bf16.gmra.mxu0 %vm249_vm1, %v823_v22  ;;  %v827_v22 = vpack.c.bf16 %v794_v59, %v795_v29  ;;  %v782_v59 = vrot.slane %v6322_v18, 2 }
  0xe3   :  { %1008 = vmatprep.mubr.bf16.mxu0 %v9077_v0 }
  0xea   :  { %4863 = vmatmul.mubr.msk.bf16.gmra.mxu0 %vm249_vm1, %v824_v47  ;;  %v776_v47 = vrot.slane %v6236_v25, 2 }
  0xeb   :  { %1018 = vmatprep.mubr.bf16.mxu0 %v9077_v0 }
  0xec   :  { %v792_v48 = vsel %vm784_vm2, %v775_v36, %v776_v47  ;;  %v791_v20 = vsel %vm784_vm2, %v776_v47, %v777_v43  ;;  %v783_v43 = vrot.slane %v6339_v19, 2 }
  0xed   :  { %v828_v41 = vpack.c.bf16 %v792_v48, %v793_v62  ;;  %v829_v51 = vpack.c.bf16 %v790_v37, %v791_v20 }
  0xf1   :  { %v593_v14 = vpop.f32.mrf.mxu1 }
  0xf2   :  { %v332_v54 = vpop.f32.mrf.mxu0  ;;  %4864 = vmatmul.mubr.msk.bf16.gmra.mxu0 %vm249_vm1, %v825_v60 }
  0xf3   :  { %v6403_v56 = vadd.f32 %v593_v14, %v332_v54  ;;  %v595_v58 = vpop.f32.mrf.mxu1  ;;  %1028 = vmatprep.mubr.bf16.mxu0 %v9077_v0 }
  0xf4   :  { %v334_v2 = vpop.f32.mrf.mxu0 }
  0xf5   :  { %v6406_v3 = vadd.f32 %v595_v58, %v334_v2  ;;  %v597_v5 = vpop.f32.mrf.mxu1 }
  0xf6   :  { %v336_v6 = vpop.f32.mrf.mxu0 }
  0xf7   :  { %v6408_v7 = vadd.f32 %v597_v5, %v336_v6  ;;  %v6410_v8 = vpop.f32.mrf.mxu1  ;;  %v788_v5 = vsel %vm784_vm2, %v779_v24, %v780_v40  ;;  %v789_v6 = vsel %vm784_vm2, %v778_v13, %v779_v24 }
  0xf8   :  { %9144 = vst [vmem:[#allocation9_spill] sm:$0xff] %v6410_v8  ;;  %v6414_v16 = vpop.f32.mrf.mxu0 }
  0xf9   :  { %9145 = vst [vmem:[#allocation10_spill] sm:$0xff] %v6414_v16  ;;  %v603_v31 = vpop.f32.mrf.mxu1 }
  0xfa   :  { %v342_v32 = vpop.f32.mrf.mxu0  ;;  %4865 = vmatmul.mubr.msk.bf16.gmra.mxu0 %vm249_vm1, %v826_v26 }
  0xfb   :  { %v6420_v35 = vadd.f32 %v603_v31, %v342_v32  ;;  %v605_v57 = vpop.f32.mrf.mxu1  ;;  %1038 = vmatprep.mubr.bf16.mxu0 %v9077_v0  ;;  %v830_v31 = vpack.c.bf16 %v788_v5, %v789_v6 }
  0xfc   :  { %v344_v30 = vpop.f32.mrf.mxu0 }
  0xfd   :  { %v6429_v61 = vadd.f32 %v605_v57, %v344_v30  ;;  %v6431_v9 = vpop.f32.mrf.mxu1  ;;  %v781_v57 = vrot.slane %v6317_v1, 2 }
  0xfe   :  { %v6433_v17 = vpop.f32.mrf.mxu0 }
  0xff   :  { %v6435_v34 = vpop.f32.mrf.mxu1  ;;  %v786_v47 = vsel %vm784_vm2, %v781_v57, %v782_v59 }
 0x100   :  { %9146 = vst [vmem:[#allocation11_spill] sm:$0xff] %v6435_v34  ;;  %v6439_v52 = vpop.f32.mrf.mxu0 }
 0x101   :  { %9147 = vst [vmem:[#allocation12_spill] sm:$0xff] %v6439_v52  ;;  %v6441_v28 = vpop.f32.mrf.mxu1 }
 0x102   :  { %v6443_v55 = vpop.f32.mrf.mxu0  ;;  %4866 = vmatmul.mubr.msk.bf16.gmra.mxu0 %vm249_vm1, %v827_v22 }
 0x103   :  { %v615_v60 = vpop.f32.mrf.mxu1  ;;  %1048 = vmatprep.mubr.bf16.mxu0 %v9077_v0 }
 0x104   :  { %v354_v63 = vpop.f32.mrf.mxu0 }
 0x105   :  { %v6451_v42 = vadd.f32 %v615_v60, %v354_v63  ;;  %v6453_v25 = vpop.f32.mrf.mxu1  ;;  %v787_v60 = vsel %vm784_vm2, %v780_v40, %v781_v57 }
 0x106   :  { %v6455_v26 = vpop.f32.mrf.mxu0  ;;  %v831_v63 = vpack.c.bf16 %v786_v47, %v787_v60 }
 0x107   :  { %v6457_v53 = vpop.f32.mrf.mxu1 }
 0x108   :  { %9148 = vst [vmem:[#allocation13_spill] sm:$0xff] %v6457_v53  ;;  %v6461_v15 = vpop.f32.mrf.mxu0 }
 0x109   :  { %9149 = vst [vmem:[#allocation14_spill] sm:$0xff] %v6461_v15  ;;  %v6463_v23 = vpop.f32.mrf.mxu1 }
 0x10a   :  { %v6465_v44 = vpop.f32.mrf.mxu0  ;;  %4867 = vmatmul.mubr.msk.bf16.gmra.mxu0 %vm249_vm1, %v828_v41 }
 0x10b   :  { %v625_v45 = vpop.f32.mrf.mxu1  ;;  %1058 = vmatprep.mubr.bf16.mxu0 %v9077_v0 }
 0x10c   :  { %v364_v27 = vpop.f32.mrf.mxu0 }
 0x10d   :  { %v6473_v38 = vadd.f32 %v625_v45, %v364_v27  ;;  %v6475_v33 = vpop.f32.mrf.mxu1  ;;  %v785_v27 = vsel %vm784_vm2, %v782_v59, %v783_v43 }
 0x10e   :  { %v6477_v46 = vpop.f32.mrf.mxu0 }
 0x10f   :  { %v6479_v21 = vpop.f32.mrf.mxu1 }
 0x110   :  { %9150 = vst [vmem:[#allocation15_spill] sm:$0xff] %v6479_v21  ;;  %v6483_v14 = vpop.f32.mrf.mxu0 }
 0x111   :  { %9151 = vst [vmem:[#allocation16_spill] sm:$0xff] %v6483_v14  ;;  %v6485_v54 = vpop.f32.mrf.mxu1 }
 0x112   :  { %v6487_v58 = vpop.f32.mrf.mxu0  ;;  %4868 = vmatmul.mubr.msk.bf16.gmra.mxu0 %vm249_vm1, %v829_v51  ;;  %v816_v51 = vsel %vm784_vm2, %v783_v43, %v752_v49 }
 0x113   :  { %v635_v2 = vpop.f32.mrf.mxu1  ;;  %1068 = vmatprep.mubr.bf16.mxu0 %v9077_v0  ;;  %v832_v5 = vpack.c.bf16 %v816_v51, %v785_v27 }
 0x114   :  { %v374_v39 = vpop.f32.mrf.mxu0 }
 0x115   :  { %v6495_v10 = vadd.f32 %v635_v2, %v374_v39  ;;  %v6497_v50 = vpop.f32.mrf.mxu1 }
 0x116   :  { %v6499_v12 = vpop.f32.mrf.mxu0 }
 0x117   :  { %v6501_v32 = vpop.f32.mrf.mxu1 }
 0x118   :  { %9152 = vst [vmem:[#allocation17_spill] sm:$0xff] %v6501_v32  ;;  %v6505_v29 = vpop.f32.mrf.mxu0 }
 0x119   :  { %9153 = vst [vmem:[#allocation18_spill] sm:$0xff] %v6505_v29  ;;  %v6507_v30 = vpop.f32.mrf.mxu1 }
 0x11a   :  { %v6509_v22 = vpop.f32.mrf.mxu0  ;;  %4869 = vmatmul.mubr.msk.bf16.gmra.mxu0 %vm249_vm1, %v830_v31 }
 0x11b   :  { %v645_v36 = vpop.f32.mrf.mxu1  ;;  %1078 = vmatprep.mubr.bf16.mxu0 %v9077_v0 }
 0x11c   :  { %v384_v1 = vpop.f32.mrf.mxu0 }
 0x11d   :  { %v6517_v48 = vadd.f32 %v645_v36, %v384_v1  ;;  %v6519_v18 = vpop.f32.mrf.mxu1 }
 0x11e   :  { %v6521_v62 = vpop.f32.mrf.mxu0 }
 0x11f   :  { %v6523_v41 = vpop.f32.mrf.mxu1 }
 0x120   :  { %9154 = vst [vmem:[#allocation19_spill] sm:$0xff] %v6523_v41  ;;  %v6526_v13 = vpop.f32.mrf.mxu0 }
 0x121   :  { %9155 = vst [vmem:[#allocation20_spill] sm:$0xff] %v6526_v13  ;;  %v6528_v45 = vpop.f32.mrf.mxu1 }
 0x122   :  { %v6530_v37 = vpop.f32.mrf.mxu0  ;;  %4870 = vmatmul.mubr.msk.bf16.gmra.mxu0 %vm249_vm1, %v831_v63 }
 0x123   :  { %v655_v20 = vpop.f32.mrf.mxu1  ;;  %1088 = vmatprep.mubr.bf16.mxu0 %v9077_v0 }
 0x124   :  { %v394_v19 = vpop.f32.mrf.mxu0 }
 0x125   :  { %v6540_v24 = vadd.f32 %v655_v20, %v394_v19  ;;  %v6542_v40 = vpop.f32.mrf.mxu1 }
 0x126   :  { %v6544_v2 = vpop.f32.mrf.mxu0 }
 0x127   :  { %v6546_v6 = vpop.f32.mrf.mxu1 }
 0x128   :  { %9156 = vst [vmem:[#allocation21_spill] sm:$0xff] %v6546_v6  ;;  %v6548_v39 = vpop.f32.mrf.mxu0 }
 0x129   :  { %9157 = vst [vmem:[#allocation22_spill] sm:$0xff] %v6548_v39  ;;  %v6550_v31 = vpop.f32.mrf.mxu1 }
 0x12a   :  { %v6552_v57 = vpop.f32.mrf.mxu0  ;;  %4871 = vmatmul.mubr.msk.bf16.gmra.mxu0 %vm249_vm1, %v832_v5 }
 0x12b   :  { %v665_v11 = vpop.f32.mrf.mxu1  ;;  %2606 = vmatprep.mubr.bf16.mxu0 %v9077_v0 }
 0x12c   :  { %v404_v49 = vpop.f32.mrf.mxu0 }
 0x12d   :  { %v6556_v59 = vadd.f32 %v665_v11, %v404_v49  ;;  %v6558_v36 = vpop.f32.mrf.mxu1 }
 0x12e   :  { %v6560_v47 = vpop.f32.mrf.mxu0 }
 0x12f   :  { %v6562_v60 = vpop.f32.mrf.mxu1 }
 0x130   :  { %9158 = vst [vmem:[#allocation23_spill] sm:$0xff] %v6562_v60  ;;  %v6564_v1 = vpop.f32.mrf.mxu0 }
 0x131   :  { %9159 = vst [vmem:[#allocation24_spill] sm:$0xff] %v6564_v1  ;;  %v6566_v63 = vpop.f32.mrf.mxu1 }
 0x132   :  { %v6568_v43 = vpop.f32.mrf.mxu0 }
 0x133   :  { %v675_v20 = vpop.f32.mrf.mxu1 }
 0x134   :  { %v414_v27 = vpop.f32.mrf.mxu0 }
 0x135   :  { %v6570_v51 = vadd.f32 %v675_v20, %v414_v27  ;;  %v677_v19 = vpop.f32.mrf.mxu1 }
 0x136   :  { %v416_v5 = vpop.f32.mrf.mxu0 }
 0x137   :  { %v6572_v11 = vadd.f32 %v677_v19, %v416_v5  ;;  %v6574_v49 = vpop.f32.mrf.mxu1 }
 0x138   :  { %9160 = vst [vmem:[#allocation25_spill] sm:$0xff] %v6574_v49  ;;  %v6576_v0 = vpop.f32.mrf.mxu0 }
 0x139   :  { %9161 = vst [vmem:[#allocation26_spill] sm:$0xff] %v6576_v0  ;;  %v6578_v8 = vpop.f32.mrf.mxu1 }
 0x13a   :  { %9162 = vst [vmem:[#allocation27_spill] sm:$0xff] %v6578_v8  ;;  %v6580_v16 = vpop.f32.mrf.mxu0 }
 0x13b   :  { %9163 = vst [vmem:[#allocation28_spill] sm:$0xff] %v6580_v16  ;;  %v685_v34 = vpop.f32.mrf.mxu1 }
 0x13c   :  { %v424_v52 = vpop.f32.mrf.mxu0 }
 0x13d   :  { %v6582_v53 = vadd.f32 %v685_v34, %v424_v52  ;;  %v6584_v15 = vpop.f32.mrf.mxu1 }
 0x13e   :  { %9164 = vst [vmem:[#allocation29_spill] sm:$0xff] %v6584_v15  ;;  %v6586_v20 = vpop.f32.mrf.mxu0 }
 0x13f   :  { %9165 = vst [vmem:[#allocation30_spill] sm:$0xff] %v6586_v20  ;;  %v6588_v27 = vpop.f32.mrf.mxu1 }
 0x140   :  { %9166 = vst [vmem:[#allocation31_spill] sm:$0xff] %v6588_v27  ;;  %v6590_v19 = vpop.f32.mrf.mxu0 }
 0x141   :  { %9167 = vst [vmem:[#allocation32_spill] sm:$0xff] %v6590_v19  ;;  %v6592_v5 = vpop.f32.mrf.mxu1 }
 0x142   :  { %9168 = vst [vmem:[#allocation33_spill] sm:$0xff] %v6592_v5  ;;  %v6594_v49 = vpop.f32.mrf.mxu0 }
 0x143   :  { %9169 = vst [vmem:[#allocation34_spill] sm:$0xff] %v6594_v49  ;;  %v695_v0 = vpop.f32.mrf.mxu1 }
 0x144   :  { %v434_v21 = vpop.f32.mrf.mxu0 }
 0x145   :  { %v6596_v14 = vadd.f32 %v695_v0, %v434_v21  ;;  %v6598_v32 = vpop.f32.mrf.mxu1 }
 0x146   :  { %9170 = vst [vmem:[#allocation35_spill] sm:$0xff] %v6598_v32  ;;  %v6600_v34 = vpop.f32.mrf.mxu0 }
 0x147   :  { %9171 = vst [vmem:[#allocation36_spill] sm:$0xff] %v6600_v34  ;;  %v6602_v52 = vpop.f32.mrf.mxu1 }
 0x148   :  { %9172 = vst [vmem:[#allocation37_spill] sm:$0xff] %v6602_v52  ;;  %v6604_v29 = vpop.f32.mrf.mxu0 }
 0x149   :  { %9173 = vst [vmem:[#allocation38_spill] sm:$0xff] %v6604_v29  ;;  %v6606_v41 = vpop.f32.mrf.mxu1 }
 0x14a   :  { %9174 = vst [vmem:[#allocation39_spill] sm:$0xff] %v6606_v41  ;;  %v6608_v27 = vpop.f32.mrf.mxu0 }
 0x14b   :  { %9175 = vst [vmem:[#allocation40_spill] sm:$0xff] %v6608_v27  ;;  %v705_v19 = vpop.f32.mrf.mxu1 }
 0x14c   :  { %v444_v13 = vpop.f32.mrf.mxu0 }
 0x14d   :  { %v6610_v6 = vadd.f32 %v705_v19, %v444_v13  ;;  %v6612_v39 = vpop.f32.mrf.mxu1 }
 0x14e   :  { %9176 = vst [vmem:[#allocation41_spill] sm:$0xff] %v6612_v39  ;;  %v6614_v0 = vpop.f32.mrf.mxu0 }
 0x14f   :  { %9177 = vst [vmem:[#allocation42_spill] sm:$0xff] %v6614_v0  ;;  %v6616_v21 = vpop.f32.mrf.mxu1 }
 0x150   :  { %9178 = vst [vmem:[#allocation43_spill] sm:$0xff] %v6616_v21  ;;  %v6618_v60 = vpop.f32.mrf.mxu0 }
 0x151   :  { %9179 = vst [vmem:[#allocation44_spill] sm:$0xff] %v6618_v60  ;;  %v6620_v1 = vpop.f32.mrf.mxu1 }
 0x152   :  { %9180 = vst [vmem:[#allocation45_spill] sm:$0xff] %v6620_v1  ;;  %v6622_v52 = vpop.f32.mrf.mxu0 }
 0x153   :  { %9181 = vst [vmem:[#allocation46_spill] sm:$0xff] %v6622_v52  ;;  %v715_v29 = vpop.f32.mrf.mxu1 }
 0x154   :  { %v454_v15 = vpop.f32.mrf.mxu0 }
 0x155   :  { %v6624_v20 = vadd.f32 %v715_v29, %v454_v15  ;;  %v6626_v5 = vpop.f32.mrf.mxu1 }
 0x156   :  { %9182 = vst [vmem:[#allocation47_spill] sm:$0xff] %v6626_v5  ;;  %v6628_v13 = vpop.f32.mrf.mxu0 }
 0x157   :  { %9183 = vst [vmem:[#allocation48_spill] sm:$0xff] %v6628_v13  ;;  %v6630_v19 = vpop.f32.mrf.mxu1 }
 0x158   :  { %9184 = vst [vmem:[#allocation49_spill] sm:$0xff] %v6630_v19  ;;  %v6632_v49 = vpop.f32.mrf.mxu0 }
 0x159   :  { %9185 = vst [vmem:[#allocation50_spill] sm:$0xff] %v6632_v49  ;;  %v6634_v39 = vpop.f32.mrf.mxu1 }
 0x15a   :  { %9186 = vst [vmem:[#allocation51_spill] sm:$0xff] %v6634_v39  ;;  %v6636_v21 = vpop.f32.mrf.mxu0 }
 0x15b   :  { %v725_v60 = vpop.f32.mrf.mxu1 }
 0x15c   :  { %v464_v0 = vpop.f32.mrf.mxu0 }
 0x15d   :  { %v6638_v1 = vadd.f32 %v725_v60, %v464_v0  ;;  %v6640_v52 = vpop.f32.mrf.mxu1 }
 0x15e   :  { %9187 = vst [vmem:[#allocation52_spill] sm:$0xff] %v6640_v52  ;;  %v6642_v15 = vpop.f32.mrf.mxu0 }
 0x15f   :  { %9188 = vst [vmem:[#allocation53_spill] sm:$0xff] %v6642_v15  ;;  %v6644_v29 = vpop.f32.mrf.mxu1 }
 0x160   :  { %9189 = vst [vmem:[#allocation54_spill] sm:$0xff] %v6644_v29  ;;  %v6646_v41 = vpop.f32.mrf.mxu0 }
 0x161   :  { %9190 = vst [vmem:[#allocation55_spill] sm:$0xff] %v6646_v41  ;;  %v6648_v27 = vpop.f32.mrf.mxu1 }
 0x162   :  { %9191 = vst [vmem:[#allocation56_spill] sm:$0xff] %v6648_v27  ;;  %v6650_v19 = vpop.f32.mrf.mxu0 }
 0x163   :  { %9192 = vst [vmem:[#allocation57_spill] sm:$0xff] %v6650_v19  ;;  %v735_v49 = vpop.f32.mrf.mxu1 }
 0x164   :  { %v474_v5 = vpop.f32.mrf.mxu0 }
 0x165   :  { %v6652_v13 = vadd.f32 %v735_v49, %v474_v5  ;;  %v6654_v32 = vpop.f32.mrf.mxu1 }
 0x166   :  { %v6656_v60 = vpop.f32.mrf.mxu0 }
 0x167   :  { %v6658_v0 = vpop.f32.mrf.mxu1 }
 0x168   :  { %9193 = vst [vmem:[#allocation58_spill] sm:$0xff] %v6658_v0  ;;  %v6660_v52 = vpop.f32.mrf.mxu0 }
 0x169   :  { %9194 = vst [vmem:[#allocation59_spill] sm:$0xff] %v6660_v52  ;;  %v6662_v15 = vpop.f32.mrf.mxu1 }
 0x16a   :  { %9195 = vst [vmem:[#allocation60_spill] sm:$0xff] %v6662_v15  ;;  %v6664_v29 = vpop.f32.mrf.mxu0 }
 0x16b   :  { %9196 = vst [vmem:[#allocation61_spill] sm:$0xff] %v6664_v29  ;;  %v745_v41 = vpop.f32.mrf.mxu1 }
 0x16c   :  { %v484_v34 = vpop.f32.mrf.mxu0 }
 0x16d   :  { %v6666_v8 = vadd.f32 %v745_v41, %v484_v34 }
 0x16e   :  { %v6668_v16 = vpop.f32.mrf.mxu0 }
 0x16f   :  { %9197 = vst [vmem:[#allocation62_spill] sm:$0xff] %v6666_v8  ;;  %9198 = vst [vmem:[#allocation63_spill] sm:$0xff] %v6668_v16 }
 0x170   :  { %v6670_v49 = vpop.f32.mrf.mxu0 }
 0x171   :  { %9199 = vst [vmem:[#allocation64_spill] sm:$0xff] %v6670_v49 }
 0x172   :  { %v940_v5 = vpop.f32.mrf.mxu0 }
 0x173   :  { %v6673_v27 = vadd.f32 %v940_v5, %v6403_v56 }
 0x174   :  { %v942_v19 = vpop.f32.mrf.mxu0 }
 0x175   :  { %v6676_v0 = vadd.f32 %v942_v19, %v6406_v3 }
 0x176   :  { %v944_v52 = vpop.f32.mrf.mxu0 }
 0x177   :  { %9200 = vst [vmem:[#allocation65_spill] sm:$0xff] %v6676_v0  ;;  %v6679_v15 = vadd.f32 %v944_v52, %v6408_v7 }
 0x178   :  { %v6681_v29 = vpop.f32.mrf.mxu0 }
 0x179   :  { %9201 = vst [vmem:[#allocation66_spill] sm:$0xff] %v6679_v15  ;;  %9202 = vst [vmem:[#allocation67_spill] sm:$0xff] %v6681_v29 }
 0x17a   :  { %v950_v41 = vpop.f32.mrf.mxu0 }
 0x17b   :  { %v6684_v34 = vadd.f32 %v950_v41, %v6420_v35 }
 0x17c   :  { %v952_v8 = vpop.f32.mrf.mxu0 }
 0x17d   :  { %v6687_v49 = vadd.f32 %v952_v8, %v6429_v61 }
 0x17e   :  { %v954_v56 = vpop.f32.mrf.mxu0 }
 0x17f   :  { %9203 = vst [vmem:[#allocation68_spill] sm:$0xff] %v6687_v49 }
 0x180   :  { %v6689_v5 = vpop.f32.mrf.mxu0 }
 0x181   :  { %9204 = vst [vmem:[#allocation69_spill] sm:$0xff] %v6689_v5 }
 0x182   :  { %v960_v16 = vpop.f32.mrf.mxu0 }
 0x184   :  { %v962_v3 = vpop.f32.mrf.mxu0 }
 0x185   :  { %v6692_v19 = vadd.f32 %v962_v3, %v6451_v42 }
 0x186   :  { %v6694_v7 = vpop.f32.mrf.mxu0 }
 0x187   :  { %9205 = vst [vmem:[#allocation70_spill] sm:$0xff] %v6692_v19 }
 0x188   :  { %v6696_v52 = vpop.f32.mrf.mxu0 }
 0x189   :  { %9206 = vst [vmem:[#allocation71_spill] sm:$0xff] %v6696_v52 }
 0x18a   :  { %v6698_v29 = vpop.f32.mrf.mxu0 }
 0x18c   :  { %v972_v35 = vpop.f32.mrf.mxu0 }
 0x18d   :  { %v6701_v41 = vadd.f32 %v972_v35, %v6473_v38  ;;  %v9079_v38 = vsub.s32 0, %v5889_v4 }
 0x18e   :  { %v974_v8 = vpop.f32.mrf.mxu0 }
 0x18f   :  { %9207 = vst [vmem:[#allocation72_spill] sm:$0xff] %v6701_v41  ;;  %v648_v41 = vadd.f32 %v6519_v18, %v6521_v62  ;;  %v628_v18 = vadd.f32 %v6475_v33, %v6477_v46  ;;  %v608_v33 = vadd.f32 %v6431_v9, %v6433_v17 }
 0x190   :  { %v6703_v61 = vpop.f32.mrf.mxu0 }
 0x191   :  { %9208 = vst [vmem:[#allocation73_spill] sm:$0xff] %v6703_v61  ;;  %v644_v61 = vadd.f32 %v6507_v30, %v6509_v22  ;;  %v658_v30 = vadd.f32 %v6542_v40, %v6544_v2 }
 0x192   :  { %v980_v0 = vpop.f32.mrf.mxu0 }
 0x194   :  { %v982_v5 = vpop.f32.mrf.mxu0 }
 0x195   :  { %v6706_v49 = vadd.f32 %v982_v5, %v6495_v10  ;;  %v6721_v10 = vld [vmem:[%s9064_s2] sm:$0x3]  ;;  %s5798_s2 = smov 52  }
 0x196   :  { %v984_v42 = vpop.f32.mrf.mxu0  ;;  %9213 = vst [vmem:[#allocation78_spill] sm:$0xff] %v6721_v10 }
 0x197   :  { %9209 = vst [vmem:[#allocation74_spill] sm:$0xff] %v6706_v49  ;;  %v634_v49 = vadd.f32 %v6485_v54, %v6487_v58  ;;  %v664_v58 = vadd.f32 %v6550_v31, %v6552_v57  ;;  %v1105_v31 = vadd.f32 %v954_v56, %v608_v33 }
 0x198   :  { %v6708_v3 = vpop.f32.mrf.mxu0 }
 0x199   :  { %9210 = vst [vmem:[#allocation75_spill] sm:$0xff] %v6708_v3 }
 0x19a   :  { %v990_v19 = vpop.f32.mrf.mxu0 }
 0x19b   :  { %v1119_v3 = vadd.f32 %v990_v19, %v644_v61  ;;  %v1115_v19 = vadd.f32 %v980_v0, %v634_v49  ;;  %v654_v49 = vadd.f32 %v6528_v45, %v6530_v37 }
 0x19c   :  { %v992_v15 = vpop.f32.mrf.mxu0 }
 0x19d   :  { %v6711_v52 = vadd.f32 %v992_v15, %v6517_v48  ;;  %v6728_v48 = vrot.slane %v6721_v10, %v9079_v38  ;;  %v1113_v10 = vadd.f32 %v974_v8, %v628_v18  ;;  %v668_v8 = vadd.f32 %v6558_v36, %v6560_v47 }
 0x19e   :  { %v994_v39 = vpop.f32.mrf.mxu0 }
 0x19f   :  { %9211 = vst [vmem:[#allocation76_spill] sm:$0xff] %v6711_v52  ;;  %v1121_v22 = vadd.f32 %v994_v39, %v648_v41  ;;  %v1195_v61 = vadd.f32 %v6728_v48, %v1119_v3  ;;  %v614_v52 = vadd.f32 %v6441_v28, %v6443_v55  ;;  %v1191_v39 = vadd.f32 %v6728_v48, %v1115_v19 }
 0x1a0   :  { %v6714_v35 = vpop.f32.mrf.mxu0  ;;  %v1189_v57 = vadd.f32 %v6728_v48, %v1113_v10  ;;  %v1181_v47 = vadd.f32 %v6728_v48, %v1105_v31 }
 0x1a1   :  { %9212 = vst [vmem:[#allocation77_spill] sm:$0xff] %v6714_v35  ;;  %v1107_v46 = vadd.f32 %v960_v16, %v614_v52  ;;  %v6751_v0 = vmax.f32 %v1195_v61, 0.0  ;;  %v638_v52 = vadd.f32 %v6497_v50, %v6499_v12  ;;  %v6770_v56 = vmax.f32 %v1191_v39, 0.0 }
 0x1a2   :  { %v1000_v5 = vpop.f32.mrf.mxu0  ;;  %v6777_v10 = vmax.f32 %v1189_v57, 0.0  ;;  %v674_v12 = vadd.f32 %v6566_v63, %v6568_v43  ;;  %v6799_v61 = vmax.f32 %v1181_v47, 0.0 }
 0x1a3   :  { %v1183_v45 = vadd.f32 %v6728_v48, %v1107_v46  ;;  %v1123_v3 = vadd.f32 %v1000_v5, %v654_v49 }
 0x1a4   :  { %v1002_v15 = vpop.f32.mrf.mxu0  ;;  %9215 = vst [vmem:[#allocation80_spill] sm:$0xff] %v6799_v61 }
 0x1a5   :  { %v6735_v35 = vadd.f32 %v1002_v15, %v6540_v24  ;;  %v1197_v24 = vadd.f32 %v6728_v48, %v1121_v22  ;;  %v1117_v15 = vadd.f32 %v984_v42, %v638_v52  ;;  %v618_v22 = vadd.f32 %v6453_v25, %v6455_v26 }
 0x1a6   :  { %v1004_v62 = vpop.f32.mrf.mxu0  ;;  %v1199_v19 = vadd.f32 %v6728_v48, %v1123_v3 }
 0x1a7   :  { %v1125_v38 = vadd.f32 %v1004_v62, %v658_v30  ;;  %v6760_v9 = vmax.f32 %v1197_v24, 0.0  ;;  %v1109_v25 = vadd.f32 %v6694_v7, %v618_v22 }
 0x1a8   :  { %v6742_v54 = vpop.f32.mrf.mxu0  ;;  %v6814_v7 = vmax.f32 %v1199_v19, 0.0 }
 0x1a9   :  { %v1201_v40 = vadd.f32 %v6728_v48, %v1125_v38  ;;  %v5185_v30 = vpack.i.bf16 %v6770_v56, %v6760_v9  ;;  %v1185_v49 = vadd.f32 %v6728_v48, %v1109_v25 }
 0x1aa   :  { %v1010_v2 = vpop.f32.mrf.mxu0 }
 0x1ab   :  { %v6753_v28 = vmax.f32 %v1201_v40, 0.0  ;;  %v1127_v55 = vadd.f32 %v1010_v2, %v664_v58 }
 0x1ac   :  { %v1012_v41 = vpop.f32.mrf.mxu0 }
 0x1ad   :  { %v6763_v16 = vadd.f32 %v1012_v41, %v6556_v59  ;;  %v5180_v17 = vpack.i.bf16 %v6751_v0, %v6753_v28  ;;  %v1203_v38 = vadd.f32 %v6728_v48, %v1127_v55  ;;  %v624_v59 = vadd.f32 %v6463_v23, %v6465_v44 }
 0x1ae   :  { %v1014_v37 = vpop.f32.mrf.mxu0  ;;  %v1175_v23 = vadd.f32 %v6728_v48, %v6673_v27  ;;  %v6790_v44 = vmax.f32 %v1183_v45, 0.0  ;;  %v6840_v45 = vmax.f32 %v1185_v49, 0.0 }
 0x1af   :  { %v1129_v36 = vadd.f32 %v1014_v37, %v668_v8  ;;  %5181 = vrot.lane.b32.xlu1 %v5180_v17, %s5798_s2  ;;  %v1111_v18 = vadd.f32 %v6698_v29, %v624_v59  ;;  %v6794_v63 = vmax.f32 %v1203_v38, 0.0  ;;  %v1193_v29 = vadd.f32 %v6728_v48, %v1117_v15 }
 0x1b0   :  { %v6779_v50 = vpop.f32.mrf.mxu0  ;;  %9214 = vst [vmem:[#allocation79_spill] sm:$0xff] %v6790_v44  ;;  %v5195_v27 = vpack.i.bf16 %v6790_v44, %v6777_v10  ;;  %v6811_v33 = vmax.f32 %v1175_v23, 0.0  ;;  %9218 = vst [vmem:[#allocation83_spill] sm:$0xff] %v6840_v45 }
 0x1b1   :  { %v1205_v5 = vadd.f32 %v6728_v48, %v1129_v36  ;;  %v1187_v2 = vadd.f32 %v6728_v48, %v1111_v18  ;;  %v6826_v31 = vmax.f32 %v1193_v29, 0.0 }
 0x1b2   :  { %v1020_v62 = vpop.f32.mrf.mxu0  ;;  %9216 = vst [vmem:[#allocation81_spill] sm:$0xff] %v6811_v33  ;;  %v5205_v41 = vpack.i.bf16 %v6811_v33, %v6799_v61  ;;  %v9251_v61 = vld [vmem:[#allocation62_spill] sm:$0xff] }
 0x1b3   :  { %v6796_v43 = vmax.f32 %v1205_v5, 0.0  ;;  %v1131_v42 = vadd.f32 %v1020_v62, %v674_v12  ;;  %5186 = vrot.lane.b32.xlu1 %v5185_v30, %s5798_s2  ;;  %v6836_v17 = vmax.f32 %v1187_v2, 0.0 }
 0x1b4   :  { %v1022_v26 = vpop.f32.mrf.mxu0 }
 0x1b5   :  { %v1207_v58 = vadd.f32 %v6728_v48, %v1131_v42  ;;  %v6807_v24 = vadd.f32 %v1022_v26, %v6570_v51  ;;  %v5170_v40 = vpack.i.bf16 %v6796_v43, %v6794_v63  ;;  %v5190_v3 = vpack.i.bf16 %v6836_v17, %v6826_v31 }
 0x1b6   :  { %v1024_v46 = vpop.f32.mrf.mxu0 }
 0x1b7   :  { %v6816_v39 = vmax.f32 %v1207_v58, 0.0  ;;  %v6819_v55 = vadd.f32 %v1024_v46, %v6572_v11  ;;  %5171 = vrot.lane.b32.xlu0 %v5170_v40, %s5798_s2  ;;  %5196 = vrot.lane.b32.xlu1 %v5195_v27, %s5798_s2  ;;  %v1179_v11 = vadd.f32 %v6728_v48, %v6684_v34 }
 0x1b8   :  { %v6823_v51 = vpop.f32.mrf.mxu0 }
 0x1b9   :  { %9217 = vst [vmem:[#allocation82_spill] sm:$0xff] %v6823_v51  ;;  %v5175_v57 = vpack.i.bf16 %v6814_v7, %v6816_v39  ;;  %v6849_v36 = vmax.f32 %v1179_v11, 0.0  ;;  %v9232_v11 = vld [vmem:[#allocation51_spill] sm:$0xff]  ;;  %v9239_v51 = vld [vmem:[#allocation36_spill] sm:$0xff] }
 0x1ba   :  { %v6832_v8 = vpop.f32.mrf.mxu0 }
 0x1bb   :  { %5176 = vrot.lane.b32.xlu0 %v5175_v57, %s5798_s2  ;;  %5206 = vrot.lane.b32.xlu1 %v5205_v41, %s5798_s2  ;;  %9220 = vst [vmem:[#allocation85_spill] sm:$0xff] %v6849_v36  ;;  %v5200_v59 = vpack.i.bf16 %v6849_v36, %v6840_v45 }
 0x1bc   :  { %v1032_v52 = vpop.f32.mrf.mxu0 }
 0x1bd   :  { %v6843_v37 = vadd.f32 %v1032_v52, %v6582_v53  ;;  %v724_v52 = vadd.f32 %v9232_v11, %v6636_v21 }
 0x1be   :  { %v6847_v38 = vpop.f32.mrf.mxu0 }
 0x1bf   :  { %9219 = vst [vmem:[#allocation84_spill] sm:$0xff] %v6843_v37  ;;  %5191 = vrot.lane.b32.xlu0 %v5190_v3, %s5798_s2  ;;  %v9233_v3 = vld [vmem:[#allocation57_spill] sm:$0xff]  ;;  %v9237_v37 = vld [vmem:[#allocation28_spill] sm:$0xff] }
 0x1c0   :  { %v6852_v34 = vpop.f32.mrf.mxu0 }
 0x1c1   :  { %9221 = vst [vmem:[#allocation86_spill] sm:$0xff] %v6852_v34 }
 0x1c2   :  { %v6856_v47 = vpop.f32.mrf.mxu0 }
 0x1c3   :  { %5201 = vrot.lane.b32.xlu0 %v5200_v59, %s5798_s2 }
 0x1c4   :  { %v1042_v53 = vpop.f32.mrf.mxu0 }
 0x1c5   :  { %v6860_v12 = vadd.f32 %v1042_v53, %v6596_v14  ;;  %v9235_v53 = vld [vmem:[#allocation61_spill] sm:$0xff] }
 0x1c6   :  { %v1044_v15 = vpop.f32.mrf.mxu0 }
 0x1c7   :  { %9222 = vst [vmem:[#allocation87_spill] sm:$0xff] %v6860_v12 }
 0x1c8   :  { %v6862_v5 = vpop.f32.mrf.mxu0 }
 0x1c9   :  { %9223 = vst [vmem:[#allocation88_spill] sm:$0xff] %v6862_v5  ;;  %v9240_v5 = vld [vmem:[#allocation35_spill] sm:$0xff] }
 0x1ca   :  { %v1050_v30 = vpop.f32.mrf.mxu0  ;;  %v698_v12 = vadd.f32 %v9240_v5, %v9239_v51  ;;  %v9250_v51 = vld [vmem:[#allocation63_spill] sm:$0xff] }
 0x1cc   :  { %v1052_v22 = vpop.f32.mrf.mxu0 }
 0x1cd   :  { %v6865_v23 = vadd.f32 %v1052_v22, %v6610_v6  ;;  %v9236_v22 = vld [vmem:[#allocation60_spill] sm:$0xff] }
 0x1ce   :  { %v1054_v18 = vpop.f32.mrf.mxu0 }
 0x1cf   :  { %9224 = vst [vmem:[#allocation89_spill] sm:$0xff] %v6865_v23  ;;  %v9243_v23 = vld [vmem:[#allocation66_spill] sm:$0xff] }
 0x1d0   :  { %v6867_v62 = vpop.f32.mrf.mxu0  ;;  %v1177_v21 = vadd.f32 %v6728_v48, %v9243_v23 }
 0x1d1   :  { %9225 = vst [vmem:[#allocation90_spill] sm:$0xff] %v6867_v62 }
 0x1d2   :  { %v1060_v19 = vpop.f32.mrf.mxu0 }
 0x1d4   :  { %v1062_v42 = vpop.f32.mrf.mxu0 }
 0x1d5   :  { %v6870_v25 = vadd.f32 %v1062_v42, %v6624_v20  ;;  %v738_v20 = vadd.f32 %v6654_v32, %v6656_v60  ;;  %v744_v42 = vadd.f32 %v9236_v22, %v9235_v53  ;;  %v9241_v32 = vld [vmem:[#allocation48_spill] sm:$0xff]  ;;  %v9242_v60 = vld [vmem:[#allocation47_spill] sm:$0xff] }
 0x1d6   :  { %v1064_v26 = vpop.f32.mrf.mxu0  ;;  %v718_v62 = vadd.f32 %v9242_v60, %v9241_v32 }
 0x1d7   :  { %9226 = vst [vmem:[#allocation91_spill] sm:$0xff] %v6870_v25 }
 0x1d8   :  { %v6872_v27 = vpop.f32.mrf.mxu0 }
 0x1d9   :  { %9227 = vst [vmem:[#allocation92_spill] sm:$0xff] %v6872_v27  ;;  %v9244_v27 = vld [vmem:[#allocation53_spill] sm:$0xff] }
 0x1da   :  { %v1070_v14 = vpop.f32.mrf.mxu0 }
 0x1db   :  { %v1151_v25 = vadd.f32 %v1070_v14, %v724_v52  ;;  %v9252_v14 = vld [vmem:[#allocation42_spill] sm:$0xff] }
 0x1dc   :  { %v1072_v29 = vpop.f32.mrf.mxu0 }
 0x1dd   :  { %v6875_v58 = vadd.f32 %v1072_v29, %v6638_v1  ;;  %v9234_v1 = vld [vmem:[#allocation56_spill] sm:$0xff]  ;;  %v747_v29 = vpop.f32.mrf.mxu1 }
 0x1de   :  { %v1074_v40 = vpop.f32.mrf.mxu0  ;;  %v734_v59 = vadd.f32 %v9234_v1, %v9233_v3  ;;  %v9245_v3 = vld [vmem:[#allocation52_spill] sm:$0xff]  ;;  %v748_v5 = vadd.f32 %v747_v29, %v9250_v51  ;;  %v1227_v29 = vadd.f32 %v6728_v48, %v1151_v25  ;;  %v9258_v25 = vld [vmem:[#allocation30_spill] sm:$0xff] }
 0x1df   :  { %9228 = vst [vmem:[#allocation93_spill] sm:$0xff] %v6875_v58  ;;  %v728_v1 = vadd.f32 %v9245_v3, %v9244_v27 }
 0x1e0   :  { %v6877_v46 = vpop.f32.mrf.mxu0 }
 0x1e1   :  { %9229 = vst [vmem:[#allocation94_spill] sm:$0xff] %v6877_v46  ;;  %v1153_v60 = vadd.f32 %v1074_v40, %v728_v1  ;;  %v9255_v40 = vld [vmem:[#allocation34_spill] sm:$0xff]  ;;  %v9256_v1 = vld [vmem:[#allocation33_spill] sm:$0xff] }
 0x1e2   :  { %v1080_v6 = vpop.f32.mrf.mxu0 }
 0x1e3   :  { %v1155_v53 = vadd.f32 %v1080_v6, %v734_v59  ;;  %v9253_v6 = vld [vmem:[#allocation41_spill] sm:$0xff]  ;;  %v6914_v59 = vmax.f32 %v1177_v21, 0.0  ;;  %v1229_v21 = vadd.f32 %v6728_v48, %v1153_v60 }
 0x1e4   :  { %v1082_v2 = vpop.f32.mrf.mxu0  ;;  %v708_v52 = vadd.f32 %v9253_v6, %v9252_v14 }
 0x1e5   :  { %v6880_v49 = vadd.f32 %v1082_v2, %v6652_v13  ;;  %v9238_v13 = vld [vmem:[#allocation27_spill] sm:$0xff]  ;;  %9254 = vst [vmem:[#allocation51_spill] sm:$0xff] %v6914_v59 }
 0x1e6   :  { %v1084_v57 = vpop.f32.mrf.mxu0  ;;  %v684_v2 = vadd.f32 %v9238_v13, %v9237_v37  ;;  %v9248_v37 = vld [vmem:[#allocation46_spill] sm:$0xff]  ;;  %v9249_v13 = vld [vmem:[#allocation45_spill] sm:$0xff] }
 0x1e7   :  { %9230 = vst [vmem:[#allocation95_spill] sm:$0xff] %v6880_v49  ;;  %v1157_v34 = vadd.f32 %v1084_v57, %v738_v20  ;;  %v9246_v57 = vld [vmem:[#allocation40_spill] sm:$0xff]  ;;  %v9247_v20 = vld [vmem:[#allocation39_spill] sm:$0xff]  ;;  %v714_v58 = vadd.f32 %v9249_v13, %v9248_v37  ;;  %v1149_v49 = vadd.f32 %v1064_v26, %v718_v62  ;;  %v1231_v62 = vadd.f32 %v6728_v48, %v1155_v53 }
 0x1e8   :  { %v6884_v41 = vpop.f32.mrf.mxu0  ;;  %v704_v46 = vadd.f32 %v9247_v20, %v9246_v57  ;;  %v1145_v57 = vadd.f32 %v1054_v18, %v708_v52  ;;  %v6935_v18 = vmax.f32 %v1227_v29, 0.0 }
 0x1e9   :  { %9231 = vst [vmem:[#allocation96_spill] sm:$0xff] %v6884_v41  ;;  %v1233_v23 = vadd.f32 %v6728_v48, %v1157_v34  ;;  %v1225_v20 = vadd.f32 %v6728_v48, %v1149_v49  ;;  %v6937_v49 = vmax.f32 %v1231_v62, 0.0  ;;  %v1209_v62 = vadd.f32 %v6728_v48, %v6819_v55  ;;  %v9264_v55 = vld [vmem:[#allocation24_spill] sm:$0xff] }
 0x1ea   :  { %v1090_v11 = vpop.f32.mrf.mxu0  ;;  %9260 = vst [vmem:[#allocation56_spill] sm:$0xff] %v6935_v18 }
 0x1eb   :  { %v1159_v22 = vadd.f32 %v1090_v11, %v744_v42  ;;  %v1143_v42 = vadd.f32 %v1050_v30, %v704_v46  ;;  %v1147_v11 = vadd.f32 %v1060_v19, %v714_v58  ;;  %v6924_v37 = vmax.f32 %v1233_v23, 0.0  ;;  %v9259_v58 = vld [vmem:[#allocation29_spill] sm:$0xff] }
 0x1ec   :  { %v1092_v32 = vpop.f32.mrf.mxu0  ;;  %v688_v46 = vadd.f32 %v9259_v58, %v9258_v25  ;;  %v9266_v25 = vld [vmem:[#allocation78_spill] sm:$0xff] }
 0x1ed   :  { %v1235_v41 = vadd.f32 %v6728_v48, %v1159_v22  ;;  %v6910_v27 = vadd.f32 %v1092_v32, %v9251_v61  ;;  %v694_v22 = vadd.f32 %v9256_v1, %v9255_v40  ;;  %v1141_v61 = vadd.f32 %v1044_v15, %v698_v12  ;;  %9257 = vst [vmem:[#allocation57_spill] sm:$0xff] %v6924_v37 }
 0x1ee   :  { %v1094_v3 = vpop.f32.mrf.mxu0  ;;  %v1219_v12 = vadd.f32 %v6728_v48, %v1143_v42  ;;  %v1223_v15 = vadd.f32 %v6728_v48, %v1147_v11  ;;  %v1137_v51 = vadd.f32 %v6847_v38, %v688_v46  ;;  %v5220_v32 = vpack.i.bf16 %v6935_v18, %v6924_v37  ;;  %v9267_v46 = vld [vmem:[#allocation22_spill] sm:$0xff] }
 0x1ef   :  { %v6918_v26 = vmax.f32 %v1235_v41, 0.0  ;;  %v1161_v34 = vadd.f32 %v1094_v3, %v748_v5  ;;  %v1135_v41 = vadd.f32 %v6832_v8, %v684_v2  ;;  %v1139_v53 = vadd.f32 %v6856_v47, %v694_v22 }
 0x1f0   :  { %v1217_v5 = vadd.f32 %v6728_v48, %v1141_v61  ;;  %v1221_v8 = vadd.f32 %v6728_v48, %v1145_v57  ;;  %v6945_v2 = vmax.f32 %v1225_v20, 0.0  ;;  %v6947_v47 = vmax.f32 %v1229_v21, 0.0  ;;  %v9265_v20 = vld [vmem:[#allocation23_spill] sm:$0xff] }
 0x1f1   :  { %v1237_v30 = vadd.f32 %v6728_v48, %v1161_v34  ;;  %v5210_v19 = vpack.i.bf16 %v6918_v26, %v6914_v59  ;;  %v1211_v23 = vadd.f32 %v6728_v48, %v1135_v41  ;;  %v1215_v14 = vadd.f32 %v6728_v48, %v1139_v53  ;;  %v9268_v41 = vld [vmem:[#allocation21_spill] sm:$0xff] }
 0x1f2   :  { %v6955_v6 = vmax.f32 %v1219_v12, 0.0  ;;  %v6957_v38 = vmax.f32 %v1223_v15, 0.0  ;;  %v1213_v52 = vadd.f32 %v6728_v48, %v1137_v51  ;;  %v6962_v42 = vmax.f32 %v1217_v5, 0.0  ;;  %v9269_v5 = vld [vmem:[#allocation20_spill] sm:$0xff] }
 0x1f3   :  { %v6939_v13 = vmax.f32 %v1237_v30, 0.0  ;;  %5211 = vrot.lane.b32.xlu0 %v5210_v19, %s5798_s2  ;;  %v6964_v11 = vmax.f32 %v1221_v8, 0.0  ;;  %v6972_v34 = vmax.f32 %v1211_v23, 0.0  ;;  %v6974_v40 = vmax.f32 %v1215_v14, 0.0  ;;  %v9270_v8 = vld [vmem:[#allocation19_spill] sm:$0xff] }
 0x1f4   :  { %v5230_v3 = vpack.i.bf16 %v6955_v6, %v6945_v2  ;;  %v5225_v29 = vpack.i.bf16 %v6957_v38, %v6947_v47  ;;  %v6978_v1 = vmax.f32 %v1213_v52, 0.0  ;;  %v6984_v57 = vmax.f32 %v1209_v62, 0.0  ;;  %v9272_v62 = vld [vmem:[#allocation17_spill] sm:$0xff] }
 0x1f5   :  { %v5215_v60 = vpack.i.bf16 %v6937_v49, %v6939_v13  ;;  %9261 = vst [vmem:[#allocation61_spill] sm:$0xff] %v6972_v34  ;;  %v5240_v22 = vpack.i.bf16 %v6972_v34, %v6962_v42  ;;  %v5235_v61 = vpack.i.bf16 %v6974_v40, %v6964_v11  ;;  %v670_v21 = vadd.f32 %v9265_v20, %v9264_v55 }
 0x1f6   :  { %9262 = vst [vmem:[#allocation60_spill] sm:$0xff] %v6978_v1  ;;  %9263 = vst [vmem:[#allocation28_spill] sm:$0xff] %v6984_v57  ;;  %v5245_v48 = vpack.i.bf16 %v6984_v57, %v6978_v1  ;;  %v9083_v30 = vsub.s32 1, %v5889_v4  ;;  %v660_v53 = vadd.f32 %v9268_v41, %v9267_v46 }
 0x1f7   :  { %5221 = vrot.lane.b32.xlu0 %v5220_v32, %s5798_s2  ;;  %5216 = vrot.lane.b32.xlu1 %v5215_v60, %s5798_s2  ;;  %v1130_v19 = vadd.f32 %v6779_v50, %v670_v21  ;;  %v650_v50 = vadd.f32 %v9270_v8, %v9269_v5 }
 0x1f8   :  { %v6998_v58 = vrot.slane %v9266_v25, %v9083_v30  ;;  %v1126_v51 = vadd.f32 %v6742_v54, %v660_v53  ;;  %v9271_v54 = vld [vmem:[#allocation18_spill] sm:$0xff] }
 0x1fa   :  { %v7004_v12 = vadd.f32 %v6998_v58, %v6763_v16  ;;  %v7007_v15 = vadd.f32 %v6998_v58, %v1130_v19  ;;  %v7014_v32 = vadd.f32 %v6998_v58, %v6735_v35  ;;  %v7018_v60 = vadd.f32 %v6998_v58, %v6807_v24  ;;  %v9274_v35 = vld [vmem:[#allocation77_spill] sm:$0xff] }
 0x1fb   :  { %5231 = vrot.lane.b32.xlu0 %v5230_v3, %s5798_s2  ;;  %5226 = vrot.lane.b32.xlu1 %v5225_v29, %s5798_s2  ;;  %v1122_v55 = vadd.f32 %v9274_v35, %v650_v50  ;;  %v7030_v24 = vadd.f32 %v6998_v58, %v1126_v51 }
 0x1fc   :  { %v9089_v16 = vmax.f32 %v7004_v12, 0.0  ;;  %v9088_v52 = vmax.f32 %v7007_v15, 0.0  ;;  %v9085_v19 = vmax.f32 %v7014_v32, 0.0  ;;  %v9084_v25 = vmax.f32 %v7018_v60, 0.0 }
 0x1fd   :  { %v7051_v35 = vadd.f32 %v6998_v58, %v1122_v55 }
 0x1ff   :  { %5241 = vrot.lane.b32.xlu0 %v5240_v22, %s5798_s2  ;;  %5236 = vrot.lane.b32.xlu1 %v5235_v61, %s5798_s2  ;;  %v640_v22 = vadd.f32 %v9272_v62, %v9271_v54  ;;  %v9273_v61 = vld [vmem:[#allocation76_spill] sm:$0xff]  ;;  %v9277_v54 = vld [vmem:[#allocation75_spill] sm:$0xff]  ;;  %9278 = vst [vmem:[#allocation36_spill] sm:$0xff] %v7051_v35 }
 0x201   :  { %v1118_v62 = vadd.f32 %v9277_v54, %v640_v22 }
 0x203   :  { %5246 = vrot.lane.b32.xlu1 %v5245_v48, %s5798_s2  ;;  %v7026_v48 = vadd.f32 %v6998_v58, %v9273_v61 }
 0x221   :  { %v5182_v23 = vpop.permute.xlu1 %5181 }
 0x222   :  { %v5184_v5 = vunpack.i.h.bf16 %v5182_v23  ;;  %v5183_v51 = vunpack.i.l.bf16 %v5182_v23  ;;  %v9087_v23 = vmax.f32 %v7030_v24, 0.0 }
 0x224   :  { %v1381_v30 = vsel %vm1303_vm3, %v5183_v51, %v9087_v23  ;;  %v9091_v51 = vmax.f32 %v7051_v35, 0.0 }
 0x225   :  { %v5187_v61 = vpop.permute.xlu1 %5186 }
 0x226   :  { %v5189_v54 = vunpack.i.h.bf16 %v5187_v61  ;;  %v5188_v55 = vunpack.i.l.bf16 %v5187_v61 }
 0x229   :  { %v5172_v14 = vpop.permute.xlu0 %5171 }
 0x22a   :  { %v5174_v3 = vunpack.i.h.bf16 %v5172_v14  ;;  %v5173_v29 = vunpack.i.l.bf16 %v5172_v14  ;;  %v9275_v14 = vld [vmem:[#allocation74_spill] sm:$0xff] }
 0x22c   :  { %v1382_v20 = vsel %vm1303_vm3, %v5173_v29, %v9089_v16  ;;  %v1383_v21 = vsel %vm1303_vm3, %v5174_v3, %v9088_v52  ;;  %v7044_v29 = vadd.f32 %v6998_v58, %v9275_v14  ;;  %v9086_v3 = vmax.f32 %v7026_v48, 0.0  ;;  %v5197_v16 = vpop.permute.xlu1 %5196 }
 0x22d   :  { %v5177_v46 = vpop.permute.xlu0 %5176  ;;  %v5250_v41 = vpack.i.bf16 %v1382_v20, %v6794_v63  ;;  %v5255_v53 = vpack.i.bf16 %v1383_v21, %v6796_v43  ;;  %v9279_v21 = vld [vmem:[#allocation16_spill] sm:$0xff] }
 0x22e   :  { %v5179_v8 = vunpack.i.h.bf16 %v5177_v46  ;;  %v5178_v50 = vunpack.i.l.bf16 %v5177_v46  ;;  %9276 = vst [vmem:[#allocation27_spill] sm:$0xff] %v7044_v29  ;;  %v9280_v46 = vld [vmem:[#allocation15_spill] sm:$0xff]  ;;  %v9090_v61 = vmax.f32 %v7044_v29, 0.0  ;;  %v5199_v29 = vunpack.i.h.bf16 %v5197_v16 }
 0x22f   :  { %5251 = vrot.lane.b32.xlu0 %v5250_v41, %s5799_s21  ;;  %5256 = vrot.lane.b32.xlu1 %v5255_v53, %s5799_s21  ;;  %v630_v14 = vadd.f32 %v9280_v46, %v9279_v21  ;;  %v7079_v21 = vadd.f32 %v6998_v58, %v1118_v62  ;;  %v9283_v46 = vld [vmem:[#allocation14_spill] sm:$0xff] }
 0x230   :  { %v1384_v20 = vsel %vm1303_vm3, %v5178_v50, %v9084_v25  ;;  %v1380_v22 = vsel %vm1303_vm3, %v5179_v8, %v9085_v19  ;;  %v1378_v50 = vsel %vm1303_vm3, %v5184_v5, %v9086_v3  ;;  %v9281_v25 = vld [vmem:[#allocation72_spill] sm:$0xff]  ;;  %v9284_v5 = vld [vmem:[#allocation13_spill] sm:$0xff]  ;;  %v1376_v62 = vsel %vm1303_vm3, %v5189_v54, %v9090_v61  ;;  %v9288_v54 = vld [vmem:[#allocation11_spill] sm:$0xff] }
 0x231   :  { %v5265_v41 = vpack.i.bf16 %v1384_v20, %v6816_v39  ;;  %v5260_v53 = vpack.i.bf16 %v1380_v22, %v6814_v7  ;;  %v7072_v8 = vadd.f32 %v6998_v58, %v9281_v25  ;;  %v5192_v19 = vpop.permute.xlu0 %5191  ;;  %v9282_v20 = vld [vmem:[#allocation73_spill] sm:$0xff]  ;;  %v620_v3 = vadd.f32 %v9284_v5, %v9283_v46  ;;  %v9287_v5 = vld [vmem:[#allocation12_spill] sm:$0xff] }
 0x232   :  { %v1114_v22 = vadd.f32 %v9282_v20, %v630_v14  ;;  %v5270_v25 = vpack.i.bf16 %v1381_v30, %v6753_v28  ;;  %v5275_v23 = vpack.i.bf16 %v1378_v50, %v6751_v0  ;;  %v5194_v52 = vunpack.i.h.bf16 %v5192_v19  ;;  %v9286_v30 = vld [vmem:[#allocation71_spill] sm:$0xff] }
 0x233   :  { %5266 = vrot.lane.b32.xlu0 %v5265_v41, %s5799_s21  ;;  %5261 = vrot.lane.b32.xlu1 %v5260_v53, %s5799_s21  ;;  %v5193_v41 = vunpack.i.l.bf16 %v5192_v19  ;;  %v1379_v14 = vsel %vm1303_vm3, %v5188_v55, %v9091_v51  ;;  %v9285_v53 = vld [vmem:[#allocation70_spill] sm:$0xff]  ;;  %v1110_v50 = vadd.f32 %v9286_v30, %v620_v3  ;;  %v9094_v19 = vmax.f32 %v7072_v8, 0.0 }
 0x234   :  { %v7094_v20 = vadd.f32 %v6998_v58, %v9285_v53  ;;  %v7101_v46 = vadd.f32 %v6998_v58, %v1114_v22  ;;  %v9100_v55 = vmax.f32 %v7079_v21, 0.0  ;;  %v610_v61 = vadd.f32 %v9288_v54, %v9287_v5  ;;  %v9289_v22 = vld [vmem:[#allocation68_spill] sm:$0xff] }
 0x235   :  { %v5280_v53 = vpack.i.bf16 %v1379_v14, %v6760_v9  ;;  %v5285_v51 = vpack.i.bf16 %v1376_v62, %v6770_v56  ;;  %v7116_v30 = vadd.f32 %v6998_v58, %v9289_v22  ;;  %v5202_v35 = vpop.permute.xlu0 %5201  ;;  %v9291_v14 = vld [vmem:[#allocation69_spill] sm:$0xff]  ;;  %v7123_v5 = vadd.f32 %v6998_v58, %v1110_v50 }
 0x236   :  { %v1377_v3 = vsel %vm1303_vm3, %v5193_v41, %v9100_v55  ;;  %v1106_v62 = vadd.f32 %v9291_v14, %v610_v61  ;;  %v9096_v41 = vmax.f32 %v7101_v46, 0.0  ;;  %v5204_v22 = vunpack.i.h.bf16 %v5202_v35  ;;  %v9292_v50 = vld [vmem:[#allocation65_spill] sm:$0xff]  ;;  %v1096_v55 = vpop.f32.mrf.mxu0 }
 0x237   :  { %5271 = vrot.lane.b32.xlu0 %v5270_v25, %s5799_s21  ;;  %5276 = vrot.lane.b32.xlu1 %v5275_v23, %s5799_s21  ;;  %v5198_v25 = vunpack.i.l.bf16 %v5197_v16  ;;  %v1374_v23 = vsel %vm1303_vm3, %v5194_v52, %v9094_v19  ;;  %9290 = vst [vmem:[#allocation35_spill] sm:$0xff] %v7116_v30  ;;  %v9095_v16 = vmax.f32 %v7094_v20, 0.0  ;;  %v5290_v52 = vpack.i.bf16 %v1377_v3, %v6826_v31 }
 0x238   :  { %v5295_v54 = vpack.i.bf16 %v1374_v23, %v6836_v17  ;;  %v5203_v19 = vunpack.i.l.bf16 %v5202_v35  ;;  %v7138_v3 = vadd.f32 %v6998_v58, %v9292_v50  ;;  %v9097_v23 = vmax.f32 %v7116_v30, 0.0 }
 0x239   :  { %v1372_v61 = vsel %vm1303_vm3, %v5199_v29, %v9095_v16  ;;  %v7142_v35 = vadd.f32 %v6998_v58, %v1106_v62 }
 0x23a   :  { %9293 = vst [vmem:[#allocation48_spill] sm:$0xff] %v7138_v3  ;;  %v5305_v29 = vpack.i.bf16 %v1372_v61, %v6790_v44  ;;  %v9098_v62 = vmax.f32 %v7138_v3, 0.0  ;;  %v9300_v3 = vld [vmem:[#allocation59_spill] sm:$0xff] }
 0x23b   :  { %5281 = vrot.lane.b32.xlu0 %v5280_v53, %s5799_s21  ;;  %5286 = vrot.lane.b32.xlu1 %v5285_v51, %s5799_s21  ;;  %v1375_v53 = vsel %vm1303_vm3, %v5198_v25, %v9096_v41  ;;  %v5207_v51 = vpop.permute.xlu1 %5206  ;;  %9294 = vst [vmem:[#allocation47_spill] sm:$0xff] %v7142_v35  ;;  %v9099_v25 = vmax.f32 %v7123_v5, 0.0 }
 0x23c   :  { %v5300_v14 = vpack.i.bf16 %v1375_v53, %v6777_v10  ;;  %v5209_v16 = vunpack.i.h.bf16 %v5207_v51  ;;  %v5208_v41 = vunpack.i.l.bf16 %v5207_v51  ;;  %v9101_v53 = vmax.f32 %v7142_v35, 0.0 }
 0x23f   :  { %5291 = vrot.lane.b32.xlu0 %v5290_v52, %s5799_s21  ;;  %5296 = vrot.lane.b32.xlu1 %v5295_v54, %s5799_s21  ;;  %v1373_v52 = vsel %vm1303_vm3, %v5203_v19, %v9099_v25  ;;  %v1370_v54 = vsel %vm1303_vm3, %v5204_v22, %v9097_v23  ;;  %v1368_v19 = vsel %vm1303_vm3, %v5209_v16, %v9098_v62  ;;  %v749_v16 = vpop.f32.mrf.mxu1  ;;  %v9298_v62 = vld [vmem:[#allocation67_spill] sm:$0xff] }
 0x240   :  { %v5310_v61 = vpack.i.bf16 %v1373_v52, %v6840_v45  ;;  %v5315_v51 = vpack.i.bf16 %v1370_v54, %v6849_v36  ;;  %v1371_v22 = vsel %vm1303_vm3, %v5208_v41, %v9101_v53  ;;  %v5325_v50 = vpack.i.bf16 %v1368_v19, %v6811_v33  ;;  %v9296_v52 = vld [vmem:[#allocation10_spill] sm:$0xff]  ;;  %v9297_v54 = vld [vmem:[#allocation9_spill] sm:$0xff]  ;;  %v9299_v41 = vld [vmem:[#allocation64_spill] sm:$0xff] }
 0x241   :  { %v600_v23 = vadd.f32 %v9297_v54, %v9296_v52  ;;  %v750_v53 = vadd.f32 %v749_v16, %v9299_v41  ;;  %v9304_v52 = vld [vmem:[#allocation55_spill] sm:$0xff]  ;;  %v9305_v54 = vld [vmem:[#allocation54_spill] sm:$0xff] }
 0x242   :  { %v730_v33 = vadd.f32 %v9305_v54, %v9304_v52  ;;  %v9309_v41 = vld [vmem:[#allocation50_spill] sm:$0xff]  ;;  %v9315_v45 = vld [vmem:[#allocation91_spill] sm:$0xff] }
 0x243   :  { %5301 = vrot.lane.b32.xlu0 %v5300_v14, %s5799_s21  ;;  %5306 = vrot.lane.b32.xlu1 %v5305_v29, %s5799_s21  ;;  %v9295_v14 = vld [vmem:[#allocation80_spill] sm:$0xff]  ;;  %v1102_v25 = vadd.f32 %v9298_v62, %v600_v23  ;;  %v9306_v23 = vld [vmem:[#allocation95_spill] sm:$0xff]  ;;  %v9313_v54 = vld [vmem:[#allocation94_spill] sm:$0xff] }
 0x244   :  { %v5320_v29 = vpack.i.bf16 %v1371_v22, %v9295_v14  ;;  %v7182_v22 = vadd.f32 %v6998_v58, %v6910_v27  ;;  %v7189_v62 = vadd.f32 %v6998_v58, %v9306_v23  ;;  %v1154_v23 = vadd.f32 %v9313_v54, %v730_v33 }
 0x245   :  { %v7178_v19 = vadd.f32 %v6998_v58, %v1102_v25 }
 0x246   :  { %9302 = vst [vmem:[#allocation66_spill] sm:$0xff] %v7182_v22  ;;  %9307 = vst [vmem:[#allocation53_spill] sm:$0xff] %v7189_v62  ;;  %v9114_v36 = vmax.f32 %v7189_v62, 0.0 }
 0x247   :  { %5311 = vrot.lane.b32.xlu0 %v5310_v61, %s5799_s21  ;;  %5316 = vrot.lane.b32.xlu1 %v5315_v51, %s5799_s21  ;;  %v1162_v61 = vadd.f32 %v1096_v55, %v750_v53  ;;  %v9301_v51 = vld [vmem:[#allocation58_spill] sm:$0xff]  ;;  %v9111_v25 = vmax.f32 %v7178_v19, 0.0  ;;  %v9110_v53 = vmax.f32 %v7182_v22, 0.0 }
 0x248   :  { %v740_v35 = vadd.f32 %v9301_v51, %v9300_v3  ;;  %v9310_v51 = vld [vmem:[#allocation49_spill] sm:$0xff] }
 0x249   :  { %v7192_v55 = vadd.f32 %v6998_v58, %v1162_v61 }
 0x24b   :  { %5326 = vrot.lane.b32.xlu1 %v5325_v50, %s5799_s21  ;;  %5321 = vrot.lane.b32.xlu0 %v5320_v29, %s5799_s21  ;;  %v9303_v50 = vld [vmem:[#allocation96_spill] sm:$0xff]  ;;  %9308 = vst [vmem:[#allocation52_spill] sm:$0xff] %v7192_v55 }
 0x24c   :  { %v1158_v29 = vadd.f32 %v9303_v50, %v740_v35  ;;  %v720_v35 = vadd.f32 %v9310_v51, %v9309_v41  ;;  %v9311_v50 = vld [vmem:[#allocation93_spill] sm:$0xff]  ;;  %v9116_v41 = vmax.f32 %v7192_v55, 0.0 }
 0x24d   :  { %v7200_v52 = vadd.f32 %v6998_v58, %v9311_v50  ;;  %v9323_v55 = vld [vmem:[#allocation89_spill] sm:$0xff] }
 0x24e   :  { %v7204_v14 = vadd.f32 %v6998_v58, %v1158_v29 }
 0x24f   :  { %9312 = vst [vmem:[#allocation40_spill] sm:$0xff] %v7200_v52 }
 0x250   :  { %9314 = vst [vmem:[#allocation39_spill] sm:$0xff] %v7204_v14 }
 0x265   :  { %v5212_v3 = vpop.permute.xlu0 %5211 }
 0x266   :  { %v5214_v16 = vunpack.i.h.bf16 %v5212_v3  ;;  %v5213_v27 = vunpack.i.l.bf16 %v5212_v3 }
 0x268   :  { %v1398_v61 = vsel %vm1303_vm3, %v5214_v16, %v9110_v53  ;;  %v1369_v3 = vsel %vm1303_vm3, %v5213_v27, %v9111_v25  ;;  %v7218_v16 = vadd.f32 %v6998_v58, %v9315_v45  ;;  %v9317_v53 = vld [vmem:[#allocation92_spill] sm:$0xff] }
 0x269   :  { %v5222_v51 = vpop.permute.xlu0 %5221  ;;  %v5217_v50 = vpop.permute.xlu1 %5216  ;;  %v5335_v30 = vpack.i.bf16 %v1398_v61, %v6918_v26  ;;  %v5330_v33 = vpack.i.bf16 %v1369_v3, %v6914_v59  ;;  %v1150_v27 = vadd.f32 %v9317_v53, %v720_v35  ;;  %v7225_v61 = vadd.f32 %v6998_v58, %v1154_v23  ;;  %v9319_v53 = vld [vmem:[#allocation44_spill] sm:$0xff]  ;;  %v9320_v35 = vld [vmem:[#allocation43_spill] sm:$0xff] }
 0x26a   :  { %v5224_v29 = vunpack.i.h.bf16 %v5222_v51  ;;  %v5223_v54 = vunpack.i.l.bf16 %v5222_v51  ;;  %v5219_v44 = vunpack.i.h.bf16 %v5217_v50  ;;  %v5218_v22 = vunpack.i.l.bf16 %v5217_v50  ;;  %9316 = vst [vmem:[#allocation46_spill] sm:$0xff] %v7218_v16 }
 0x26b   :  { %5336 = vrot.lane.b32.xlu1 %v5335_v30, %s5799_s21  ;;  %5331 = vrot.lane.b32.xlu0 %v5330_v33, %s5799_s21  ;;  %9318 = vst [vmem:[#allocation45_spill] sm:$0xff] %v7225_v61  ;;  %v710_v50 = vadd.f32 %v9320_v35, %v9319_v53  ;;  %v9321_v3 = vmax.f32 %v7200_v52, 0.0  ;;  %v7253_v35 = vadd.f32 %v6998_v58, %v1150_v27 }
 0x26c   :  { %v1396_v51 = vsel %vm1303_vm3, %v5219_v44, %v9114_v36  ;;  %v1399_v45 = vsel %vm1303_vm3, %v5218_v22, %v9116_v41  ;;  %v9322_v44 = vmax.f32 %v7204_v14, 0.0  ;;  %v7246_v22 = vadd.f32 %v6998_v58, %v9323_v55 }
 0x26d   :  { %v5227_v25 = vpop.permute.xlu1 %5226  ;;  %v5340_v30 = vpack.i.bf16 %v1396_v51, %v6937_v49  ;;  %v5345_v33 = vpack.i.bf16 %v1399_v45, %v6939_v13  ;;  %v1394_v62 = vsel %vm1303_vm3, %v5224_v29, %v9321_v3  ;;  %v5232_v53 = vpop.permute.xlu0 %5231  ;;  %v9324_v51 = vld [vmem:[#allocation90_spill] sm:$0xff]  ;;  %v9119_v29 = vmax.f32 %v7225_v61, 0.0 }
 0x26e   :  { %v5229_v23 = vunpack.i.h.bf16 %v5227_v25  ;;  %v5228_v59 = vunpack.i.l.bf16 %v5227_v25  ;;  %v1397_v36 = vsel %vm1303_vm3, %v5223_v54, %v9322_v44  ;;  %v1146_v45 = vadd.f32 %v9324_v51, %v710_v50  ;;  %v9325_v3 = vld [vmem:[#allocation38_spill] sm:$0xff]  ;;  %v9326_v54 = vld [vmem:[#allocation37_spill] sm:$0xff] }
 0x26f   :  { %5341 = vrot.lane.b32.xlu1 %v5340_v30, %s5799_s21  ;;  %5346 = vrot.lane.b32.xlu0 %v5345_v33, %s5799_s21  ;;  %v9120_v25 = vmax.f32 %v7218_v16, 0.0  ;;  %v700_v44 = vadd.f32 %v9326_v54, %v9325_v3  ;;  %v5355_v55 = vpack.i.bf16 %v1394_v62, %v6935_v18  ;;  %v5350_v41 = vpack.i.bf16 %v1397_v36, %v6924_v37  ;;  %v9327_v33 = vld [vmem:[#allocation87_spill] sm:$0xff]  ;;  %v9328_v36 = vld [vmem:[#allocation88_spill] sm:$0xff]  ;;  %v9329_v54 = vld [vmem:[#allocation26_spill] sm:$0xff] }
 0x270   :  { %v5234_v14 = vunpack.i.h.bf16 %v5232_v53  ;;  %v5233_v30 = vunpack.i.l.bf16 %v5232_v53  ;;  %v1395_v27 = vsel %vm1303_vm3, %v5228_v59, %v9119_v29  ;;  %v7268_v51 = vadd.f32 %v6998_v58, %v9327_v33  ;;  %v9330_v59 = vld [vmem:[#allocation25_spill] sm:$0xff]  ;;  %v9332_v33 = vld [vmem:[#allocation31_spill] sm:$0xff] }
 0x271   :  { %v1392_v50 = vsel %vm1303_vm3, %v5229_v23, %v9120_v25  ;;  %v5237_v52 = vpop.permute.xlu1 %5236  ;;  %v1142_v62 = vadd.f32 %v9328_v36, %v700_v44  ;;  %v9131_v53 = vmax.f32 %v7246_v22, 0.0  ;;  %v7275_v3 = vadd.f32 %v6998_v58, %v1146_v45  ;;  %v9331_v25 = vld [vmem:[#allocation32_spill] sm:$0xff]  ;;  %v9333_v36 = vld [vmem:[#allocation82_spill] sm:$0xff] }
 0x272   :  { %v9132_v23 = vmax.f32 %v7253_v35, 0.0  ;;  %v680_v29 = vadd.f32 %v9330_v59, %v9329_v54  ;;  %v690_v61 = vadd.f32 %v9332_v33, %v9331_v25  ;;  %v5365_v16 = vpack.i.bf16 %v1392_v50, %v6957_v38  ;;  %v9334_v54 = vld [vmem:[#allocation84_spill] sm:$0xff]  ;;  %v5242_v25 = vpop.permute.xlu0 %5241 }
 0x273   :  { %5356 = vrot.lane.b32.xlu1 %v5355_v55, %s5799_s21  ;;  %5351 = vrot.lane.b32.xlu0 %v5350_v41, %s5799_s21  ;;  %v5360_v55 = vpack.i.bf16 %v1395_v27, %v6947_v47  ;;  %v5239_v41 = vunpack.i.h.bf16 %v5237_v52  ;;  %v5238_v18 = vunpack.i.l.bf16 %v5237_v52  ;;  %v1390_v44 = vsel %vm1303_vm3, %v5234_v14, %v9131_v53  ;;  %v9335_v52 = vld [vmem:[#allocation86_spill] sm:$0xff] }
 0x274   :  { %v1393_v45 = vsel %vm1303_vm3, %v5233_v30, %v9132_v23  ;;  %v1134_v37 = vadd.f32 %v9333_v36, %v680_v29  ;;  %v7293_v59 = vadd.f32 %v6998_v58, %v9334_v54  ;;  %v1138_v50 = vadd.f32 %v9335_v52, %v690_v61 }
 0x275   :  { %v9125_v27 = vmax.f32 %v7268_v51, 0.0  ;;  %v7300_v14 = vadd.f32 %v6998_v58, %v1142_v62  ;;  %v9130_v30 = vmax.f32 %v7275_v3, 0.0  ;;  %v5375_v29 = vpack.i.bf16 %v1390_v44, %v6955_v6 }
 0x276   :  { %v5370_v33 = vpack.i.bf16 %v1393_v45, %v6945_v2  ;;  %v5244_v36 = vunpack.i.h.bf16 %v5242_v25  ;;  %v5243_v54 = vunpack.i.l.bf16 %v5242_v25  ;;  %v7314_v62 = vadd.f32 %v6998_v58, %v1134_v37 }
 0x277   :  { %5366 = vrot.lane.b32.xlu1 %v5365_v16, %s5799_s21  ;;  %5361 = vrot.lane.b32.xlu0 %v5360_v55, %s5799_s21  ;;  %v1388_v16 = vsel %vm1303_vm3, %v5239_v41, %v9125_v27  ;;  %v1391_v61 = vsel %vm1303_vm3, %v5238_v18, %v9130_v30  ;;  %v5247_v55 = vpop.permute.xlu1 %5246  ;;  %v9128_v44 = vmax.f32 %v7293_v59, 0.0  ;;  %v7318_v45 = vadd.f32 %v6998_v58, %v1138_v50 }
 0x278   :  { %9336 = vst [vmem:[#allocation63_spill] sm:$0xff] %v7314_v62  ;;  %v9129_v25 = vmax.f32 %v7300_v14, 0.0  ;;  %v5385_v41 = vpack.i.bf16 %v1388_v16, %v6974_v40  ;;  %v5380_v52 = vpack.i.bf16 %v1391_v61, %v6964_v11  ;;  %v5249_v18 = vunpack.i.h.bf16 %v5247_v55 }
 0x279   :  { %9337 = vst [vmem:[#allocation62_spill] sm:$0xff] %v7318_v45  ;;  %v5248_v27 = vunpack.i.l.bf16 %v5247_v55  ;;  %v9127_v58 = vmax.f32 %v7314_v62, 0.0  ;;  %v9126_v50 = vmax.f32 %v7318_v45, 0.0 }
 0x27a   :  { %v1389_v37 = vsel %vm1303_vm3, %v5243_v54, %v9129_v25 }
 0x27b   :  { %5376 = vrot.lane.b32.xlu1 %v5375_v29, %s5799_s21  ;;  %5371 = vrot.lane.b32.xlu0 %v5370_v33, %s5799_s21  ;;  %v1386_v29 = vsel %vm1303_vm3, %v5244_v36, %v9128_v44  ;;  %v5390_v16 = vpack.i.bf16 %v1389_v37, %v6962_v42  ;;  %v1385_v36 = vsel %vm1303_vm3, %v5249_v18, %v9127_v58 }
 0x27c   :  { %v5395_v33 = vpack.i.bf16 %v1386_v29, %v6972_v34  ;;  %v1387_v54 = vsel %vm1303_vm3, %v5248_v27, %v9126_v50  ;;  %v5405_v61 = vpack.i.bf16 %v1385_v36, %v6984_v57 }
 0x27d   :  { %v5400_v55 = vpack.i.bf16 %v1387_v54, %v6978_v1 }
 0x27f   :  { %5386 = vrot.lane.b32.xlu1 %v5385_v41, %s5799_s21  ;;  %5381 = vrot.lane.b32.xlu0 %v5380_v52, %s5799_s21  ;;  %v5540_v41 = vld [vmem:[%s9065_s3 + $0x4] ss:$8 sps:$4 sm:$0xff]  }
 0x280   :  { %2101 = vmatprep.mubr.bf16.mxu1 %v5540_v41 }
 0x283   :  { %5396 = vrot.lane.b32.xlu1 %v5395_v33, %s5799_s21  ;;  %5391 = vrot.lane.b32.xlu0 %v5390_v16, %s5799_s21  ;;  %v9338_v16 = vmax.f32 %v7004_v12, 0.0 }
 0x287   :  { %5406 = vrot.lane.b32.xlu1 %v5405_v61, %s5799_s21  ;;  %5401 = vrot.lane.b32.xlu0 %v5400_v55, %s5799_s21  ;;  %v9339_v61 = vmax.f32 %v7007_v15, 0.0  ;;  %v9340_v15 = vmax.f32 %v7018_v60, 0.0 }
 0x2a1   :  { %v5252_v52 = vpop.permute.xlu0 %5251  ;;  %v5257_v27 = vpop.permute.xlu1 %5256 }
 0x2a2   :  { %v5254_v18 = vunpack.i.h.bf16 %v5252_v52  ;;  %v5253_v29 = vunpack.i.l.bf16 %v5252_v52  ;;  %v5259_v37 = vunpack.i.h.bf16 %v5257_v27  ;;  %v5258_v33 = vunpack.i.l.bf16 %v5257_v27 }
 0x2a4   :  { %v7352_v36 = vmax.f32 %v9338_v16, %v5254_v18  ;;  %v1607_v54 = vsel %vm1592_vm4, %v5253_v29, %v5254_v18  ;;  %v7357_v55 = vmax.f32 %v9339_v61, %v5259_v37  ;;  %v1608_v50 = vsel %vm1592_vm4, %v5258_v33, %v5259_v37 }
 0x2a5   :  { %v5267_v41 = vpop.permute.xlu0 %5266  ;;  %v5262_v58 = vpop.permute.xlu1 %5261  ;;  %v7361_v44 = vmax.f32 %v6794_v63, %v1607_v54  ;;  %v7366_v18 = vmax.f32 %v6796_v43, %v1608_v50 }
 0x2a6   :  { %v5269_v52 = vunpack.i.h.bf16 %v5267_v41  ;;  %v5268_v25 = vunpack.i.l.bf16 %v5267_v41  ;;  %v1782_v27 = vrot.slane %v7352_v36, 1  ;;  %v1784_v12 = vrot.slane %v7357_v55, 1 }
 0x2a7   :  { %v5264_v16 = vunpack.i.h.bf16 %v5262_v58  ;;  %v5263_v30 = vunpack.i.l.bf16 %v5262_v58  ;;  %v1781_v23 = vrot.slane %v7361_v44, 1  ;;  %v1783_v60 = vrot.slane %v7366_v18, 1 }
 0x2a8   :  { %v7370_v29 = vmax.f32 %v9340_v15, %v5269_v52  ;;  %v1609_v37 = vsel %vm1592_vm4, %v5268_v25, %v5269_v52  ;;  %v1850_v43 = vsel %vm175_vm0, %v1782_v27, %v1784_v12  ;;  %v9342_v25 = vmax.f32 %v7030_v24, 0.0 }
 0x2a9   :  { %v5272_v33 = vpop.permute.xlu0 %5271  ;;  %v5277_v63 = vpop.permute.xlu1 %5276  ;;  %v1605_v61 = vsel %vm1592_vm4, %v5263_v30, %v5264_v16  ;;  %v7380_v50 = vmax.f32 %v6816_v39, %v1609_v37  ;;  %v9343_v15 = vmax.f32 %v7014_v32, 0.0  ;;  %v1910_v32 = vmax.f32 %v7352_v36, %v1850_v43 }
 0x2aa   :  { %9341 = vst [vmem:[#allocation42_spill] sm:$0xff] %v7370_v29  ;;  %v5274_v41 = vunpack.i.h.bf16 %v5272_v33  ;;  %v5273_v53 = vunpack.i.l.bf16 %v5272_v33  ;;  %v5279_v58 = vunpack.i.h.bf16 %v5277_v63  ;;  %v5278_v57 = vunpack.i.l.bf16 %v5277_v63 }
 0x2ab   :  { %v7389_v33 = vmax.f32 %v9343_v15, %v5264_v16  ;;  %v7392_v63 = vmax.f32 %v6814_v7, %v1605_v61  ;;  %v9345_v7 = vmax.f32 %v7026_v48, 0.0  ;;  %v9346_v15 = vld [vmem:[#allocation36_spill] sm:$0xff] }
 0x2ac   :  { %v7384_v52 = vmax.f32 %v9342_v25, %v5274_v41  ;;  %v1606_v30 = vsel %vm1592_vm4, %v5273_v53, %v5274_v41  ;;  %v1603_v1 = vsel %vm1592_vm4, %v5278_v57, %v5279_v58  ;;  %v9344_v25 = vrot.slane %v7370_v29, 1 }
 0x2ad   :  { %v7395_v54 = vmax.f32 %v6753_v28, %v1606_v30  ;;  %v5282_v39 = vpop.permute.xlu0 %5281  ;;  %v5287_v37 = vpop.permute.xlu1 %5286  ;;  %v7406_v61 = vmax.f32 %v9345_v7, %v5279_v58  ;;  %v7410_v30 = vmax.f32 %v6751_v0, %v1603_v1  ;;  %v1778_v36 = vrot.slane %v7389_v33, 1 }
 0x2ae   :  { %v5284_v45 = vunpack.i.h.bf16 %v5282_v39  ;;  %v5283_v24 = vunpack.i.l.bf16 %v5282_v39  ;;  %v1848_v53 = vsel %vm175_vm0, %v1784_v12, %v9344_v25  ;;  %v1780_v16 = vrot.slane %v7384_v52, 1 }
 0x2af   :  { %v5289_v28 = vunpack.i.h.bf16 %v5287_v37  ;;  %v5288_v41 = vunpack.i.l.bf16 %v5287_v37  ;;  %v9347_v39 = vmax.f32 %v9346_v15, 0.0  ;;  %v1777_v43 = vrot.slane %v7392_v63, 1 }
 0x2b0   :  { %v1604_v12 = vsel %vm1592_vm4, %v5283_v24, %v5284_v45  ;;  %v1779_v48 = vrot.slane %v7395_v54, 1  ;;  %v1912_v15 = vmax.f32 %v7357_v55, %v1848_v53  ;;  %v9350_v25 = vmax.f32 %v7079_v21, 0.0 }
 0x2b1   :  { %v7414_v29 = vmax.f32 %v9347_v39, %v5284_v45  ;;  %v7421_v58 = vmax.f32 %v6760_v9, %v1604_v12  ;;  %v5292_v37 = vpop.permute.xlu0 %5291  ;;  %v1601_v0 = vsel %vm1592_vm4, %v5288_v41, %v5289_v28  ;;  %v5297_v7 = vpop.permute.xlu1 %5296  ;;  %v1852_v45 = vsel %vm175_vm0, %v1780_v16, %v1782_v27  ;;  %v9348_v12 = vld [vmem:[#allocation27_spill] sm:$0xff] }
 0x2b2   :  { %v5294_v1 = vunpack.i.h.bf16 %v5292_v37  ;;  %v5293_v57 = vunpack.i.l.bf16 %v5292_v37  ;;  %v9349_v62 = vmax.f32 %v9348_v12, 0.0  ;;  %v7436_v41 = vmax.f32 %v6770_v56, %v1601_v0 }
 0x2b3   :  { %v9140_v39 = vrot.slane %v7421_v58, 1  ;;  %v1851_v27 = vsel %vm175_vm0, %v1779_v48, %v1781_v23  ;;  %v9351_v53 = vrot.slane %v7414_v29, 1  ;;  %v1908_v56 = vmax.f32 %v7384_v52, %v1852_v45 }
 0x2b4   :  { %v7433_v34 = vmax.f32 %v9349_v62, %v5289_v28  ;;  %v7440_v55 = vmax.f32 %v9350_v25, %v5294_v1  ;;  %v1602_v12 = vsel %vm1592_vm4, %v5293_v57, %v5294_v1  ;;  %v5299_v62 = vunpack.i.h.bf16 %v5297_v7 }
 0x2b5   :  { %v7448_v37 = vsel %vm175_vm0, %v9351_v53, %v1778_v36  ;;  %v5302_v28 = vpop.permute.xlu0 %5301  ;;  %v7456_v21 = vsel %vm175_vm0, %v9140_v39, %v1777_v43  ;;  %v7459_v25 = vmax.f32 %v6826_v31, %v1602_v12  ;;  %v5298_v0 = vunpack.i.l.bf16 %v5297_v7  ;;  %v5307_v12 = vpop.permute.xlu1 %5306 }
 0x2b6   :  { %v1772_v9 = vrot.slane %v7440_v55, 1  ;;  %v1960_v53 = vpack.c.bf16 %v1912_v15, %v1910_v32  ;;  %v9352_v24 = vrot.slane %v7380_v50, 1  ;;  %v1849_v52 = vsel %vm175_vm0, %v1781_v23, %v1783_v60 }
 0x2b7   :  { %v1907_v1 = vmax.f32 %v7395_v54, %v1851_v27  ;;  %v1904_v45 = vmax.f32 %v7414_v29, %v7448_v37  ;;  %v1770_v31 = vrot.slane %v7433_v34, 1  ;;  %v9353_v32 = vmax.f32 %v7072_v8, 0.0 }
 0x2b8   :  { %v1847_v57 = vsel %vm175_vm0, %v1783_v60, %v9352_v24  ;;  %2069 = vmatprep.subr.bf16.mxu1 %v1960_v53  ;;  %v1909_v24 = vmax.f32 %v7361_v44, %v1849_v52  ;;  %v5304_v23 = vunpack.i.h.bf16 %v5302_v28  ;;  %v1903_v54 = vmax.f32 %v7421_v58, %v7456_v21 }
 0x2b9   :  { %v7475_v15 = vmax.f32 %v9353_v32, %v5299_v62  ;;  %v1911_v39 = vmax.f32 %v7366_v18, %v1847_v57  ;;  %v1771_v60 = vrot.slane %v7459_v25, 1  ;;  %v1599_v27 = vsel %vm1592_vm4, %v5298_v0, %v5299_v62  ;;  %v5312_v52 = vpop.permute.xlu0 %5311 }
 0x2ba   :  { %v5303_v37 = vunpack.i.l.bf16 %v5302_v28  ;;  %v9354_v7 = vrot.slane %v7406_v61, 1  ;;  %v9355_v44 = vmax.f32 %v7101_v46, 0.0  ;;  %v5309_v57 = vunpack.i.h.bf16 %v5307_v12 }
 0x2bb   :  { %v1959_v53 = vpack.c.bf16 %v1911_v39, %v1909_v24  ;;  %v5308_v32 = vunpack.i.l.bf16 %v5307_v12  ;;  %v1854_v62 = vsel %vm175_vm0, %v1778_v36, %v1780_v16  ;;  %v1853_v28 = vsel %vm175_vm0, %v1777_v43, %v1779_v48 }
 0x2bc   :  { %v1860_v8 = vsel %vm175_vm0, %v1772_v9, %v9354_v7  ;;  %v7491_v18 = vmax.f32 %v9355_v44, %v5304_v23  ;;  %v1600_v21 = vsel %vm1592_vm4, %v5303_v37, %v5304_v23  ;;  %v1766_v0 = vrot.slane %v7475_v15, 1  ;;  %v5317_v23 = vpop.permute.xlu1 %5316 }
 0x2bd   :  { %v7500_v7 = vmax.f32 %v6836_v17, %v1599_v27  ;;  %2070 = vmatpush1.bf16.msra.mxu1 %v1959_v53  ;;  %v7503_v46 = vmax.f32 %v6777_v10, %v1600_v21  ;;  %v1906_v39 = vmax.f32 %v7389_v33, %v1854_v62  ;;  %v1900_v24 = vmax.f32 %v7440_v55, %v1860_v8 }
 0x2be   :  { %v1768_v12 = vrot.slane %v7491_v18, 1  ;;  %v1905_v16 = vmax.f32 %v7392_v63, %v1853_v28  ;;  %v5314_v36 = vunpack.i.h.bf16 %v5312_v52  ;;  %v9356_v43 = vrot.slane %v7410_v30, 1 }
 0x2bf   :  { %v9357_v10 = vmax.f32 %v7094_v20, 0.0  ;;  %v1958_v33 = vpack.c.bf16 %v1908_v56, %v1906_v39  ;;  %v5313_v27 = vunpack.i.l.bf16 %v5312_v52  ;;  %v1767_v37 = vrot.slane %v7503_v46, 1  ;;  %v9359_v39 = vld [vmem:[#allocation83_spill] sm:$0xff] }
 0x2c0   :  { %v1859_v17 = vsel %vm175_vm0, %v1771_v60, %v9356_v43  ;;  %v1597_v8 = vsel %vm1592_vm4, %v5308_v32, %v5309_v57  ;;  %v1957_v63 = vpack.c.bf16 %v1907_v1, %v1905_v16  ;;  %v9358_v53 = vmax.f32 %v7123_v5, 0.0 }
 0x2c1   :  { %v7517_v48 = vmax.f32 %v9357_v10, %v5309_v57  ;;  %v1765_v21 = vrot.slane %v7500_v7, 1  ;;  %2071 = vmatprep.subr.bf16.mxu1 %v1958_v33  ;;  %v1598_v62 = vsel %vm1592_vm4, %v5313_v27, %v5314_v36  ;;  %v5319_v28 = vunpack.i.h.bf16 %v5317_v23 }
 0x2c2   :  { %v7523_v44 = vmax.f32 %v9358_v53, %v5314_v36  ;;  %v5318_v20 = vunpack.i.l.bf16 %v5317_v23  ;;  %v1864_v56 = vsel %vm175_vm0, %v1768_v12, %v1770_v31  ;;  %2072 = vmatpush1.bf16.msra.mxu1 %v1957_v63  ;;  %v7531_v57 = vmax.f32 %v9359_v39, %v1598_v62  ;;  %v9362_v36 = vld [vmem:[#allocation79_spill] sm:$0xff]  ;;  %v5322_v62 = vpop.permute.xlu0 %5321 }
 0x2c3   :  { %v9360_v5 = vrot.slane %v7414_v29, 1  ;;  %v9361_v1 = vrot.slane %v7406_v61, 1  ;;  %v1899_v16 = vmax.f32 %v7459_v25, %v1859_v17  ;;  %v1697_v23 = vmax.f32 %v9362_v36, %v1597_v8 }
 0x2c4   :  { %v1764_v52 = vrot.slane %v7523_v44, 1  ;;  %v9363_v10 = vrot.slane %v7421_v58, 1  ;;  %v9364_v33 = vrot.slane %v7410_v30, 1  ;;  %v9365_v29 = vrot.slane %v7436_v41, 1 }
 0x2c5   :  { %v1858_v32 = vsel %vm175_vm0, %v9361_v1, %v9360_v5  ;;  %v1762_v53 = vrot.slane %v7517_v48, 1  ;;  %v1595_v17 = vsel %vm1592_vm4, %v5318_v20, %v5319_v28  ;;  %v1763_v58 = vrot.slane %v7531_v57, 1 }
 0x2c6   :  { %v1902_v43 = vmax.f32 %v7406_v61, %v1858_v32  ;;  %v1857_v27 = vsel %vm175_vm0, %v9364_v33, %v9363_v10  ;;  %v1863_v63 = vsel %vm175_vm0, %v1767_v37, %v9365_v29  ;;  %v1896_v61 = vmax.f32 %v7491_v18, %v1864_v56  ;;  %v9366_v32 = vld [vmem:[#allocation35_spill] sm:$0xff]  ;;  %v9368_v33 = vld [vmem:[#allocation85_spill] sm:$0xff] }
 0x2c7   :  { %v1901_v8 = vmax.f32 %v7410_v30, %v1857_v27  ;;  %v1862_v5 = vsel %vm175_vm0, %v1770_v31, %v1772_v9  ;;  %v1868_v1 = vsel %vm175_vm0, %v1764_v52, %v1766_v0  ;;  %v9367_v36 = vmax.f32 %v9366_v32, 0.0  ;;  %v9370_v27 = vld [vmem:[#allocation47_spill] sm:$0xff] }
 0x2c8   :  { %v1956_v39 = vpack.c.bf16 %v1904_v45, %v1902_v43  ;;  %v1898_v30 = vmax.f32 %v7433_v34, %v1862_v5  ;;  %v1895_v18 = vmax.f32 %v7503_v46, %v1863_v63  ;;  %v1761_v56 = vrot.slane %v1697_v23, 1 }
 0x2c9   :  { %v7565_v10 = vmax.f32 %v9367_v36, %v5319_v28  ;;  %v1955_v20 = vpack.c.bf16 %v1903_v54, %v1901_v8  ;;  %v7570_v45 = vmax.f32 %v9368_v33, %v1595_v17  ;;  %v5324_v55 = vunpack.i.h.bf16 %v5322_v62 }
 0x2ca   :  { %2073 = vmatprep.subr.bf16.mxu1 %v1956_v39  ;;  %v1954_v9 = vpack.c.bf16 %v1900_v24, %v1898_v30  ;;  %v5323_v31 = vunpack.i.l.bf16 %v5322_v62  ;;  %v9369_v43 = vmov %v9365_v29  ;;  %v1866_v34 = vsel %vm175_vm0, %v1766_v0, %v1768_v12  ;;  %v9372_v62 = vld [vmem:[#allocation80_spill] sm:$0xff] }
 0x2cb   :  { %2074 = vmatpush1.bf16.msra.mxu1 %v1955_v20  ;;  %v1861_v54 = vsel %vm175_vm0, %v9369_v43, %v1771_v60  ;;  %v1867_v46 = vsel %vm175_vm0, %v1763_v58, %v1765_v21  ;;  %v1892_v28 = vmax.f32 %v7523_v44, %v1868_v1  ;;  %v9371_v29 = vmax.f32 %v9370_v27, 0.0 }
 0x2cc   :  { %v1897_v24 = vmax.f32 %v7436_v41, %v1861_v54  ;;  %v1758_v25 = vrot.slane %v7565_v10, 1  ;;  %2075 = vmatprep.subr.bf16.mxu1 %v1954_v9  ;;  %v1596_v17 = vsel %vm1592_vm4, %v5323_v31, %v5324_v55  ;;  %v1894_v60 = vmax.f32 %v7475_v15, %v1866_v34 }
 0x2cd   :  { %v1696_v63 = vmax.f32 %v9371_v29, %v5324_v55  ;;  %v1865_v0 = vsel %vm175_vm0, %v1765_v21, %v1767_v37  ;;  %v1757_v12 = vrot.slane %v7570_v45, 1  ;;  %v1695_v44 = vmax.f32 %v9372_v62, %v1596_v17  ;;  %v5327_v55 = vpop.permute.xlu1 %5326  ;;  %v9373_v29 = vld [vmem:[#allocation48_spill] sm:$0xff]  ;;  %v9375_v17 = vld [vmem:[#allocation81_spill] sm:$0xff] }
 0x2ce   :  { %v1953_v39 = vpack.c.bf16 %v1899_v16, %v1897_v24  ;;  %v1891_v5 = vmax.f32 %v7531_v57, %v1867_v46  ;;  %v1952_v1 = vpack.c.bf16 %v1896_v61, %v1894_v60  ;;  %v1893_v41 = vmax.f32 %v7500_v7, %v1865_v0 }
 0x2cf   :  { %v1760_v8 = vrot.slane %v1696_v63, 1  ;;  %v1870_v32 = vsel %vm175_vm0, %v1762_v53, %v1764_v52  ;;  %v1759_v36 = vrot.slane %v1695_v44, 1  ;;  %v1869_v21 = vsel %vm175_vm0, %v1761_v56, %v1763_v58 }
 0x2d0   :  { %2076 = vmatpush1.bf16.msra.mxu1 %v1953_v39  ;;  %v1890_v37 = vmax.f32 %v7517_v48, %v1870_v32  ;;  %v1951_v16 = vpack.c.bf16 %v1895_v18, %v1893_v41  ;;  %v1889_v57 = vmax.f32 %v1697_v23, %v1869_v21  ;;  %v5328_v9 = vunpack.i.l.bf16 %v5327_v55  ;;  %v9377_v39 = vld [vmem:[#allocation66_spill] sm:$0xff]  ;;  %v9379_v32 = vld [vmem:[#allocation51_spill] sm:$0xff] }
 0x2d1   :  { %v1872_v15 = vsel %vm175_vm0, %v1760_v8, %v1762_v53  ;;  %2077 = vmatprep.subr.bf16.mxu1 %v1952_v1  ;;  %v1874_v7 = vsel %vm175_vm0, %v1758_v25, %v1760_v8  ;;  %v1871_v52 = vsel %vm175_vm0, %v1759_v36, %v1761_v56  ;;  %v1873_v48 = vsel %vm175_vm0, %v1757_v12, %v1759_v36 }
 0x2d2   :  { %v1888_v20 = vmax.f32 %v1696_v63, %v1872_v15  ;;  %v1950_v53 = vpack.c.bf16 %v1892_v28, %v1890_v37  ;;  %v1886_v61 = vmax.f32 %v7565_v10, %v1874_v7  ;;  %v1887_v58 = vmax.f32 %v1695_v44, %v1871_v52 }
 0x2d3   :  { %v1949_v30 = vpack.c.bf16 %v1891_v5, %v1889_v57  ;;  %v1885_v23 = vmax.f32 %v7570_v45, %v1873_v48  ;;  %v5329_v56 = vunpack.i.h.bf16 %v5327_v55  ;;  %v9374_v63 = vmax.f32 %v9373_v29, 0.0 }
 0x2d4   :  { %2078 = vmatpush1.bf16.msra.mxu1 %v1951_v16  ;;  %v1948_v18 = vpack.c.bf16 %v1888_v20, %v1886_v61  ;;  %v9376_v8 = vmax.f32 %v7178_v19, 0.0  ;;  %v9378_v5 = vmax.f32 %v9377_v39, 0.0 }
 0x2d5   :  { %2079 = vmatprep.subr.bf16.mxu1 %v1950_v53  ;;  %v1947_v33 = vpack.c.bf16 %v1887_v58, %v1885_v23  ;;  %v1593_v31 = vsel %vm1592_vm4, %v5328_v9, %v5329_v56  ;;  %v7617_v24 = vmax.f32 %v9374_v63, %v5329_v56  ;;  %v9380_v58 = vld [vmem:[#allocation52_spill] sm:$0xff] }
 0x2d6   :  { %v7620_v60 = vmax.f32 %v9375_v17, %v1593_v31 }
 0x2d7   :  { %v1754_v52 = vrot.slane %v7617_v24, 1 }
 0x2d8   :  { %2080 = vmatpush1.bf16.msra.mxu1 %v1949_v30  ;;  %v1753_v53 = vrot.slane %v7620_v60, 1  ;;  %v9381_v30 = vmax.f32 %v9380_v58, 0.0 }
 0x2d9   :  { %2081 = vmatprep.subr.bf16.mxu1 %v1948_v18 }
 0x2dc   :  { %2082 = vmatpush1.bf16.msra.mxu1 %v1947_v33 }
 0x2dd   :  { %v5337_v43 = vpop.permute.xlu1 %5336  ;;  %v5332_v54 = vpop.permute.xlu0 %5331 }
 0x2de   :  { %v5339_v34 = vunpack.i.h.bf16 %v5337_v43  ;;  %v5338_v46 = vunpack.i.l.bf16 %v5337_v43  ;;  %v5334_v28 = vunpack.i.h.bf16 %v5332_v54  ;;  %v5333_v27 = vunpack.i.l.bf16 %v5332_v54 }
 0x2e0   :  { %v1623_v0 = vsel %vm1592_vm4, %v5338_v46, %v5339_v34  ;;  %v1692_v62 = vmax.f32 %v9376_v8, %v5334_v28  ;;  %v1594_v44 = vsel %vm1592_vm4, %v5333_v27, %v5334_v28  ;;  %v7628_v1 = vmax.f32 %v9378_v5, %v5339_v34  ;;  %v9382_v46 = vld [vmem:[#allocation53_spill] sm:$0xff] }
 0x2e1   :  { %v7631_v41 = vmax.f32 %v6918_v26, %v1623_v0  ;;  %v7634_v15 = vmax.f32 %v9379_v32, %v1594_v44  ;;  %v5342_v36 = vpop.permute.xlu1 %5341  ;;  %v5347_v37 = vpop.permute.xlu0 %5346  ;;  %v9383_v28 = vmax.f32 %v9382_v46, 0.0  ;;  %v9390_v46 = vld [vmem:[#allocation46_spill] sm:$0xff] }
 0x2e2   :  { %v1756_v21 = vrot.slane %v1692_v62, 1  ;;  %v5344_v20 = vunpack.i.h.bf16 %v5342_v36  ;;  %v5343_v16 = vunpack.i.l.bf16 %v5342_v36  ;;  %v5349_v57 = vunpack.i.h.bf16 %v5347_v37 }
 0x2e3   :  { %v1755_v19 = vrot.slane %v7634_v15, 1  ;;  %v5348_v7 = vunpack.i.l.bf16 %v5347_v37  ;;  %v1814_v61 = vrot.slane %v7628_v1, 1  ;;  %v1813_v26 = vrot.slane %v7631_v41, 1 }
 0x2e4   :  { %v1621_v48 = vsel %vm1592_vm4, %v5343_v16, %v5344_v20  ;;  %v7644_v23 = vmax.f32 %v9381_v30, %v5349_v57  ;;  %v1876_v55 = vsel %vm175_vm0, %v1756_v21, %v1758_v25  ;;  %v1878_v10 = vsel %vm175_vm0, %v1754_v52, %v1756_v21  ;;  %v9389_v30 = vld [vmem:[#allocation56_spill] sm:$0xff] }
 0x2e5   :  { %v5357_v18 = vpop.permute.xlu1 %5356  ;;  %v5352_v33 = vpop.permute.xlu0 %5351  ;;  %v1875_v56 = vsel %vm175_vm0, %v1755_v19, %v1757_v12  ;;  %v1624_v9 = vsel %vm1592_vm4, %v5348_v7, %v5349_v57  ;;  %v7663_v25 = vmax.f32 %v9383_v28, %v5344_v20  ;;  %v7666_v45 = vmax.f32 %v6937_v49, %v1621_v48  ;;  %v9386_v49 = vld [vmem:[#allocation39_spill] sm:$0xff]  ;;  %v9388_v48 = vld [vmem:[#allocation57_spill] sm:$0xff] }
 0x2e6   :  { %v5359_v31 = vunpack.i.h.bf16 %v5357_v18  ;;  %v1816_v43 = vrot.slane %v7644_v23, 1  ;;  %v7657_v54 = vmax.f32 %v6939_v13, %v1624_v9  ;;  %v5358_v34 = vunpack.i.l.bf16 %v5357_v18  ;;  %v9384_v13 = vld [vmem:[#allocation40_spill] sm:$0xff] }
 0x2e7   :  { %v5354_v12 = vunpack.i.h.bf16 %v5352_v33  ;;  %v5353_v27 = vunpack.i.l.bf16 %v5352_v33  ;;  %v1884_v29 = vmax.f32 %v1692_v62, %v1876_v55  ;;  %v1883_v63 = vmax.f32 %v7634_v15, %v1875_v56 }
 0x2e8   :  { %v1815_v17 = vrot.slane %v7657_v54, 1  ;;  %v9385_v0 = vmax.f32 %v9384_v13, 0.0  ;;  %v1880_v5 = vsel %vm175_vm0, %v1816_v43, %v1754_v52  ;;  %v1619_v32 = vsel %vm1592_vm4, %v5358_v34, %v5359_v31  ;;  %v9392_v13 = vld [vmem:[#allocation45_spill] sm:$0xff] }
 0x2e9   :  { %v5367_v44 = vpop.permute.xlu1 %5366  ;;  %v5362_v39 = vpop.permute.xlu0 %5361  ;;  %v9387_v36 = vmax.f32 %v9386_v49, 0.0  ;;  %v1882_v62 = vmax.f32 %v7617_v24, %v1878_v10  ;;  %v1622_v21 = vsel %vm1592_vm4, %v5353_v27, %v5354_v12  ;;  %v1810_v57 = vrot.slane %v7663_v25, 1 }
 0x2ea   :  { %v7672_v8 = vmax.f32 %v9385_v0, %v5359_v31  ;;  %v7684_v15 = vsel %vm175_vm0, %v1815_v17, %v1753_v53  ;;  %v5369_v20 = vunpack.i.h.bf16 %v5367_v44  ;;  %v5368_v16 = vunpack.i.l.bf16 %v5367_v44 }
 0x2eb   :  { %v7679_v37 = vmax.f32 %v9387_v36, %v5354_v12  ;;  %v1809_v7 = vrot.slane %v7666_v45, 1  ;;  %v7691_v58 = vmax.f32 %v9388_v48, %v1622_v21  ;;  %v7694_v18 = vmax.f32 %v9389_v30, %v1619_v32 }
 0x2ec   :  { %v5364_v24 = vunpack.i.h.bf16 %v5362_v39  ;;  %v5363_v33 = vunpack.i.l.bf16 %v5362_v39  ;;  %v1877_v55 = vsel %vm175_vm0, %v1753_v53, %v1755_v19  ;;  %v1944_v9 = vmax.f32 %v7644_v23, %v1880_v5 }
 0x2ed   :  { %v1812_v52 = vrot.slane %v7679_v37, 1  ;;  %v5377_v56 = vpop.permute.xlu1 %5376  ;;  %v1943_v31 = vmax.f32 %v7657_v54, %v7684_v15  ;;  %v1806_v34 = vrot.slane %v7672_v8, 1  ;;  %v1946_v10 = vpack.c.bf16 %v1884_v29, %v1882_v62  ;;  %v5372_v53 = vpop.permute.xlu0 %5371 }
 0x2ee   :  { %v9391_v28 = vmax.f32 %v9390_v46, 0.0  ;;  %v1617_v27 = vsel %vm1592_vm4, %v5368_v16, %v5369_v20  ;;  %v9393_v0 = vmax.f32 %v9392_v13, 0.0  ;;  %v1620_v19 = vsel %vm1592_vm4, %v5363_v33, %v5364_v24 }
 0x2ef   :  { %v7718_v23 = vsel %vm175_vm0, %v1812_v52, %v1814_v61  ;;  %v1811_v54 = vrot.slane %v7691_v58, 1  ;;  %v7722_v29 = vmax.f32 %v6947_v47, %v1620_v19  ;;  %2083 = vmatprep.subr.bf16.mxu1 %v1946_v10  ;;  %v1881_v39 = vmax.f32 %v7620_v60, %v1877_v55 }
 0x2f0   :  { %v7704_v12 = vmax.f32 %v9391_v28, %v5369_v20  ;;  %v7709_v44 = vmax.f32 %v9393_v0, %v5364_v24  ;;  %v1805_v5 = vrot.slane %v7694_v18, 1  ;;  %v5379_v49 = vunpack.i.h.bf16 %v5377_v56 }
 0x2f1   :  { %v5378_v36 = vunpack.i.l.bf16 %v5377_v56  ;;  %v1807_v62 = vrot.slane %v7722_v29, 1  ;;  %v1945_v15 = vpack.c.bf16 %v1883_v63, %v1881_v39  ;;  %v5374_v21 = vunpack.i.h.bf16 %v5372_v53  ;;  %v5387_v30 = vpop.permute.xlu1 %5386  ;;  %v5382_v28 = vpop.permute.xlu0 %5381 }
 0x2f2   :  { %v1808_v32 = vrot.slane %v7709_v44, 1  ;;  %v5373_v20 = vunpack.i.l.bf16 %v5372_v53  ;;  %v1940_v16 = vmax.f32 %v7679_v37, %v7718_v23  ;;  %v7731_v47 = vmax.f32 %v6957_v38, %v1617_v27 }
 0x2f3   :  { %v1615_v48 = vsel %vm1592_vm4, %v5378_v36, %v5379_v49  ;;  %v1818_v60 = vsel %vm175_vm0, %v1814_v61, %v1816_v43  ;;  %v1819_v63 = vsel %vm175_vm0, %v1811_v54, %v1813_v26  ;;  %v1802_v24 = vrot.slane %v7704_v12, 1  ;;  %2084 = vmatpush1.bf16.msra.mxu1 %v1945_v15 }
 0x2f4   :  { %v7749_v38 = vsel %vm175_vm0, %v1808_v32, %v1810_v57  ;;  %v9394_v33 = vmax.f32 %v7253_v35, 0.0  ;;  %v7761_v43 = vsel %vm175_vm0, %v1807_v62, %v1809_v7  ;;  %v9395_v55 = vmax.f32 %v7246_v22, 0.0 }
 0x2f5   :  { %v1618_v10 = vsel %vm1592_vm4, %v5373_v20, %v5374_v21  ;;  %v1942_v46 = vmax.f32 %v7628_v1, %v1818_v60  ;;  %v7770_v35 = vmax.f32 %v6955_v6, %v1615_v48  ;;  %v1817_v22 = vsel %vm175_vm0, %v1813_v26, %v1815_v17  ;;  %v5397_v17 = vpop.permute.xlu1 %5396 }
 0x2f6   :  { %v7753_v61 = vmax.f32 %v9394_v33, %v5374_v21  ;;  %v7765_v56 = vmax.f32 %v9395_v55, %v5379_v49  ;;  %v7774_v13 = vmax.f32 %v6945_v2, %v1618_v10  ;;  %v1941_v19 = vmax.f32 %v7631_v41, %v1817_v22 }
 0x2f7   :  { %v1976_v0 = vpack.c.bf16 %v1944_v9, %v1942_v46  ;;  %v5389_v53 = vunpack.i.h.bf16 %v5387_v30  ;;  %v5388_v23 = vunpack.i.l.bf16 %v5387_v30  ;;  %v1801_v1 = vrot.slane %v7731_v47, 1  ;;  %v5392_v30 = vpop.permute.xlu0 %5391 }
 0x2f8   :  { %v1804_v27 = vrot.slane %v7753_v61, 1  ;;  %v1803_v6 = vrot.slane %v7774_v13, 1  ;;  %v5384_v39 = vunpack.i.h.bf16 %v5382_v28  ;;  %v5383_v49 = vunpack.i.l.bf16 %v5382_v28 }
 0x2f9   :  { %v1939_v36 = vmax.f32 %v7691_v58, %v1819_v63  ;;  %v1936_v2 = vmax.f32 %v7709_v44, %v7749_v38  ;;  %v1935_v15 = vmax.f32 %v7722_v29, %v7761_v43  ;;  %2085 = vmatprep.subr.bf16.mxu1 %v1976_v0  ;;  %v1975_v26 = vpack.c.bf16 %v1943_v31, %v1941_v19 }
 0x2fa   :  { %v1798_v41 = vrot.slane %v7765_v56, 1  ;;  %v1797_v9 = vrot.slane %v7770_v35, 1  ;;  %v9396_v21 = vmax.f32 %v7275_v3, 0.0  ;;  %v1616_v48 = vsel %vm1592_vm4, %v5383_v49, %v5384_v39 }
 0x2fb   :  { %v7801_v58 = vsel %vm175_vm0, %v1804_v27, %v1806_v34  ;;  %2086 = vmatpush2.bf16.msra.mxu1 %v1975_v26  ;;  %v1613_v31 = vsel %vm1592_vm4, %v5388_v23, %v5389_v53  ;;  %v7805_v60 = vmax.f32 %v6964_v11, %v1616_v48  ;;  %v1822_v3 = vsel %vm175_vm0, %v1810_v57, %v1812_v52  ;;  %v5402_v26 = vpop.permute.xlu0 %5401 }
 0x2fc   :  { %v7792_v20 = vmax.f32 %v9396_v21, %v5384_v39  ;;  %v7819_v63 = vsel %vm175_vm0, %v1803_v6, %v1805_v5  ;;  %v1938_v11 = vmax.f32 %v7663_v25, %v1822_v3  ;;  %v1821_v37 = vsel %vm175_vm0, %v1809_v7, %v1811_v54 }
 0x2fd   :  { %v1799_v57 = vrot.slane %v7805_v60, 1  ;;  %v1937_v52 = vmax.f32 %v7666_v45, %v1821_v37  ;;  %v5399_v33 = vunpack.i.h.bf16 %v5397_v17  ;;  %v5398_v43 = vunpack.i.l.bf16 %v5397_v17  ;;  %v5407_v45 = vpop.permute.xlu1 %5406 }
 0x2fe   :  { %v1800_v38 = vrot.slane %v7792_v20, 1  ;;  %v1932_v55 = vmax.f32 %v7753_v61, %v7801_v58  ;;  %v1974_v10 = vpack.c.bf16 %v1940_v16, %v1938_v11  ;;  %v5394_v46 = vunpack.i.h.bf16 %v5392_v30 }
 0x2ff   :  { %v5393_v28 = vunpack.i.l.bf16 %v5392_v30  ;;  %v1931_v25 = vmax.f32 %v7774_v13, %v7819_v63  ;;  %v9397_v22 = vmax.f32 %v7268_v51, 0.0  ;;  %v7838_v7 = vmax.f32 %v6974_v40, %v1613_v31 }
 0x300   :  { %v1973_v54 = vpack.c.bf16 %v1939_v36, %v1937_v52  ;;  %v1832_v19 = vsel %vm175_vm0, %v1800_v38, %v1802_v24  ;;  %v7850_v16 = vsel %vm175_vm0, %v1799_v57, %v1801_v1  ;;  %2087 = vmatprep.subr.bf16.mxu1 %v1974_v10  ;;  %v9398_v51 = vmax.f32 %v7300_v14, 0.0  ;;  %v9403_v52 = vld [vmem:[#allocation62_spill] sm:$0xff] }
 0x301   :  { %v7835_v0 = vmax.f32 %v9397_v22, %v5389_v53  ;;  %v1614_v53 = vsel %vm1592_vm4, %v5393_v28, %v5394_v46  ;;  %v9399_v23 = vmax.f32 %v7293_v59, 0.0  ;;  %v1611_v49 = vsel %vm1592_vm4, %v5398_v43, %v5399_v33 }
 0x302   :  { %v7854_v40 = vmax.f32 %v9398_v51, %v5394_v46  ;;  %2088 = vmatpush2.bf16.msra.mxu1 %v1973_v54  ;;  %v7863_v36 = vmax.f32 %v6962_v42, %v1614_v53  ;;  %v1826_v14 = vsel %vm175_vm0, %v1806_v34, %v1808_v32  ;;  %v1825_v42 = vsel %vm175_vm0, %v1805_v5, %v1807_v62  ;;  %v9400_v32 = vld [vmem:[#allocation61_spill] sm:$0xff]  ;;  %v9406_v51 = vld [vmem:[#allocation28_spill] sm:$0xff] }
 0x303   :  { %v7859_v39 = vmax.f32 %v9399_v23, %v5399_v33  ;;  %v1934_v21 = vmax.f32 %v7672_v8, %v1826_v14  ;;  %v5409_v59 = vunpack.i.h.bf16 %v5407_v45  ;;  %v1794_v44 = vrot.slane %v7835_v0, 1 }
 0x304   :  { %v1796_v17 = vrot.slane %v7854_v40, 1  ;;  %v1793_v48 = vrot.slane %v7838_v7, 1  ;;  %v1795_v58 = vrot.slane %v7863_v36, 1  ;;  %v1933_v34 = vmax.f32 %v7694_v18, %v1825_v42 }
 0x305   :  { %v7884_v31 = vmax.f32 %v9400_v32, %v1611_v49  ;;  %v1972_v8 = vpack.c.bf16 %v1936_v2, %v1934_v21  ;;  %v5408_v3 = vunpack.i.l.bf16 %v5407_v45  ;;  %v5404_v29 = vunpack.i.h.bf16 %v5402_v26  ;;  %v9401_v2 = vld [vmem:[#allocation63_spill] sm:$0xff] }
 0x306   :  { %v1928_v30 = vmax.f32 %v7792_v20, %v1832_v19  ;;  %v1927_v5 = vmax.f32 %v7805_v60, %v7850_v16  ;;  %v1790_v62 = vrot.slane %v7859_v39, 1  ;;  %v1971_v63 = vpack.c.bf16 %v1935_v15, %v1933_v34  ;;  %v9405_v16 = vld [vmem:[#allocation60_spill] sm:$0xff] }
 0x307   :  { %v1836_v11 = vsel %vm175_vm0, %v1796_v17, %v1798_v41  ;;  %v1835_v18 = vsel %vm175_vm0, %v1795_v58, %v1797_v9  ;;  %2089 = vmatprep.subr.bf16.mxu1 %v1972_v8  ;;  %v9402_v37 = vmax.f32 %v9401_v2, 0.0  ;;  %v9404_v33 = vmax.f32 %v9403_v52, 0.0  ;;  %v5541_v2 = vld [vmem:[%s9065_s3 + $0x14] ss:$8 sps:$4 sm:$0xff]   ;;  %v5543_v52 = vld [vmem:[%s9065_s3 + $0x10] ss:$8 sps:$4 sm:$0xff]  }
 0x308   :  { %2090 = vmatpush2.bf16.msra.mxu1 %v1971_v63  ;;  %v5403_v10 = vunpack.i.l.bf16 %v5402_v26  ;;  %v1830_v15 = vsel %vm175_vm0, %v1802_v24, %v1804_v27  ;;  %v1829_v46 = vsel %vm175_vm0, %v1801_v1, %v1803_v6  ;;  %v1834_v28 = vsel %vm175_vm0, %v1798_v41, %v1800_v38 }
 0x309   :  { %v1724_v20 = vmax.f32 %v9402_v37, %v5409_v59  ;;  %v1728_v43 = vmax.f32 %v9404_v33, %v5404_v29  ;;  %v1789_v22 = vrot.slane %v7884_v31, 1  ;;  %v1610_v61 = vsel %vm1592_vm4, %v5408_v3, %v5409_v59  ;;  %v5561_v37 = vld [vmem:[#allocation4 + $0x38] sm:$0xff]   ;;  %v5544_v33 = vld [vmem:[%s9065_s3 + $0x24] ss:$8 sps:$4 sm:$0xff]  }
 0x30a   :  { %v1930_v45 = vmax.f32 %v7704_v12, %v1830_v15  ;;  %v1924_v24 = vmax.f32 %v7854_v40, %v1836_v11  ;;  %v1612_v27 = vsel %vm1592_vm4, %v5403_v10, %v5404_v29  ;;  %v1929_v13 = vmax.f32 %v7731_v47, %v1829_v46  ;;  %v5564_v10 = vld [vmem:[#allocation4 + $0x20] sm:$0xff]   ;;  %v5547_v46 = vld [vmem:[%s9065_s3 + $0x34] ss:$8 sps:$4 sm:$0xff]  }
 0x30b   :  { %v1792_v54 = vrot.slane %v1728_v43, 1  ;;  %v1926_v1 = vmax.f32 %v7765_v56, %v1834_v28  ;;  %v1923_v6 = vmax.f32 %v7863_v36, %v1835_v18  ;;  %v1788_v19 = vrot.slane %v1724_v20, 1  ;;  %v5538_v18 = vld [vmem:[%s9065_s3] ss:$8 sps:$4 sm:$0xff]   ;;  %v5565_v28 = vld [vmem:[#allocation4 + $0x18] sm:$0xff]  }
 0x30c   :  { %v1727_v41 = vmax.f32 %v9405_v16, %v1612_v27  ;;  %v1970_v38 = vpack.c.bf16 %v1932_v55, %v1930_v45  ;;  %v1723_v53 = vmax.f32 %v9406_v51, %v1610_v61  ;;  %v1969_v12 = vpack.c.bf16 %v1931_v25, %v1929_v13  ;;  %v5546_v15 = vld [vmem:[%s9065_s3 + $0x20] ss:$8 sps:$4 sm:$0xff]   ;;  %v5549_v61 = vld [vmem:[%s9065_s3 + $0x30] ss:$8 sps:$4 sm:$0xff]  }
 0x30d   :  { %v1840_v23 = vsel %vm175_vm0, %v1792_v54, %v1794_v44  ;;  %v1968_v49 = vpack.c.bf16 %v1928_v30, %v1926_v1  ;;  %v1833_v47 = vsel %vm175_vm0, %v1797_v9, %v1799_v57  ;;  %v1838_v56 = vsel %vm175_vm0, %v1794_v44, %v1796_v17  ;;  %v5567_v45 = vld [vmem:[#allocation4 + $0x8] sm:$0xff]   ;;  %v5569_v27 = vld [vmem:[#allocation4 + $0x58] ss:$0 sps:$4 sm:$0x33]   ;;  %v5553_v1 = vld [vmem:[%s9065_s3 + $0x54] ss:$8 sps:$4 sm:$0xff]  }
 0x30e   :  { %v1791_v40 = vrot.slane %v1727_v41, 1  ;;  %2091 = vmatprep.subr.bf16.mxu1 %v1970_v38  ;;  %v1837_v55 = vsel %vm175_vm0, %v1793_v48, %v1795_v58  ;;  %v1925_v36 = vmax.f32 %v7770_v35, %v1833_v47  ;;  %v1922_v25 = vmax.f32 %v7835_v0, %v1838_v56  ;;  %v9407_v58 = vld [vmem:[#allocation42_spill] sm:$0xff]  ;;  %v5552_v13 = vld [vmem:[%s9065_s3 + $0x40] ss:$8 sps:$4 sm:$0xff]   ;;  %v5578_v56 = vld [vmem:[%s9067_s5 + $0xa4] ss:$8 sps:$4 sm:$0xff]  }
 0x30f   :  { %2092 = vmatpush2.bf16.msra.mxu1 %v1969_v12  ;;  %v1921_v14 = vmax.f32 %v7838_v7, %v1837_v55  ;;  %v1842_v60 = vsel %vm175_vm0, %v1790_v62, %v1792_v54  ;;  %v1920_v26 = vmax.f32 %v1728_v43, %v1840_v23  ;;  %v1787_v35 = vrot.slane %v1723_v53, 1  ;;  %v5563_v43 = vld [vmem:[#allocation4 + $0x28] sm:$0xff]   ;;  %v5555_v16 = vld [vmem:[%s9065_s3 + $0x50] ss:$8 sps:$4 sm:$0xff]  }
 0x310   :  { %v1839_v9 = vsel %vm175_vm0, %v1791_v40, %v1793_v48  ;;  %2093 = vmatprep.subr.bf16.mxu1 %v1968_v49  ;;  %v1918_v57 = vmax.f32 %v7859_v39, %v1842_v60  ;;  %v1841_v17 = vsel %vm175_vm0, %v1789_v22, %v1791_v40  ;;  %v1967_v21 = vpack.c.bf16 %v1927_v5, %v1925_v36  ;;  %v5550_v54 = vld [vmem:[%s9065_s3 + $0x44] ss:$8 sps:$4 sm:$0xff]   ;;  %v1991_v38 = vld [vmem:[%s9065_s3 + $0x70] sm:$0xff]  ;;  %v5558_v51 = vld [vmem:[%s9065_s3 + $0x60] ss:$8 sps:$4 sm:$0xff]  }
 0x311   :  { %v1966_v42 = vpack.c.bf16 %v1924_v24, %v1922_v25  ;;  %v1844_v0 = vsel %vm175_vm0, %v1788_v19, %v1790_v62  ;;  %v1919_v7 = vmax.f32 %v1727_v41, %v1839_v9  ;;  %v1965_v59 = vpack.c.bf16 %v1923_v6, %v1921_v14  ;;  %v5568_v24 = vld [vmem:[#allocation4] sm:$0xff]   ;;  %v5571_v12 = vld [vmem:[#allocation4 + $0x48] sm:$0xff]   ;;  %v5573_v40 = vld [vmem:[%s9067_s5 + $0xb4] ss:$8 sps:$4 sm:$0x1f]  }
 0x312   :  { %v1917_v44 = vmax.f32 %v7884_v31, %v1841_v17  ;;  %v9408_v34 = vrot.slane %v9407_v58, 1  ;;  %v1964_v39 = vpack.c.bf16 %v1920_v26, %v1918_v57  ;;  %v1843_v32 = vsel %vm175_vm0, %v1787_v35, %v1789_v22  ;;  %v5566_v22 = vld [vmem:[#allocation4 + $0x10] sm:$0xff]   ;;  %v5556_v41 = vld [vmem:[%s9065_s3 + $0x64] ss:$8 sps:$4 sm:$0xff]   ;;  %4932 = vmatprep.subr.msk.bf16.mxu0 %vm2567_vm6, %v5573_v40  ;;  %v5576_v25 = vld [vmem:[%s9067_s5 + $0xa0] ss:$8 sps:$4 sm:$0xff]  }
 0x313   :  { %2094 = vmatpush2.bf16.msra.mxu1 %v1967_v21  ;;  %v1916_v8 = vmax.f32 %v1724_v20, %v1844_v0  ;;  %v9409_v29 = vrot.slane %v7380_v50, 1  ;;  %v1915_v5 = vmax.f32 %v1723_v53, %v1843_v32  ;;  %v9410_v20 = vmov 0   ;;  %v5572_v49 = vld [vmem:[#allocation4 + $0x40] sm:$0xff]   ;;  %v5575_v47 = vld [vmem:[%s9067_s5 + $0xb0] ss:$8 sps:$4 sm:$0x1f]  }
 0x314   :  { %v1846_v48 = vsel %vm175_vm0, %v9408_v34, %v1788_v19  ;;  %2095 = vmatprep.subr.bf16.mxu1 %v1966_v42  ;;  %v1963_v31 = vpack.c.bf16 %v1919_v7, %v1917_v44  ;;  %v2315_v6 = vsel %vm2313_vm5, %v5569_v27, 0  ;;  %v5570_v19 = vld [vmem:[#allocation4 + $0x50] sm:$0xff]   ;;  %v4887_v53 = vcombine.high %v1991_v38, %v1991_v38  ;;  %v5587_v26 = vld [vmem:[%s9067_s5 + $0x84] ss:$8 sps:$4 sm:$0xff]   ;;  %v5585_v9 = vld [vmem:[%s9067_s5 + $0x80] ss:$8 sps:$4 sm:$0xff]  }
 0x315   :  { %v1914_v3 = vmax.f32 %v9407_v58, %v1846_v48  ;;  %v1845_v30 = vsel %vm175_vm0, %v9409_v29, %v1787_v35  ;;  %v4886_v23 = vcombine.low %v1991_v38, %v1991_v38  ;;  %v2569_v55 = vsel %vm2567_vm6, %v5575_v47, 0  ;;  %v5582_v36 = vld [vmem:[%s9067_s5 + $0x54] ss:$8 sps:$4 sm:$0x1f]   ;;  %v5579_v60 = vld [vmem:[%s9067_s5 + $0x90] ss:$8 sps:$4 sm:$0xff]  }
 0x316   :  { %v1913_v62 = vmax.f32 %v7380_v50, %v1845_v30  ;;  %v5562_v50 = vld [vmem:[#allocation4 + $0x30] sm:$0xff]   ;;  %2579 = vmatpush1.bf16.msra.mxu0 %v2569_v55  ;;  %v5590_v58 = vld [vmem:[%s9067_s5 + $0x44] ss:$8 sps:$4 sm:$0xff]   ;;  %v5588_v48 = vld [vmem:[%s9067_s5 + $0x40] ss:$8 sps:$4 sm:$0xff]  }
 0x317   :  { %2096 = vmatpush2.bf16.msra.mxu1 %v1965_v59  ;;  %v1962_v63 = vpack.c.bf16 %v1916_v8, %v1914_v3  ;;  %2580 = vmatprep.subr.bf16.mxu0 %v5578_v56  ;;  %v5581_v14 = vld [vmem:[%s9067_s5 + $0x94] ss:$8 sps:$4 sm:$0xff]   ;;  %v5584_v42 = vld [vmem:[%s9067_s5 + $0x50] ss:$8 sps:$4 sm:$0x1f]  }
 0x318   :  { %2097 = vmatprep.subr.bf16.mxu1 %v1964_v39  ;;  %v1961_v11 = vpack.c.bf16 %v1915_v5, %v1913_v62  ;;  %v2768_v44 = vsel %vm2567_vm6, %v5584_v42, 0  ;;  %v5593_v32 = vld [vmem:[%s9067_s5 + $0x34] ss:$8 sps:$4 sm:$0xff]   ;;  %v5591_v29 = vld [vmem:[%s9067_s5 + $0x30] ss:$8 sps:$4 sm:$0xff]  }
 0x319   :  { %v5596_v5 = vld [vmem:[%s9067_s5 + $0x24] ss:$8 sps:$4 sm:$0xff]  }
 0x31a   :  { %2581 = vmatpush1.bf16.msra.mxu0 %v5576_v25 }
 0x31b   :  { %2098 = vmatpush2.bf16.msra.mxu1 %v1963_v31  ;;  %2582 = vmatprep.subr.bf16.mxu0 %v5581_v14  ;;  %v5602_v14 = vld [vmem:[%s9067_s5 + $0x4] ss:$8 sps:$4 sm:$0xff]  }
 0x31c   :  { %2099 = vmatprep.subr.bf16.mxu1 %v1962_v63  ;;  %v5594_v63 = vld [vmem:[%s9067_s5 + $0x20] ss:$8 sps:$4 sm:$0xff]  }
 0x31e   :  { %2583 = vmatpush1.bf16.msra.mxu0 %v5579_v60  ;;  %v5600_v60 = vld [vmem:[%s9067_s5] ss:$8 sps:$4 sm:$0xff]  }
 0x31f   :  { %2100 = vmatpush2.bf16.msra.mxu1 %v1961_v11  ;;  %2584 = vmatprep.subr.bf16.mxu0 %v5587_v26  ;;  %v5605_v26 = vld [vmem:[%s9067_s5 + $0x74] ss:$8 sps:$4 sm:$0xff]  }
 0x320   :  { %2317 = vmatprep.subr.bf16.mxu1 %v9410_v20 }
 0x322   :  { %2102 = vmatmul.mubr.bf16.vlgmr.msra.gmra.mxu1 %v5538_v18  ;;  %2585 = vmatpush1.bf16.msra.mxu0 %v5585_v9  ;;  %v5599_v18 = vld [vmem:[%s9067_s5 + $0x14] ss:$8 sps:$4 sm:$0xff]   ;;  %v5603_v9 = vld [vmem:[%s9067_s5 + $0x70] ss:$8 sps:$4 sm:$0xff]  }
 0x323   :  { %2111 = vmatprep.mubr.bf16.mxu1 %v5541_v2  ;;  %2318 = vmatpush1.bf16.msra.mxu1 %v5561_v37 }
 0x324   :  { %2319 = vmatprep.subr.bf16.mxu1 %v9410_v20  ;;  %2586 = vmatprep.subr.bf16.mxu0 %v5605_v26 }
 0x326   :  { %2587 = vmatpush1.bf16.msra.mxu0 %v5603_v9 }
 0x327   :  { %2320 = vmatpush1.bf16.msra.mxu1 %v5562_v50  ;;  %v5597_v50 = vld [vmem:[%s9067_s5 + $0x10] ss:$8 sps:$4 sm:$0xff]  }
 0x328   :  { %2321 = vmatprep.subr.bf16.mxu1 %v9410_v20 }
 0x32a   :  { %2112 = vmatmul.mubr.bf16.gmra.mxu1 %v5543_v52 }
 0x32b   :  { %2121 = vmatprep.mubr.bf16.mxu1 %v5544_v33  ;;  %2322 = vmatpush1.bf16.msra.mxu1 %v5563_v43 }
 0x32c   :  { %2323 = vmatprep.subr.bf16.mxu1 %v9410_v20 }
 0x32f   :  { %2324 = vmatpush1.bf16.msra.mxu1 %v5564_v10 }
 0x330   :  { %2325 = vmatprep.subr.bf16.mxu1 %v9410_v20 }
 0x332   :  { %2122 = vmatmul.mubr.bf16.gmra.mxu1 %v5546_v15 }
 0x333   :  { %2131 = vmatprep.mubr.bf16.mxu1 %v5547_v46  ;;  %2326 = vmatpush1.bf16.msra.mxu1 %v5565_v28 }
 0x334   :  { %2327 = vmatprep.subr.bf16.mxu1 %v9410_v20 }
 0x337   :  { %2328 = vmatpush1.bf16.msra.mxu1 %v5566_v22 }
 0x338   :  { %2329 = vmatprep.subr.bf16.mxu1 %v9410_v20 }
 0x33a   :  { %2132 = vmatmul.mubr.bf16.gmra.mxu1 %v5549_v61 }
 0x33b   :  { %2141 = vmatprep.mubr.bf16.mxu1 %v5550_v54  ;;  %2330 = vmatpush1.bf16.msra.mxu1 %v5567_v45 }
 0x33c   :  { %2331 = vmatprep.subr.bf16.mxu1 %v9410_v20 }
 0x33f   :  { %2332 = vmatpush1.bf16.msra.mxu1 %v5568_v24 }
 0x340   :  { %2341 = vmatprep.subr.bf16.mxu1 %v9410_v20 }
 0x342   :  { %2142 = vmatmul.mubr.bf16.gmra.mxu1 %v5552_v13 }
 0x343   :  { %2151 = vmatprep.mubr.bf16.mxu1 %v5553_v1  ;;  %2342 = vmatpush2.bf16.msra.mxu1 %v2315_v6 }
 0x344   :  { %2343 = vmatprep.subr.bf16.mxu1 %v9410_v20 }
 0x347   :  { %2344 = vmatpush2.bf16.msra.mxu1 %v5570_v19 }
 0x348   :  { %2345 = vmatprep.subr.bf16.mxu1 %v9410_v20 }
 0x34a   :  { %2152 = vmatmul.mubr.bf16.gmra.mxu1 %v5555_v16 }
 0x34b   :  { %2161 = vmatprep.mubr.bf16.mxu1 %v5556_v41  ;;  %2346 = vmatpush2.bf16.msra.mxu1 %v5571_v12 }
 0x34c   :  { %2347 = vmatprep.subr.bf16.mxu1 %v9410_v20 }
 0x34f   :  { %2348 = vmatpush2.bf16.msra.mxu1 %v5572_v49 }
 0x350   :  { %4953 = vmatprep.subr.msk.bf16.mxu1 %vm2567_vm6, %v5582_v36 }
 0x352   :  { %2162 = vmatmul.mubr.bf16.gmra.mxu1 %v5558_v51 }
 0x353   :  { %2171 = vmatprep.mubr.bf16.mxu1 %v4887_v53 }
 0x35a   :  { %2172 = vmatmul.mubr.bf16.gmra.mxu1 %v4886_v23 }
 0x3e2   :  { %v2103_v57 = vpop.f32.mrf.mxu1 }
 0x3e4   :  { %v2105_v17 = vpop.f32.mrf.mxu1 }
 0x3e6   :  { %v2107_v21 = vpop.f32.mrf.mxu1 }
 0x3e7   :  { %v2180_v7 = vpack.c.bf16 %v2107_v21, %v2103_v57  ;;  %v5608_v57 = vld [vmem:[%s9067_s5 + $0x64] ss:$8 sps:$4 sm:$0xff]   ;;  %v5609_v21 = vld [vmem:[%s9067_s5 + $0x114] ss:$8 sps:$4 sm:$0x1f]  }
 0x3e8   :  { %v2109_v35 = vpop.f32.mrf.mxu1  ;;  %2588 = vmatprep.subr.bf16.mxu0 %v5608_v57  ;;  %v5621_v57 = vld [vmem:[%s9067_s5 + $0xd0] ss:$8 sps:$4 sm:$0xff]  }
 0x3e9   :  { %v2181_v0 = vpack.c.bf16 %v2109_v35, %v2105_v17  ;;  %v5606_v17 = vld [vmem:[%s9067_s5 + $0x60] ss:$8 sps:$4 sm:$0xff]  }
 0x3ea   :  { %v2113_v59 = vpop.f32.mrf.mxu1  ;;  %2589 = vmatpush1.bf16.msra.mxu0 %v5606_v17 }
 0x3eb   :  { %4900 = vmatprep.mubr.msk.bf16.mxu1 %vm2288_vm7, %v2181_v0  ;;  %4986 = vmatprep.subr.msk.bf16.mxu0 %vm2567_vm6, %v5609_v21 }
 0x3ec   :  { %v2115_v34 = vpop.f32.mrf.mxu1  ;;  %2350 = vmatmul.mubr.bf16.vlgmr.msra.gmra.mxu1 %v2180_v7 }
 0x3ed   :  { %2778 = vmatpush1.bf16.msra.mxu1 %v2768_v44 }
 0x3ee   :  { %v2117_v39 = vpop.f32.mrf.mxu1  ;;  %2779 = vmatprep.subr.bf16.mxu1 %v5590_v58 }
 0x3ef   :  { %v2182_v30 = vpack.c.bf16 %v2117_v39, %v2113_v59 }
 0x3f0   :  { %v2119_v8 = vpop.f32.mrf.mxu1 }
 0x3f1   :  { %v2183_v3 = vpack.c.bf16 %v2119_v8, %v2115_v34  ;;  %2780 = vmatpush1.bf16.msra.mxu1 %v5588_v48 }
 0x3f2   :  { %v2123_v31 = vpop.f32.mrf.mxu1  ;;  %2781 = vmatprep.subr.bf16.mxu1 %v5593_v32 }
 0x3f3   :  { %4901 = vmatprep.mubr.msk.bf16.mxu1 %vm2288_vm7, %v2183_v3 }
 0x3f4   :  { %v2125_v62 = vpop.f32.mrf.mxu1  ;;  %2358 = vmatmul.mubr.bf16.gmra.mxu1 %v2182_v30 }
 0x3f5   :  { %2782 = vmatpush1.bf16.msra.mxu1 %v5591_v29  ;;  %v5611_v29 = vld [vmem:[%s9067_s5 + $0x110] ss:$8 sps:$4 sm:$0x1f]  }
 0x3f6   :  { %v2127_v11 = vpop.f32.mrf.mxu1  ;;  %2783 = vmatprep.subr.bf16.mxu1 %v5596_v5 }
 0x3f7   :  { %v2184_v52 = vpack.c.bf16 %v2127_v11, %v2123_v31 }
 0x3f8   :  { %v2129_v2 = vpop.f32.mrf.mxu1 }
 0x3f9   :  { %v2185_v37 = vpack.c.bf16 %v2129_v2, %v2125_v62  ;;  %2784 = vmatpush1.bf16.msra.mxu1 %v5594_v63 }
 0x3fa   :  { %v2133_v33 = vpop.f32.mrf.mxu1  ;;  %2785 = vmatprep.subr.bf16.mxu1 %v5599_v18 }
 0x3fb   :  { %4902 = vmatprep.mubr.msk.bf16.mxu1 %vm2288_vm7, %v2185_v37 }
 0x3fc   :  { %v2135_v43 = vpop.f32.mrf.mxu1  ;;  %2366 = vmatmul.mubr.bf16.gmra.mxu1 %v2184_v52  ;;  %v5614_v52 = vld [vmem:[%s9067_s5 + $0x104] ss:$8 sps:$4 sm:$0xff]  }
 0x3fd   :  { %2786 = vmatpush1.bf16.msra.mxu1 %v5597_v50  ;;  %v3018_v50 = vsel %vm2567_vm6, %v5611_v29, 0 }
 0x3fe   :  { %v2137_v10 = vpop.f32.mrf.mxu1  ;;  %2787 = vmatprep.subr.bf16.mxu1 %v5602_v14 }
 0x3ff   :  { %v2186_v28 = vpack.c.bf16 %v2137_v10, %v2133_v33 }
 0x400   :  { %v2139_v15 = vpop.f32.mrf.mxu1 }
 0x401   :  { %v2187_v46 = vpack.c.bf16 %v2139_v15, %v2135_v43  ;;  %2788 = vmatpush1.bf16.msra.mxu1 %v5600_v60 }
 0x402   :  { %v2143_v22 = vpop.f32.mrf.mxu1 }
 0x403   :  { %4903 = vmatprep.mubr.msk.bf16.mxu1 %vm2288_vm7, %v2187_v46  ;;  %v5612_v46 = vld [vmem:[%s9067_s5 + $0x100] ss:$8 sps:$4 sm:$0xff]  }
 0x404   :  { %v2145_v61 = vpop.f32.mrf.mxu1  ;;  %2374 = vmatmul.mubr.bf16.gmra.mxu1 %v2186_v28 }
 0x406   :  { %v2147_v54 = vpop.f32.mrf.mxu1 }
 0x407   :  { %v2188_v27 = vpack.c.bf16 %v2147_v54, %v2143_v22 }
 0x408   :  { %v2149_v45 = vpop.f32.mrf.mxu1 }
 0x409   :  { %v2189_v24 = vpack.c.bf16 %v2149_v45, %v2145_v61  ;;  %v5617_v61 = vld [vmem:[%s9067_s5 + $0xf4] ss:$8 sps:$4 sm:$0xff]  }
 0x40a   :  { %v2153_v13 = vpop.f32.mrf.mxu1 }
 0x40b   :  { %4904 = vmatprep.mubr.msk.bf16.mxu1 %vm2288_vm7, %v2189_v24 }
 0x40c   :  { %v2155_v1 = vpop.f32.mrf.mxu1  ;;  %2382 = vmatmul.mubr.bf16.gmra.mxu1 %v2188_v27 }
 0x40e   :  { %v2157_v6 = vpop.f32.mrf.mxu1 }
 0x40f   :  { %v2190_v41 = vpack.c.bf16 %v2157_v6, %v2153_v13 }
 0x410   :  { %v2159_v19 = vpop.f32.mrf.mxu1 }
 0x411   :  { %v2191_v16 = vpack.c.bf16 %v2159_v19, %v2155_v1  ;;  %v5615_v19 = vld [vmem:[%s9067_s5 + $0xf0] ss:$8 sps:$4 sm:$0xff]  }
 0x412   :  { %v2163_v38 = vpop.f32.mrf.mxu1 }
 0x413   :  { %4905 = vmatprep.mubr.msk.bf16.mxu1 %vm2288_vm7, %v2191_v16 }
 0x414   :  { %v2165_v51 = vpop.f32.mrf.mxu1  ;;  %2390 = vmatmul.mubr.bf16.gmra.mxu1 %v2190_v41 }
 0x416   :  { %v2167_v53 = vpop.f32.mrf.mxu1 }
 0x417   :  { %v2192_v49 = vpack.c.bf16 %v2167_v53, %v2163_v38  ;;  %v5620_v38 = vld [vmem:[%s9067_s5 + $0xe4] ss:$8 sps:$4 sm:$0xff]  }
 0x418   :  { %v2169_v23 = vpop.f32.mrf.mxu1 }
 0x419   :  { %v2193_v12 = vpack.c.bf16 %v2169_v23, %v2165_v51 }
 0x41a   :  { %v2173_v40 = vpop.f32.mrf.mxu1 }
 0x41b   :  { %4906 = vmatprep.mubr.msk.bf16.mxu1 %vm2288_vm7, %v2193_v12  ;;  %v2194_v25 = vpack.c.bf16 %v2173_v40, %v2173_v40 }
 0x41c   :  { %2398 = vmatmul.mubr.bf16.gmra.mxu1 %v2192_v49  ;;  %v2175_v47 = vpop.f32.mrf.mxu1  ;;  %v5618_v49 = vld [vmem:[%s9067_s5 + $0xe0] ss:$8 sps:$4 sm:$0xff]  }
 0x41d   :  { %v2195_v56 = vpack.c.bf16 %v2175_v47, %v2175_v47 }
 0x41e   :  { %v2177_v55 = vpop.f32.mrf.mxu1 }
 0x41f   :  { %4907 = vmatprep.mubr.msk.bf16.mxu1 %vm2288_vm7, %v2195_v56  ;;  %v5623_v56 = vld [vmem:[%s9067_s5 + $0xd4] ss:$8 sps:$4 sm:$0xff]  }
 0x420   :  { %v2178_v36 = vpop.f32.mrf.mxu1 }
 0x424   :  { %2406 = vmatmul.mubr.bf16.gmra.mxu1 %v2194_v25 }
 0x425   :  { %2805 = vmatprep.mubr.bf16.mxu1 %v9410_v20 }
 0x4ac   :  { %v8109_v42 = vpop.f32.mrf.mxu1 }
 0x4ad   :  { %v2884_v7 = vrot.slane %v8109_v42, 2  ;;  %v2433_v32 = vrot.slane %v8109_v42, 1 }
 0x4ae   :  { %v2353_v35 = vpop.f32.mrf.mxu1 }
 0x4af   :  { %v5626_v35 = vld [vmem:[%s9067_s5 + $0xc4] ss:$8 sps:$4 sm:$0xff]  }
 0x4b0   :  { %v2354_v0 = vpop.f32.mrf.mxu1 }
 0x4b1   :  { %v2413_v59 = vpack.c.bf16 %v2354_v0, %v8109_v42  ;;  %v2885_v44 = vrot.slane %v2354_v0, 2  ;;  %v2434_v34 = vrot.slane %v2354_v0, 1 }
 0x4b2   :  { %v2356_v58 = vpop.f32.mrf.mxu1 }
 0x4b3   :  { %v8117_v48 = vsel %vm784_vm2, %v2884_v7, %v2885_v44  ;;  %4954 = vmatmul.mubr.msk.bf16.vlgmr.msra.gmra.mxu1 %vm2542_vm8, %v2413_v59  ;;  %v2461_v31 = vsel %vm175_vm0, %v2433_v32, %v2434_v34 }
 0x4b4   :  { %v2359_v39 = vpop.f32.mrf.mxu1  ;;  %2815 = vmatprep.mubr.bf16.mxu1 %v9410_v20 }
 0x4b5   :  { %v2435_v8 = vrot.slane %v2359_v39, 1  ;;  %v2886_v3 = vrot.slane %v2359_v39, 2 }
 0x4b6   :  { %v2361_v30 = vpop.f32.mrf.mxu1 }
 0x4b7   :  { %v2460_v5 = vsel %vm175_vm0, %v2434_v34, %v2435_v8  ;;  %v8133_v62 = vsel %vm784_vm2, %v2885_v44, %v2886_v3  ;;  %v5624_v34 = vld [vmem:[%s9067_s5 + $0xc0] ss:$8 sps:$4 sm:$0xff]  }
 0x4b8   :  { %v2463_v63 = vpack.c.bf16 %v2460_v5, %v2461_v31  ;;  %v2914_v11 = vpack.c.bf16 %v8133_v62, %v8117_v48  ;;  %v2362_v18 = vpop.f32.mrf.mxu1 }
 0x4b9   :  { %v2414_v2 = vpack.c.bf16 %v2362_v18, %v2359_v39  ;;  %v2887_v37 = vrot.slane %v2362_v18, 2  ;;  %v2436_v43 = vrot.slane %v2362_v18, 1 }
 0x4ba   :  { %v2364_v33 = vpop.f32.mrf.mxu1  ;;  %4933 = vmatmul.mubr.msk.bf16.vlgmr.msra.gmra.mxu0 %vm2542_vm8, %v2463_v63 }
 0x4bb   :  { %v8144_v10 = vsel %vm784_vm2, %v2886_v3, %v2887_v37  ;;  %4955 = vmatmul.mubr.msk.bf16.gmra.mxu1 %vm2542_vm8, %v2414_v2  ;;  %2616 = vmatprep.mubr.bf16.mxu0 %v9410_v20  ;;  %v2459_v45 = vsel %vm175_vm0, %v2435_v8, %v2436_v43 }
 0x4bc   :  { %v2367_v15 = vpop.f32.mrf.mxu1  ;;  %2825 = vmatprep.mubr.bf16.mxu1 %v9410_v20  ;;  %3028 = vmatpush1.bf16.msra.mxu0 %v3018_v50 }
 0x4bd   :  { %v2437_v28 = vrot.slane %v2367_v15, 1  ;;  %v2888_v22 = vrot.slane %v2367_v15, 2  ;;  %3029 = vmatprep.subr.bf16.mxu0 %v5614_v52 }
 0x4be   :  { %v2369_v54 = vpop.f32.mrf.mxu1 }
 0x4bf   :  { %v2458_v24 = vsel %vm175_vm0, %v2436_v43, %v2437_v28  ;;  %v8161_v27 = vsel %vm784_vm2, %v2887_v37, %v2888_v22 }
 0x4c0   :  { %v2464_v13 = vpack.c.bf16 %v2458_v24, %v2459_v45  ;;  %v2915_v1 = vpack.c.bf16 %v8161_v27, %v8144_v10  ;;  %v2370_v6 = vpop.f32.mrf.mxu1  ;;  %3030 = vmatpush1.bf16.msra.mxu0 %v5612_v46 }
 0x4c1   :  { %v2415_v16 = vpack.c.bf16 %v2370_v6, %v2367_v15  ;;  %v2889_v41 = vrot.slane %v2370_v6, 2  ;;  %3031 = vmatprep.subr.bf16.mxu0 %v5617_v61  ;;  %v2438_v53 = vrot.slane %v2370_v6, 1 }
 0x4c2   :  { %v2372_v51 = vpop.f32.mrf.mxu1  ;;  %4934 = vmatmul.mubr.msk.bf16.gmra.mxu0 %vm2542_vm8, %v2464_v13 }
 0x4c3   :  { %v8174_v23 = vsel %vm784_vm2, %v2888_v22, %v2889_v41  ;;  %4956 = vmatmul.mubr.msk.bf16.gmra.mxu1 %vm2542_vm8, %v2415_v16  ;;  %2626 = vmatprep.mubr.bf16.mxu0 %v9410_v20  ;;  %v2457_v36 = vsel %vm175_vm0, %v2437_v28, %v2438_v53 }
 0x4c4   :  { %v2375_v12 = vpop.f32.mrf.mxu1  ;;  %2835 = vmatprep.mubr.bf16.mxu1 %v9410_v20  ;;  %3032 = vmatpush1.bf16.msra.mxu0 %v5615_v19 }
 0x4c5   :  { %v2439_v40 = vrot.slane %v2375_v12, 1  ;;  %v2890_v47 = vrot.slane %v2375_v12, 2  ;;  %3033 = vmatprep.subr.bf16.mxu0 %v5620_v38 }
 0x4c6   :  { %v2377_v55 = vpop.f32.mrf.mxu1 }
 0x4c7   :  { %v2456_v25 = vsel %vm175_vm0, %v2438_v53, %v2439_v40  ;;  %v8191_v14 = vsel %vm784_vm2, %v2889_v41, %v2890_v47 }
 0x4c8   :  { %v2465_v60 = vpack.c.bf16 %v2456_v25, %v2457_v36  ;;  %v2916_v26 = vpack.c.bf16 %v8191_v14, %v8174_v23  ;;  %v2378_v9 = vpop.f32.mrf.mxu1  ;;  %3034 = vmatpush1.bf16.msra.mxu0 %v5618_v49 }
 0x4c9   :  { %v2416_v17 = vpack.c.bf16 %v2378_v9, %v2375_v12  ;;  %v2891_v21 = vrot.slane %v2378_v9, 2  ;;  %3035 = vmatprep.subr.bf16.mxu0 %v5623_v56  ;;  %v2440_v59 = vrot.slane %v2378_v9, 1 }
 0x4ca   :  { %v2380_v0 = vpop.f32.mrf.mxu1  ;;  %4935 = vmatmul.mubr.msk.bf16.gmra.mxu0 %vm2542_vm8, %v2465_v60 }
 0x4cb   :  { %v8204_v44 = vsel %vm784_vm2, %v2890_v47, %v2891_v21  ;;  %4957 = vmatmul.mubr.msk.bf16.gmra.mxu1 %vm2542_vm8, %v2416_v17  ;;  %2636 = vmatprep.mubr.bf16.mxu0 %v9410_v20  ;;  %v2455_v29 = vsel %vm175_vm0, %v2439_v40, %v2440_v59 }
 0x4cc   :  { %v2383_v58 = vpop.f32.mrf.mxu1  ;;  %2845 = vmatprep.mubr.bf16.mxu1 %v9410_v20  ;;  %3036 = vmatpush1.bf16.msra.mxu0 %v5621_v57 }
 0x4cd   :  { %v2441_v39 = vrot.slane %v2383_v58, 1  ;;  %v2892_v8 = vrot.slane %v2383_v58, 2  ;;  %3037 = vmatprep.subr.bf16.mxu0 %v5626_v35 }
 0x4ce   :  { %v2385_v3 = vpop.f32.mrf.mxu1 }
 0x4cf   :  { %v2454_v30 = vsel %vm175_vm0, %v2440_v59, %v2441_v39  ;;  %v8218_v31 = vsel %vm784_vm2, %v2891_v21, %v2892_v8 }
 0x4d0   :  { %v2466_v5 = vpack.c.bf16 %v2454_v30, %v2455_v29  ;;  %v2917_v63 = vpack.c.bf16 %v8218_v31, %v8204_v44  ;;  %v2386_v18 = vpop.f32.mrf.mxu1  ;;  %3038 = vmatpush1.bf16.msra.mxu0 %v5624_v34 }
 0x4d1   :  { %v2417_v2 = vpack.c.bf16 %v2386_v18, %v2383_v58  ;;  %v2893_v37 = vrot.slane %v2386_v18, 2  ;;  %3921 = vmatprep.subr.bf16.mxu0 %v9410_v20  ;;  %v2442_v52 = vrot.slane %v2386_v18, 1 }
 0x4d2   :  { %v2388_v50 = vpop.f32.mrf.mxu1  ;;  %4936 = vmatmul.mubr.msk.bf16.gmra.mxu0 %vm2542_vm8, %v2466_v5 }
 0x4d3   :  { %v8226_v33 = vsel %vm784_vm2, %v2892_v8, %v2893_v37  ;;  %4958 = vmatmul.mubr.msk.bf16.gmra.mxu1 %vm2542_vm8, %v2417_v2  ;;  %2646 = vmatprep.mubr.bf16.mxu0 %v9410_v20  ;;  %v2453_v22 = vsel %vm175_vm0, %v2441_v39, %v2442_v52 }
 0x4d4   :  { %v2391_v43 = vpop.f32.mrf.mxu1  ;;  %2855 = vmatprep.mubr.bf16.mxu1 %v9410_v20 }
 0x4d5   :  { %v2443_v15 = vrot.slane %v2391_v43, 1  ;;  %v2894_v46 = vrot.slane %v2391_v43, 2 }
 0x4d6   :  { %v2393_v28 = vpop.f32.mrf.mxu1 }
 0x4d7   :  { %v2452_v61 = vsel %vm175_vm0, %v2442_v52, %v2443_v15  ;;  %v2903_v54 = vsel %vm784_vm2, %v2893_v37, %v2894_v46 }
 0x4d8   :  { %v2467_v45 = vpack.c.bf16 %v2452_v61, %v2453_v22  ;;  %v2918_v24 = vpack.c.bf16 %v2903_v54, %v8226_v33  ;;  %v2394_v13 = vpop.f32.mrf.mxu1 }
 0x4d9   :  { %v2418_v6 = vpack.c.bf16 %v2394_v13, %v2391_v43  ;;  %v2895_v19 = vrot.slane %v2394_v13, 2  ;;  %v2444_v41 = vrot.slane %v2394_v13, 1 }
 0x4da   :  { %v2396_v16 = vpop.f32.mrf.mxu1  ;;  %4937 = vmatmul.mubr.msk.bf16.gmra.mxu0 %vm2542_vm8, %v2467_v45 }
 0x4db   :  { %v2902_v38 = vsel %vm784_vm2, %v2894_v46, %v2895_v19  ;;  %4959 = vmatmul.mubr.msk.bf16.gmra.mxu1 %vm2542_vm8, %v2418_v6  ;;  %2656 = vmatprep.mubr.bf16.mxu0 %v9410_v20  ;;  %v2451_v40 = vsel %vm175_vm0, %v2443_v15, %v2444_v41 }
 0x4dc   :  { %v2399_v51 = vpop.f32.mrf.mxu1  ;;  %2865 = vmatprep.mubr.bf16.mxu1 %v9410_v20 }
 0x4dd   :  { %v2445_v53 = vrot.slane %v2399_v51, 1  ;;  %v2896_v12 = vrot.slane %v2399_v51, 2 }
 0x4de   :  { %v2401_v49 = vpop.f32.mrf.mxu1 }
 0x4df   :  { %v2450_v47 = vsel %vm175_vm0, %v2444_v41, %v2445_v53  ;;  %v2901_v56 = vsel %vm784_vm2, %v2895_v19, %v2896_v12 }
 0x4e0   :  { %v2468_v55 = vpack.c.bf16 %v2450_v47, %v2451_v40  ;;  %v2919_v36 = vpack.c.bf16 %v2901_v56, %v2902_v38  ;;  %v2402_v25 = vpop.f32.mrf.mxu1 }
 0x4e1   :  { %v2419_v60 = vpack.c.bf16 %v2402_v25, %v2399_v51  ;;  %v2897_v9 = vrot.slane %v2402_v25, 2  ;;  %v2446_v17 = vrot.slane %v2402_v25, 1 }
 0x4e2   :  { %v2404_v57 = vpop.f32.mrf.mxu1  ;;  %4938 = vmatmul.mubr.msk.bf16.gmra.mxu0 %vm2542_vm8, %v2468_v55 }
 0x4e3   :  { %v2900_v21 = vsel %vm784_vm2, %v2896_v12, %v2897_v9  ;;  %4960 = vmatmul.mubr.msk.bf16.gmra.mxu1 %vm2542_vm8, %v2419_v60  ;;  %2666 = vmatprep.mubr.bf16.mxu0 %v9410_v20  ;;  %v2449_v34 = vsel %vm175_vm0, %v2445_v53, %v2446_v17 }
 0x4e4   :  { %v2407_v35 = vpop.f32.mrf.mxu1  ;;  %2875 = vmatprep.mubr.bf16.mxu1 %v9410_v20 }
 0x4e5   :  { %v2447_v0 = vrot.slane %v2407_v35, 1  ;;  %v2898_v59 = vrot.slane %v2407_v35, 2  ;;  %v2420_v18 = vpack.c.bf16 %v2407_v35, %v2407_v35 }
 0x4e6   :  { %v2409_v58 = vpop.f32.mrf.mxu1 }
 0x4e7   :  { %v2448_v39 = vsel %vm175_vm0, %v2446_v17, %v2447_v0  ;;  %v2899_v8 = vsel %vm784_vm2, %v2897_v9, %v2898_v59  ;;  %v2913_v3 = vsel %vm784_vm2, %v2898_v59, %v2884_v7  ;;  %v2462_v37 = vsel %vm175_vm0, %v2447_v0, %v2433_v32 }
 0x4e8   :  { %v2469_v29 = vpack.c.bf16 %v2448_v39, %v2449_v34  ;;  %v2920_v30 = vpack.c.bf16 %v2899_v8, %v2900_v21  ;;  %v2410_v5 = vpop.f32.mrf.mxu1  ;;  %v2470_v50 = vpack.c.bf16 %v2462_v37, %v2462_v37  ;;  %v2921_v42 = vpack.c.bf16 %v2913_v3, %v2913_v3 }
 0x4ea   :  { %v2411_v2 = vpop.f32.mrf.mxu1  ;;  %4939 = vmatmul.mubr.msk.bf16.gmra.mxu0 %vm2542_vm8, %v2469_v29 }
 0x4eb   :  { %4961 = vmatmul.mubr.msk.bf16.gmra.mxu1 %vm2542_vm8, %v2420_v18  ;;  %2676 = vmatprep.mubr.bf16.mxu0 %v9410_v20 }
 0x4ec   :  { %3623 = vmatprep.mubr.bf16.mxu1 %v9410_v20 }
 0x4f2   :  { %4940 = vmatmul.mubr.msk.bf16.gmra.mxu0 %vm2542_vm8, %v2470_v50 }
 0x4f3   :  { %3055 = vmatprep.mubr.bf16.mxu0 %v9410_v20 }
 0x4fa   :  { %4987 = vmatmul.mubr.msk.bf16.vlgmr.msra.gmra.mxu0 %vm2542_vm8, %v2914_v11 }
 0x4fb   :  { %3065 = vmatprep.mubr.bf16.mxu0 %v9410_v20 }
 0x502   :  { %4988 = vmatmul.mubr.msk.bf16.gmra.mxu0 %vm2542_vm8, %v2915_v1 }
 0x503   :  { %3075 = vmatprep.mubr.bf16.mxu0 %v9410_v20 }
 0x50a   :  { %4989 = vmatmul.mubr.msk.bf16.gmra.mxu0 %vm2542_vm8, %v2916_v26 }
 0x50b   :  { %3085 = vmatprep.mubr.bf16.mxu0 %v9410_v20 }
 0x512   :  { %4990 = vmatmul.mubr.msk.bf16.gmra.mxu0 %vm2542_vm8, %v2917_v63 }
 0x513   :  { %3095 = vmatprep.mubr.bf16.mxu0 %v9410_v20 }
 0x51a   :  { %4991 = vmatmul.mubr.msk.bf16.gmra.mxu0 %vm2542_vm8, %v2918_v24 }
 0x51b   :  { %3105 = vmatprep.mubr.bf16.mxu0 %v9410_v20 }
 0x522   :  { %4992 = vmatmul.mubr.msk.bf16.gmra.mxu0 %vm2542_vm8, %v2919_v36 }
 0x523   :  { %3115 = vmatprep.mubr.bf16.mxu0 %v9410_v20 }
 0x52a   :  { %4993 = vmatmul.mubr.msk.bf16.gmra.mxu0 %vm2542_vm8, %v2920_v30 }
 0x52b   :  { %3125 = vmatprep.mubr.bf16.mxu0 %v9410_v20 }
 0x532   :  { %4994 = vmatmul.mubr.msk.bf16.gmra.mxu0 %vm2542_vm8, %v2921_v42 }
 0x573   :  { %v2807_v7 = vpop.f32.mrf.mxu1 }
 0x575   :  { %v2809_v48 = vpop.f32.mrf.mxu1 }
 0x577   :  { %v2811_v32 = vpop.f32.mrf.mxu1 }
 0x579   :  { %v2813_v62 = vpop.f32.mrf.mxu1 }
 0x57a   :  { %v2608_v11 = vpop.f32.mrf.mxu0 }
 0x57b   :  { %v8303_v10 = vadd.f32 %v2807_v7, %v2608_v11  ;;  %v2817_v27 = vpop.f32.mrf.mxu1 }
 0x57c   :  { %v2610_v1 = vpop.f32.mrf.mxu0 }
 0x57d   :  { %v8305_v23 = vadd.f32 %v2809_v48, %v2610_v1  ;;  %v2819_v14 = vpop.f32.mrf.mxu1 }
 0x57e   :  { %v2612_v26 = vpop.f32.mrf.mxu0 }
 0x57f   :  { %v8307_v44 = vadd.f32 %v2811_v32, %v2612_v26  ;;  %v2821_v31 = vpop.f32.mrf.mxu1 }
 0x580   :  { %v2614_v63 = vpop.f32.mrf.mxu0 }
 0x581   :  { %v8309_v52 = vadd.f32 %v2813_v62, %v2614_v63  ;;  %v2823_v33 = vpop.f32.mrf.mxu1 }
 0x582   :  { %v2618_v43 = vpop.f32.mrf.mxu0 }
 0x583   :  { %v8311_v15 = vadd.f32 %v2817_v27, %v2618_v43  ;;  %v2827_v46 = vpop.f32.mrf.mxu1 }
 0x584   :  { %v2620_v28 = vpop.f32.mrf.mxu0 }
 0x585   :  { %v8313_v22 = vadd.f32 %v2819_v14, %v2620_v28  ;;  %v2829_v61 = vpop.f32.mrf.mxu1 }
 0x586   :  { %v2622_v54 = vpop.f32.mrf.mxu0 }
 0x587   :  { %v8315_v45 = vadd.f32 %v2821_v31, %v2622_v54  ;;  %v2831_v24 = vpop.f32.mrf.mxu1 }
 0x588   :  { %v2624_v13 = vpop.f32.mrf.mxu0 }
 0x589   :  { %v8317_v6 = vadd.f32 %v2823_v33, %v2624_v13  ;;  %v2833_v19 = vpop.f32.mrf.mxu1 }
 0x58a   :  { %v2628_v16 = vpop.f32.mrf.mxu0 }
 0x58b   :  { %v8319_v41 = vadd.f32 %v2827_v46, %v2628_v16  ;;  %v2837_v38 = vpop.f32.mrf.mxu1 }
 0x58c   :  { %v2630_v51 = vpop.f32.mrf.mxu0 }
 0x58d   :  { %v8321_v53 = vadd.f32 %v2829_v61, %v2630_v51  ;;  %v2839_v12 = vpop.f32.mrf.mxu1 }
 0x58e   :  { %v2632_v49 = vpop.f32.mrf.mxu0 }
 0x58f   :  { %v8323_v40 = vadd.f32 %v2831_v24, %v2632_v49  ;;  %v2841_v47 = vpop.f32.mrf.mxu1 }
 0x590   :  { %v2634_v56 = vpop.f32.mrf.mxu0 }
 0x591   :  { %v8325_v55 = vadd.f32 %v2833_v19, %v2634_v56  ;;  %v2843_v36 = vpop.f32.mrf.mxu1 }
 0x592   :  { %v2638_v25 = vpop.f32.mrf.mxu0 }
 0x593   :  { %v8327_v60 = vadd.f32 %v2837_v38, %v2638_v25  ;;  %v2847_v9 = vpop.f32.mrf.mxu1 }
 0x594   :  { %v2640_v57 = vpop.f32.mrf.mxu0 }
 0x595   :  { %v8329_v17 = vadd.f32 %v2839_v12, %v2640_v57  ;;  %v2849_v21 = vpop.f32.mrf.mxu1 }
 0x596   :  { %v2642_v35 = vpop.f32.mrf.mxu0 }
 0x597   :  { %v8331_v0 = vadd.f32 %v2841_v47, %v2642_v35  ;;  %v2851_v59 = vpop.f32.mrf.mxu1  ;;  %v9411_v35 = vsub.s32 1, %v5889_v4 }
 0x598   :  { %v2644_v58 = vpop.f32.mrf.mxu0 }
 0x599   :  { %v8333_v34 = vadd.f32 %v2843_v36, %v2644_v58  ;;  %v2853_v39 = vpop.f32.mrf.mxu1 }
 0x59a   :  { %v2648_v8 = vpop.f32.mrf.mxu0 }
 0x59b   :  { %v8335_v3 = vadd.f32 %v2847_v9, %v2648_v8  ;;  %v2857_v29 = vpop.f32.mrf.mxu1 }
 0x59c   :  { %v2650_v30 = vpop.f32.mrf.mxu0 }
 0x59d   :  { %v8337_v5 = vadd.f32 %v2849_v21, %v2650_v30  ;;  %v2859_v18 = vpop.f32.mrf.mxu1  ;;  %v3164_v21 = vld [vmem:[%s9068_s6] sm:$0x3]  ;;  %s5800_s6 = smov 80  }
 0x59e   :  { %v2652_v2 = vpop.f32.mrf.mxu0 }
 0x59f   :  { %v8339_v37 = vadd.f32 %v2851_v59, %v2652_v2  ;;  %v2861_v50 = vpop.f32.mrf.mxu1  ;;  %v8372_v59 = vrot.slane %v3164_v21, %v9411_v35 }
 0x5a0   :  { %v2654_v42 = vpop.f32.mrf.mxu0 }
 0x5a1   :  { %v8341_v7 = vadd.f32 %v2853_v39, %v2654_v42  ;;  %v2863_v48 = vpop.f32.mrf.mxu1 }
 0x5a2   :  { %v2658_v32 = vpop.f32.mrf.mxu0 }
 0x5a3   :  { %v8343_v62 = vadd.f32 %v2857_v29, %v2658_v32  ;;  %v2867_v11 = vpop.f32.mrf.mxu1 }
 0x5a4   :  { %v2660_v27 = vpop.f32.mrf.mxu0 }
 0x5a5   :  { %v8345_v1 = vadd.f32 %v2859_v18, %v2660_v27  ;;  %v2869_v14 = vpop.f32.mrf.mxu1 }
 0x5a6   :  { %v2662_v26 = vpop.f32.mrf.mxu0 }
 0x5a7   :  { %v8347_v31 = vadd.f32 %v2861_v50, %v2662_v26  ;;  %v8349_v63 = vpop.f32.mrf.mxu1 }
 0x5a8   :  { %v2664_v33 = vpop.f32.mrf.mxu0 }
 0x5a9   :  { %v8351_v43 = vadd.f32 %v2863_v48, %v2664_v33  ;;  %v2873_v46 = vpop.f32.mrf.mxu1 }
 0x5aa   :  { %v2668_v28 = vpop.f32.mrf.mxu0 }
 0x5ab   :  { %v8353_v61 = vadd.f32 %v2867_v11, %v2668_v28  ;;  %v8355_v54 = vpop.f32.mrf.mxu1 }
 0x5ac   :  { %v2670_v24 = vpop.f32.mrf.mxu0 }
 0x5ad   :  { %v8357_v13 = vadd.f32 %v2869_v14, %v2670_v24  ;;  %v2879_v19 = vpop.f32.mrf.mxu1 }
 0x5ae   :  { %v8359_v16 = vpop.f32.mrf.mxu0 }
 0x5af   :  { %v2881_v38 = vpop.f32.mrf.mxu1 }
 0x5b0   :  { %v2674_v51 = vpop.f32.mrf.mxu0 }
 0x5b1   :  { %v8361_v12 = vadd.f32 %v2873_v46, %v2674_v51  ;;  %v2882_v49 = vpop.f32.mrf.mxu1 }
 0x5b2   :  { %v8363_v47 = vpop.f32.mrf.mxu0 }
 0x5b4   :  { %v2680_v56 = vpop.f32.mrf.mxu0 }
 0x5b5   :  { %v8365_v36 = vadd.f32 %v2879_v19, %v2680_v56 }
 0x5b6   :  { %v2682_v25 = vpop.f32.mrf.mxu0 }
 0x5b8   :  { %v2683_v9 = vpop.f32.mrf.mxu0 }
 0x5ba   :  { %v3057_v57 = vpop.f32.mrf.mxu0 }
 0x5bc   :  { %v3059_v58 = vpop.f32.mrf.mxu0 }
 0x5bd   :  { %v3135_v39 = vadd.f32 %v3059_v58, %v8305_v23 }
 0x5be   :  { %v8375_v8 = vpop.f32.mrf.mxu0 }
 0x5bf   :  { %v8378_v29 = vadd.f32 %v8372_v59, %v3135_v39 }
 0x5c0   :  { %v3063_v30 = vpop.f32.mrf.mxu0 }
 0x5c1   :  { %v3137_v18 = vadd.f32 %v3063_v30, %v8309_v52 }
 0x5c2   :  { %v8381_v2 = vpop.f32.mrf.mxu0 }
 0x5c3   :  { %v8384_v50 = vadd.f32 %v8372_v59, %v3137_v18 }
 0x5c4   :  { %v3069_v42 = vpop.f32.mrf.mxu0 }
 0x5c5   :  { %v3139_v48 = vadd.f32 %v3069_v42, %v8313_v22 }
 0x5c6   :  { %v8387_v32 = vpop.f32.mrf.mxu0 }
 0x5c7   :  { %v8390_v23 = vadd.f32 %v8372_v59, %v3139_v48 }
 0x5c8   :  { %v3073_v11 = vpop.f32.mrf.mxu0 }
 0x5c9   :  { %v3141_v27 = vadd.f32 %v3073_v11, %v8317_v6 }
 0x5ca   :  { %v3077_v14 = vpop.f32.mrf.mxu0 }
 0x5cb   :  { %v8394_v26 = vadd.f32 %v8372_v59, %v3141_v27 }
 0x5cc   :  { %v3079_v52 = vpop.f32.mrf.mxu0 }
 0x5cd   :  { %v3143_v33 = vadd.f32 %v3079_v52, %v8321_v53 }
 0x5ce   :  { %v3081_v46 = vpop.f32.mrf.mxu0 }
 0x5cf   :  { %v8398_v28 = vadd.f32 %v8372_v59, %v3143_v33 }
 0x5d0   :  { %v3083_v22 = vpop.f32.mrf.mxu0 }
 0x5d1   :  { %v3145_v24 = vadd.f32 %v3083_v22, %v8325_v55 }
 0x5d2   :  { %v8401_v19 = vpop.f32.mrf.mxu0 }
 0x5d3   :  { %v8404_v38 = vadd.f32 %v8372_v59, %v3145_v24 }
 0x5d4   :  { %v3089_v6 = vpop.f32.mrf.mxu0 }
 0x5d5   :  { %v3147_v51 = vadd.f32 %v3089_v6, %v8329_v17 }
 0x5d6   :  { %v3091_v49 = vpop.f32.mrf.mxu0 }
 0x5d7   :  { %v8408_v56 = vadd.f32 %v8372_v59, %v3147_v51 }
 0x5d8   :  { %v3093_v53 = vpop.f32.mrf.mxu0 }
 0x5d9   :  { %v3149_v25 = vadd.f32 %v3093_v53, %v8333_v34  ;;  %v2872_v53 = vadd.f32 %v8349_v63, %v8359_v16  ;;  %v2878_v63 = vadd.f32 %v8355_v54, %v8363_v47 }
 0x5da   :  { %v3097_v9 = vpop.f32.mrf.mxu0 }
 0x5db   :  { %v8412_v35 = vadd.f32 %v8372_v59, %v3149_v25 }
 0x5dc   :  { %v3099_v55 = vpop.f32.mrf.mxu0 }
 0x5dd   :  { %v3151_v58 = vadd.f32 %v3099_v55, %v8337_v5 }
 0x5de   :  { %v3101_v39 = vpop.f32.mrf.mxu0 }
 0x5df   :  { %v8416_v30 = vadd.f32 %v8372_v59, %v3151_v58  ;;  %v3152_v6 = vadd.f32 %v3101_v39, %v8339_v37  ;;  %v3134_v58 = vadd.f32 %v3057_v57, %v8303_v10  ;;  %v3144_v37 = vadd.f32 %v3081_v46, %v8323_v40 }
 0x5e0   :  { %v3103_v18 = vpop.f32.mrf.mxu0 }
 0x5e1   :  { %v3153_v17 = vadd.f32 %v3103_v18, %v8341_v7 }
 0x5e2   :  { %v3107_v42 = vpop.f32.mrf.mxu0 }
 0x5e3   :  { %v8420_v48 = vadd.f32 %v8372_v59, %v3153_v17 }
 0x5e4   :  { %v3109_v11 = vpop.f32.mrf.mxu0 }
 0x5e5   :  { %v3155_v34 = vadd.f32 %v3109_v11, %v8345_v1  ;;  %v9412_v1 = vsub.s32 0, %v5889_v4  ;;  %v5632_v4 = vld [vmem:[#allocation6 + $0x98] sm:$0xff]  }
 0x5e6   :  { %v3111_v27 = vpop.f32.mrf.mxu0 }
 0x5e7   :  { %v8424_v52 = vadd.f32 %v8372_v59, %v3155_v34  ;;  %v3169_v25 = vrot.slane %v3164_v21, %v9412_v1  ;;  %v3156_v16 = vadd.f32 %v3111_v27, %v8347_v31  ;;  %v3148_v31 = vadd.f32 %v3091_v49, %v8331_v0 }
 0x5e8   :  { %v3113_v33 = vpop.f32.mrf.mxu0 }
 0x5e9   :  { %v3157_v5 = vadd.f32 %v3113_v33, %v8351_v43  ;;  %v3150_v43 = vadd.f32 %v3097_v9, %v8335_v3  ;;  %v3194_v39 = vadd.f32 %v3169_v25, %v3152_v6  ;;  %v3176_v57 = vadd.f32 %v3169_v25, %v3134_v58 }
 0x5ea   :  { %v3117_v22 = vpop.f32.mrf.mxu0  ;;  %v3142_v3 = vadd.f32 %v3077_v14, %v8319_v41  ;;  %v3154_v9 = vadd.f32 %v3107_v42, %v8343_v62  ;;  %v3186_v47 = vadd.f32 %v3169_v25, %v3144_v37  ;;  %v3146_v6 = vadd.f32 %v8401_v19, %v8327_v60 }
 0x5eb   :  { %v8428_v24 = vadd.f32 %v8372_v59, %v3157_v5  ;;  %v3158_v7 = vadd.f32 %v3117_v22, %v8353_v61  ;;  %v3192_v21 = vadd.f32 %v3169_v25, %v3150_v43  ;;  %v8457_v27 = vmax.f32 %v3194_v39, 0.0 }
 0x5ec   :  { %v3119_v51 = vpop.f32.mrf.mxu0  ;;  %v3198_v22 = vadd.f32 %v3169_v25, %v3156_v16  ;;  %v8462_v42 = vmax.f32 %v3176_v57, 0.0  ;;  %v3196_v0 = vadd.f32 %v3169_v25, %v3154_v9  ;;  %v8478_v58 = vmax.f32 %v3186_v47, 0.0 }
 0x5ed   :  { %v3159_v55 = vadd.f32 %v3119_v51, %v8357_v13  ;;  %v3200_v17 = vadd.f32 %v3169_v25, %v3158_v7  ;;  %v3184_v7 = vadd.f32 %v3169_v25, %v3142_v3  ;;  %v3190_v19 = vadd.f32 %v3169_v25, %v3148_v31 }
 0x5ee   :  { %v3121_v18 = vpop.f32.mrf.mxu0  ;;  %v8480_v43 = vmax.f32 %v3198_v22, 0.0  ;;  %v3207_v3 = vmax.f32 %v8378_v29, 0.0 }
 0x5ef   :  { %v8440_v11 = vadd.f32 %v8372_v59, %v3159_v55  ;;  %v3160_v61 = vadd.f32 %v3121_v18, %v2872_v53  ;;  %v8449_v5 = vmax.f32 %v3200_v17, 0.0  ;;  %v8466_v53 = vmax.f32 %v3192_v21, 0.0 }
 0x5f0   :  { %v3123_v34 = vpop.f32.mrf.mxu0  ;;  %v3140_v55 = vadd.f32 %v8387_v32, %v8315_v45  ;;  %v3138_v17 = vadd.f32 %v8381_v2, %v8311_v15  ;;  %v8494_v37 = vmax.f32 %v3190_v19, 0.0  ;;  %v3227_v19 = vmax.f32 %v8424_v52, 0.0 }
 0x5f1   :  { %v3202_v13 = vadd.f32 %v3169_v25, %v3160_v61  ;;  %v3161_v10 = vadd.f32 %v3123_v34, %v8361_v12  ;;  %v5425_v18 = vpack.i.bf16 %v8457_v27, %v8466_v53  ;;  %v8488_v61 = vmax.f32 %v3184_v7, 0.0 }
 0x5f2   :  { %v3127_v33 = vpop.f32.mrf.mxu0  ;;  %v3182_v32 = vadd.f32 %v3169_v25, %v3140_v55  ;;  %v3180_v15 = vadd.f32 %v3169_v25, %v3138_v17 }
 0x5f3   :  { %v8451_v40 = vmax.f32 %v3202_v13, 0.0  ;;  %v8454_v46 = vadd.f32 %v8372_v59, %v3161_v10  ;;  %v3162_v54 = vadd.f32 %v3127_v33, %v2878_v63  ;;  %v5435_v39 = vpack.i.bf16 %v8478_v58, %v8488_v61 }
 0x5f4   :  { %v3129_v12 = vpop.f32.mrf.mxu0  ;;  %v8506_v16 = vmax.f32 %v3182_v32, 0.0  ;;  %v8510_v10 = vmax.f32 %v3180_v15, 0.0  ;;  %v3223_v15 = vmax.f32 %v8416_v30, 0.0 }
 0x5f5   :  { %v3204_v41 = vadd.f32 %v3169_v25, %v3162_v54  ;;  %v3163_v14 = vadd.f32 %v3129_v12, %v8365_v36  ;;  %v5415_v62 = vpack.i.bf16 %v8451_v40, %v8449_v5  ;;  %v3136_v36 = vadd.f32 %v8375_v8, %v8307_v44 }
 0x5f6   :  { %v3131_v51 = vpop.f32.mrf.mxu0  ;;  %v3188_v44 = vadd.f32 %v3169_v25, %v3146_v6  ;;  %v8490_v8 = vmax.f32 %v3196_v0, 0.0  ;;  %v3231_v12 = vmax.f32 %v8440_v11, 0.0  ;;  %v3233_v22 = vmax.f32 %v8454_v46, 0.0 }
 0x5f7   :  { %v8468_v49 = vmax.f32 %v3204_v41, 0.0  ;;  %v8471_v1 = vadd.f32 %v8372_v59, %v3163_v14  ;;  %5416 = vrot.lane.b32.xlu1 %v5415_v62, %s5800_s6  ;;  %v3178_v45 = vadd.f32 %v3169_v25, %v3136_v36  ;;  %v5440_v25 = vpack.i.bf16 %v8506_v16, %v8510_v10 }
 0x5f8   :  { %v3132_v60 = vpop.f32.mrf.mxu0  ;;  %v5420_v34 = vpack.i.bf16 %v8480_v43, %v8490_v8  ;;  %v8500_v2 = vmax.f32 %v3188_v44, 0.0 }
 0x5f9   :  { %v5410_v59 = vpack.i.bf16 %v8468_v49, %v8462_v42  ;;  %v8504_v63 = vmax.f32 %v3178_v45, 0.0  ;;  %v3235_v21 = vmax.f32 %v8471_v1, 0.0 }
 0x5fa   :  { %v5430_v13 = vpack.i.bf16 %v8494_v37, %v8500_v2 }
 0x5fb   :  { %5426 = vrot.lane.b32.xlu1 %v5425_v18, %s5800_s6  ;;  %5411 = vrot.lane.b32.xlu0 %v5410_v59, %s5800_s6  ;;  %v3229_v18 = vmax.f32 %v8428_v24, 0.0 }
 0x5ff   :  { %5436 = vrot.lane.b32.xlu1 %v5435_v39, %s5800_s6  ;;  %5421 = vrot.lane.b32.xlu0 %v5420_v34, %s5800_s6 }
 0x603   :  { %3239 = vrot.lane.b32.xlu1 %v8504_v63, %s5800_s6  ;;  %5431 = vrot.lane.b32.xlu0 %v5430_v13, %s5800_s6  ;;  %v3225_v13 = vmax.f32 %v8420_v48, 0.0 }
 0x607   :  { %5441 = vrot.lane.b32.xlu0 %v5440_v25, %s5800_s6 }
 0x669   :  { %v5417_v57 = vpop.permute.xlu1 %5416 }
 0x66a   :  { %v5419_v33 = vunpack.i.h.bf16 %v5417_v57  ;;  %v5418_v54 = vunpack.i.l.bf16 %v5417_v57 }
 0x66c   :  { %v3280_v36 = vsel %vm3236_vm9, %v5419_v33, %v3233_v22  ;;  %v3279_v55 = vsel %vm3236_vm9, %v5418_v54, %v3231_v12 }
 0x66d   :  { %v5412_v9 = vpop.permute.xlu0 %5411  ;;  %v5427_v60 = vpop.permute.xlu1 %5426  ;;  %v5460_v59 = vpack.i.bf16 %v3280_v36, %v8451_v40  ;;  %v5455_v17 = vpack.i.bf16 %v3279_v55, %v8449_v5 }
 0x66e   :  { %v5414_v47 = vunpack.i.h.bf16 %v5412_v9  ;;  %v5413_v31 = vunpack.i.l.bf16 %v5412_v9  ;;  %v5429_v44 = vunpack.i.h.bf16 %v5427_v60  ;;  %v5428_v45 = vunpack.i.l.bf16 %v5427_v60 }
 0x66f   :  { %v3215_v60 = vmax.f32 %v8398_v28, 0.0 }
 0x670   :  { %v3281_v41 = vsel %vm3236_vm9, %v5414_v47, %v3235_v21  ;;  %v3267_v14 = vsel %vm3236_vm9, %v5413_v31, %v3207_v3  ;;  %v3276_v54 = vsel %vm3236_vm9, %v5429_v44, %v3225_v13  ;;  %v3275_v47 = vsel %vm3236_vm9, %v5428_v45, %v3223_v15 }
 0x671   :  { %v5422_v62 = vpop.permute.xlu0 %5421  ;;  %v5450_v7 = vpack.i.bf16 %v3281_v41, %v8468_v49  ;;  %v5445_v6 = vpack.i.bf16 %v3267_v14, %v8462_v42  ;;  %v5437_v31 = vpop.permute.xlu1 %5436  ;;  %v3219_v41 = vmax.f32 %v8408_v56, 0.0  ;;  %v3221_v14 = vmax.f32 %v8412_v35, 0.0 }
 0x672   :  { %v5424_v51 = vunpack.i.h.bf16 %v5422_v62  ;;  %v5423_v0 = vunpack.i.l.bf16 %v5422_v62  ;;  %v5480_v62 = vpack.i.bf16 %v3276_v54, %v8457_v27 }
 0x673   :  { %5451 = vrot.lane.b32.xlu1 %v5450_v7, %s5799_s21  ;;  %5446 = vrot.lane.b32.xlu0 %v5445_v6, %s5799_s21  ;;  %v5475_v7 = vpack.i.bf16 %v3275_v47, %v8466_v53  ;;  %v5439_v6 = vunpack.i.h.bf16 %v5437_v31 }
 0x674   :  { %v3278_v32 = vsel %vm3236_vm9, %v5424_v51, %v3229_v18  ;;  %v3277_v39 = vsel %vm3236_vm9, %v5423_v0, %v3227_v19  ;;  %v5438_v51 = vunpack.i.l.bf16 %v5437_v31 }
 0x675   :  { %v5432_v34 = vpop.permute.xlu0 %5431  ;;  %v5470_v25 = vpack.i.bf16 %v3278_v32, %v8480_v43  ;;  %v5465_v57 = vpack.i.bf16 %v3277_v39, %v8490_v8  ;;  %v3240_v31 = vpop.permute.xlu1 %3239 }
 0x676   :  { %v5434_v9 = vunpack.i.h.bf16 %v5432_v34  ;;  %v5433_v33 = vunpack.i.l.bf16 %v5432_v34  ;;  %v3271_v34 = vsel %vm3236_vm9, %v5438_v51, %v3215_v60 }
 0x677   :  { %5461 = vrot.lane.b32.xlu1 %v5460_v59, %s5799_s21  ;;  %5456 = vrot.lane.b32.xlu0 %v5455_v17, %s5799_s21  ;;  %v3217_v59 = vmax.f32 %v8404_v38, 0.0 }
 0x678   :  { %v3274_v0 = vsel %vm3236_vm9, %v5434_v9, %v3221_v14  ;;  %v3273_v36 = vsel %vm3236_vm9, %v5433_v33, %v3219_v41  ;;  %v5495_v33 = vpack.i.bf16 %v3271_v34, %v8488_v61  ;;  %v5645_v34 = vld [vmem:[#allocation6] sm:$0xff]  }
 0x679   :  { %v5442_v55 = vpop.permute.xlu0 %5441  ;;  %v5490_v17 = vpack.i.bf16 %v3274_v0, %v8494_v37  ;;  %v5485_v44 = vpack.i.bf16 %v3273_v36, %v8500_v2  ;;  %v3272_v39 = vsel %vm3236_vm9, %v5439_v6, %v3217_v59  ;;  %v5631_v36 = vld [vmem:[#allocation6 + $0x38] sm:$0xff]  }
 0x67a   :  { %v5444_v45 = vunpack.i.h.bf16 %v5442_v55  ;;  %v5443_v32 = vunpack.i.l.bf16 %v5442_v55  ;;  %v5500_v9 = vpack.i.bf16 %v3272_v39, %v8478_v58  ;;  %3922 = vmatpush1.bf16.msra.mxu0 %v5631_v36  ;;  %v5633_v55 = vld [vmem:[#allocation6 + $0x30] sm:$0xff]   ;;  %v5643_v39 = vld [vmem:[#allocation6 + $0x8] sm:$0xff]  }
 0x67b   :  { %5471 = vrot.lane.b32.xlu1 %v5470_v25, %s5799_s21  ;;  %5466 = vrot.lane.b32.xlu0 %v5465_v57, %s5799_s21  ;;  %v3211_v25 = vmax.f32 %v8390_v23, 0.0  ;;  %v3213_v57 = vmax.f32 %v8394_v26, 0.0 }
 0x67c   :  { %3923 = vmatprep.subr.bf16.mxu0 %v9410_v20 }
 0x67d   :  { %v3270_v54 = vsel %vm3236_vm9, %v5444_v45, %v3213_v57  ;;  %v3269_v47 = vsel %vm3236_vm9, %v5443_v32, %v3211_v25  ;;  %v5639_v45 = vld [vmem:[#allocation6 + $0x18] sm:$0xff]   ;;  %v5641_v32 = vld [vmem:[#allocation6 + $0x10] sm:$0xff]  }
 0x67e   :  { %v5505_v6 = vpack.i.bf16 %v3269_v47, %v8510_v10  ;;  %3924 = vmatpush1.bf16.msra.mxu0 %v5633_v55 }
 0x67f   :  { %5481 = vrot.lane.b32.xlu1 %v5480_v62, %s5799_s21  ;;  %5476 = vrot.lane.b32.xlu0 %v5475_v7, %s5799_s21  ;;  %v9143_v62 = vmax.f32 %v8384_v50, 0.0  ;;  %v5510_v7 = vpack.i.bf16 %v3270_v54, %v8506_v16 }
 0x680   :  { %3925 = vmatprep.subr.bf16.mxu0 %v9410_v20 }
 0x681   :  { %v3268_v51 = vsel %vm3236_vm9, %v3240_v31, %v9143_v62 }
 0x682   :  { %v5515_v0 = vpack.i.bf16 %v3268_v51, %v8504_v63 }
 0x683   :  { %5491 = vrot.lane.b32.xlu1 %v5490_v17, %s5799_s21  ;;  %5486 = vrot.lane.b32.xlu0 %v5485_v44, %s5799_s21  ;;  %v5635_v17 = vld [vmem:[#allocation6 + $0x28] sm:$0xff]   ;;  %v5637_v44 = vld [vmem:[#allocation6 + $0x20] sm:$0xff]  }
 0x684   :  { %3926 = vmatpush1.bf16.msra.mxu0 %v5635_v17 }
 0x685   :  { %3927 = vmatprep.subr.bf16.mxu0 %v9410_v20 }
 0x687   :  { %5501 = vrot.lane.b32.xlu1 %v5500_v9, %s5799_s21  ;;  %5496 = vrot.lane.b32.xlu0 %v5495_v33, %s5799_s21  ;;  %v5647_v9 = vld [vmem:[#allocation6 + $0x60] sm:$0xff]   ;;  %v5649_v33 = vld [vmem:[#allocation6 + $0x58] sm:$0xff]  }
 0x688   :  { %3928 = vmatpush1.bf16.msra.mxu0 %v5637_v44 }
 0x689   :  { %3929 = vmatprep.subr.bf16.mxu0 %v9410_v20 }
 0x68b   :  { %5511 = vrot.lane.b32.xlu1 %v5510_v7, %s5799_s21  ;;  %5506 = vrot.lane.b32.xlu0 %v5505_v6, %s5799_s21 }
 0x68c   :  { %3930 = vmatpush1.bf16.msra.mxu0 %v5639_v45 }
 0x68d   :  { %3931 = vmatprep.subr.bf16.mxu0 %v9410_v20 }
 0x68f   :  { %5516 = vrot.lane.b32.xlu0 %v5515_v0, %s5799_s21 }
 0x690   :  { %3932 = vmatpush1.bf16.msra.mxu0 %v5641_v32 }
 0x691   :  { %3933 = vmatprep.subr.bf16.mxu0 %v9410_v20 }
 0x694   :  { %3934 = vmatpush1.bf16.msra.mxu0 %v5643_v39 }
 0x695   :  { %3935 = vmatprep.subr.bf16.mxu0 %v9410_v20 }
 0x698   :  { %3936 = vmatpush1.bf16.msra.mxu0 %v5645_v34 }
 0x699   :  { %3943 = vmatprep.subr.bf16.mxu0 %v9410_v20 }
 0x69c   :  { %3944 = vmatpush2.bf16.msra.mxu0 %v5647_v9 }
 0x69d   :  { %3945 = vmatprep.subr.bf16.mxu0 %v9410_v20 }
 0x6a0   :  { %3946 = vmatpush2.bf16.msra.mxu0 %v5649_v33 }
 0x6a1   :  { %3947 = vmatprep.subr.bf16.mxu0 %v9410_v20 }
 0x6e5   :  { %v5452_v54 = vpop.permute.xlu1 %5451  ;;  %v5447_v47 = vpop.permute.xlu0 %5446 }
 0x6e6   :  { %v5454_v31 = vunpack.i.h.bf16 %v5452_v54  ;;  %v5453_v7 = vunpack.i.l.bf16 %v5452_v54  ;;  %v5449_v6 = vunpack.i.h.bf16 %v5447_v47  ;;  %v5448_v51 = vunpack.i.l.bf16 %v5447_v47 }
 0x6e8   :  { %v3446_v0 = vmax.f32 %v3235_v21, %v5454_v31  ;;  %v3386_v36 = vsel %vm1592_vm4, %v5453_v7, %v5454_v31  ;;  %v8623_v55 = vmax.f32 %v3207_v3, %v5449_v6  ;;  %v3372_v17 = vsel %vm1592_vm4, %v5448_v51, %v5449_v6 }
 0x6e9   :  { %v8627_v44 = vmax.f32 %v8468_v49, %v3386_v36  ;;  %v8630_v45 = vmax.f32 %v8462_v42, %v3372_v17  ;;  %v5462_v32 = vpop.permute.xlu1 %5461  ;;  %v5457_v39 = vpop.permute.xlu0 %5456 }
 0x6ea   :  { %v3476_v34 = vrot.slane %v3446_v0, 1  ;;  %v9142_v1 = vrot.slane %v8623_v55, 1  ;;  %v5464_v21 = vunpack.i.h.bf16 %v5462_v32  ;;  %v5463_v9 = vunpack.i.l.bf16 %v5462_v32 }
 0x6eb   :  { %v3475_v33 = vrot.slane %v8627_v44, 1  ;;  %v5459_v29 = vunpack.i.h.bf16 %v5457_v39  ;;  %v5458_v3 = vunpack.i.l.bf16 %v5457_v39  ;;  %v9141_v54 = vrot.slane %v8630_v45, 1 }
 0x6ec   :  { %v8637_v49 = vmax.f32 %v3233_v22, %v5464_v21  ;;  %v3385_v42 = vsel %vm1592_vm4, %v5463_v9, %v5464_v21  ;;  %v3506_v47 = vsel %vm175_vm0, %v3476_v34, %v9142_v1 }
 0x6ed   :  { %v8645_v31 = vmax.f32 %v8451_v40, %v3385_v42  ;;  %v8649_v7 = vmax.f32 %v3231_v12, %v5459_v29  ;;  %v3384_v6 = vsel %vm1592_vm4, %v5458_v3, %v5459_v29  ;;  %v5472_v51 = vpop.permute.xlu1 %5471  ;;  %v5467_v46 = vpop.permute.xlu0 %5466  ;;  %v3536_v22 = vmax.f32 %v3446_v0, %v3506_v47 }
 0x6ee   :  { %v3474_v36 = vrot.slane %v8637_v49, 1  ;;  %v8654_v17 = vmax.f32 %v8449_v5, %v3384_v6  ;;  %v5474_v32 = vunpack.i.h.bf16 %v5472_v51  ;;  %v5473_v39 = vunpack.i.l.bf16 %v5472_v51 }
 0x6ef   :  { %v3473_v21 = vrot.slane %v8645_v31, 1  ;;  %v3472_v40 = vrot.slane %v8649_v7, 1  ;;  %v5469_v9 = vunpack.i.h.bf16 %v5467_v46  ;;  %v5468_v11 = vunpack.i.l.bf16 %v5467_v46 }
 0x6f0   :  { %v8660_v12 = vsel %vm175_vm0, %v3474_v36, %v3476_v34  ;;  %v3471_v0 = vrot.slane %v8654_v17, 1  ;;  %v8665_v29 = vmax.f32 %v3229_v18, %v5474_v32  ;;  %v3383_v5 = vsel %vm1592_vm4, %v5473_v39, %v5474_v32 }
 0x6f1   :  { %v3477_v3 = vsel %vm175_vm0, %v3473_v21, %v3475_v33  ;;  %v3534_v42 = vmax.f32 %v8637_v49, %v8660_v12  ;;  %v3480_v34 = vsel %vm175_vm0, %v3472_v40, %v3474_v36  ;;  %v8677_v47 = vmax.f32 %v8480_v43, %v3383_v5  ;;  %v5482_v6 = vpop.permute.xlu1 %5481  ;;  %v5477_v32 = vpop.permute.xlu0 %5476 }
 0x6f2   :  { %v3533_v24 = vmax.f32 %v8645_v31, %v3477_v3  ;;  %v3532_v18 = vmax.f32 %v8649_v7, %v3480_v34  ;;  %v3479_v51 = vsel %vm175_vm0, %v3471_v0, %v3473_v21  ;;  %v3470_v46 = vrot.slane %v8665_v29, 1 }
 0x6f3   :  { %v3531_v39 = vmax.f32 %v8654_v17, %v3479_v51  ;;  %v3469_v49 = vrot.slane %v8677_v47, 1  ;;  %v8688_v36 = vmax.f32 %v3227_v19, %v5469_v9  ;;  %v3382_v43 = vsel %vm1592_vm4, %v5468_v11, %v5469_v9 }
 0x6f4   :  { %v8693_v31 = vsel %vm175_vm0, %v3470_v46, %v3472_v40  ;;  %v8696_v7 = vmax.f32 %v8490_v8, %v3382_v43  ;;  %v5484_v21 = vunpack.i.h.bf16 %v5482_v6  ;;  %v5483_v12 = vunpack.i.l.bf16 %v5482_v6 }
 0x6f5   :  { %v8700_v17 = vsel %vm175_vm0, %v3469_v49, %v3471_v0  ;;  %v3530_v52 = vmax.f32 %v8665_v29, %v8693_v31  ;;  %v3468_v19 = vrot.slane %v8688_v36, 1  ;;  %v5479_v5 = vunpack.i.h.bf16 %v5477_v32  ;;  %v5492_v51 = vpop.permute.xlu1 %5491 }
 0x6f6   :  { %v3529_v9 = vmax.f32 %v8677_v47, %v8700_v17  ;;  %v3467_v40 = vrot.slane %v8696_v7, 1  ;;  %v8710_v8 = vmax.f32 %v3225_v13, %v5484_v21  ;;  %v3381_v11 = vsel %vm1592_vm4, %v5483_v12, %v5484_v21  ;;  %v5487_v12 = vpop.permute.xlu0 %5486 }
 0x6f7   :  { %v3484_v0 = vsel %vm175_vm0, %v3468_v19, %v3470_v46  ;;  %v8716_v3 = vmax.f32 %v8457_v27, %v3381_v11  ;;  %v8720_v34 = vmax.f32 %v3223_v15, %v5479_v5  ;;  %v5478_v6 = vunpack.i.l.bf16 %v5477_v32 }
 0x6f8   :  { %v3528_v43 = vmax.f32 %v8688_v36, %v3484_v0  ;;  %v8725_v48 = vsel %vm175_vm0, %v3467_v40, %v3469_v49  ;;  %v3466_v13 = vrot.slane %v8710_v8, 1  ;;  %v3552_v21 = vpack.c.bf16 %v3536_v22, %v3536_v22 }
 0x6f9   :  { %v3527_v27 = vmax.f32 %v8696_v7, %v8725_v48  ;;  %v3465_v46 = vrot.slane %v8716_v3, 1  ;;  %v3464_v30 = vrot.slane %v8720_v34, 1  ;;  %v3380_v15 = vsel %vm1592_vm4, %v5478_v6, %v5479_v5 }
 0x6fa   :  { %v8735_v32 = vsel %vm175_vm0, %v3466_v13, %v3468_v19  ;;  %v8738_v49 = vmax.f32 %v8466_v53, %v3380_v15  ;;  %4998 = vmatprep.subr.msk.bf16.mxu1 %vm3584_vm10, %v3552_v21  ;;  %v3505_v22 = vsel %vm175_vm0, %v3475_v33, %v9141_v54  ;;  %v5494_v36 = vunpack.i.h.bf16 %v5492_v51  ;;  %v5497_v19 = vpop.permute.xlu0 %5496 }
 0x6fb   :  { %v8749_v5 = vsel %vm175_vm0, %v3465_v46, %v3467_v40  ;;  %v8755_v53 = vsel %vm175_vm0, %v3464_v30, %v3466_v13  ;;  %v3535_v11 = vmax.f32 %v8627_v44, %v3505_v22  ;;  %v5493_v15 = vunpack.i.l.bf16 %v5492_v51  ;;  %v5502_v13 = vpop.permute.xlu1 %5501 }
 0x6fc   :  { %v3463_v6 = vrot.slane %v8738_v49, 1  ;;  %v8765_v40 = vmax.f32 %v3221_v14, %v5494_v36  ;;  %v5489_v54 = vunpack.i.h.bf16 %v5487_v12  ;;  %v5488_v1 = vunpack.i.l.bf16 %v5487_v12 }
 0x6fd   :  { %v3551_v21 = vpack.c.bf16 %v3535_v11, %v3535_v11  ;;  %v3550_v62 = vpack.c.bf16 %v3534_v42, %v3532_v18  ;;  %v3549_v0 = vpack.c.bf16 %v3533_v24, %v3531_v39  ;;  %v3379_v14 = vsel %vm1592_vm4, %v5493_v15, %v5494_v36 }
 0x6fe   :  { %v8769_v44 = vsel %vm175_vm0, %v3463_v6, %v3465_v46  ;;  %v3462_v22 = vrot.slane %v8765_v40, 1  ;;  %v8778_v51 = vmax.f32 %v3219_v41, %v5489_v54  ;;  %v8781_v12 = vmax.f32 %v8494_v37, %v3379_v14 }
 0x6ff   :  { %v3523_v33 = vmax.f32 %v8738_v49, %v8769_v44  ;;  %v3586_v35 = vsel %vm3584_vm10, %v3551_v21, 0  ;;  %v3378_v24 = vsel %vm1592_vm4, %v5488_v1, %v5489_v54  ;;  %v5504_v18 = vunpack.i.h.bf16 %v5502_v13  ;;  %v5512_v15 = vpop.permute.xlu1 %5511 }
 0x700   :  { %3592 = vmatpush1.bf16.msra.mxu1 %v3586_v35  ;;  %v8785_v42 = vsel %vm175_vm0, %v3462_v22, %v3464_v30  ;;  %v3460_v46 = vrot.slane %v8778_v51, 1  ;;  %v8792_v56 = vmax.f32 %v8500_v2, %v3378_v24  ;;  %v5503_v41 = vunpack.i.l.bf16 %v5502_v13  ;;  %v5507_v13 = vpop.permute.xlu0 %5506 }
 0x701   :  { %v3522_v39 = vmax.f32 %v8765_v40, %v8785_v42  ;;  %3593 = vmatprep.subr.bf16.mxu1 %v3550_v62  ;;  %v3461_v37 = vrot.slane %v8781_v12, 1  ;;  %v8797_v36 = vmax.f32 %v3217_v59, %v5504_v18  ;;  %v5499_v30 = vunpack.i.h.bf16 %v5497_v19 }
 0x702   :  { %v5498_v11 = vunpack.i.l.bf16 %v5497_v19  ;;  %v3492_v1 = vsel %vm175_vm0, %v3460_v46, %v3462_v22  ;;  %v3459_v54 = vrot.slane %v8792_v56, 1  ;;  %v3377_v21 = vsel %vm1592_vm4, %v5503_v41, %v5504_v18 }
 0x703   :  { %v3548_v2 = vpack.c.bf16 %v3530_v52, %v3528_v43  ;;  %v3489_v62 = vsel %vm175_vm0, %v3461_v37, %v3463_v6  ;;  %v3520_v38 = vmax.f32 %v8778_v51, %v3492_v1  ;;  %v3458_v59 = vrot.slane %v8797_v36, 1 }
 0x704   :  { %3594 = vmatpush1.bf16.msra.mxu1 %v3549_v0  ;;  %v8811_v19 = vmax.f32 %v8478_v58, %v3377_v21  ;;  %v3521_v22 = vmax.f32 %v8781_v12, %v3489_v62  ;;  %v3491_v35 = vsel %vm175_vm0, %v3459_v54, %v3461_v37  ;;  %v3426_v29 = vmax.f32 %v3215_v60, %v5499_v30 }
 0x705   :  { %v3376_v31 = vsel %vm1592_vm4, %v5498_v11, %v5499_v30  ;;  %3595 = vmatprep.subr.bf16.mxu1 %v3548_v2  ;;  %v3519_v52 = vmax.f32 %v8792_v56, %v3491_v35  ;;  %v3494_v58 = vsel %vm175_vm0, %v3458_v59, %v3460_v46  ;;  %v3547_v28 = vpack.c.bf16 %v3529_v9, %v3527_v27  ;;  %v5517_v27 = vpop.permute.xlu0 %5516 }
 0x706   :  { %v3457_v43 = vrot.slane %v8811_v19, 1  ;;  %v3425_v0 = vmax.f32 %v8488_v61, %v3376_v31  ;;  %v3518_v6 = vmax.f32 %v8797_v36, %v3494_v58  ;;  %v3456_v14 = vrot.slane %v3426_v29, 1 }
 0x707   :  { %v5514_v60 = vunpack.i.h.bf16 %v5512_v15  ;;  %v5513_v24 = vunpack.i.l.bf16 %v5512_v15  ;;  %v5509_v18 = vunpack.i.h.bf16 %v5507_v13  ;;  %v5508_v48 = vunpack.i.l.bf16 %v5507_v13 }
 0x708   :  { %v3493_v51 = vsel %vm175_vm0, %v3457_v43, %v3459_v54  ;;  %v3455_v12 = vrot.slane %v3425_v0, 1  ;;  %v3496_v61 = vsel %vm175_vm0, %v3456_v14, %v3458_v59  ;;  %3596 = vmatpush1.bf16.msra.mxu1 %v3547_v28  ;;  %v9414_v1 = vmax.f32 %v8710_v8, %v8735_v32 }
 0x709   :  { %v3517_v46 = vmax.f32 %v8811_v19, %v3493_v51  ;;  %v3424_v7 = vmax.f32 %v3213_v57, %v5514_v60  ;;  %v3516_v56 = vmax.f32 %v3426_v29, %v3496_v61  ;;  %v3375_v17 = vsel %vm1592_vm4, %v5513_v24, %v5514_v60  ;;  %v5627_v51 = vld [vmem:[%s9069_s7] sm:$0xff]   ;;  %v5640_v61 = vld [vmem:[#allocation6 + $0x78] sm:$0xff]  }
 0x70a   :  { %v3495_v47 = vsel %vm175_vm0, %v3455_v12, %v3457_v43  ;;  %v3422_v9 = vmax.f32 %v3211_v25, %v5509_v18  ;;  %v3423_v36 = vmax.f32 %v8506_v16, %v3375_v17  ;;  %v3374_v30 = vsel %vm1592_vm4, %v5508_v48, %v5509_v18  ;;  %v5636_v24 = vld [vmem:[#allocation6 + $0x88] sm:$0xff]   ;;  %v5629_v18 = vld [vmem:[%s9069_s7 + $0x10] sm:$0xff]  }
 0x70b   :  { %v3515_v41 = vmax.f32 %v3425_v0, %v3495_v47  ;;  %v3454_v37 = vrot.slane %v3424_v7, 1  ;;  %v3421_v26 = vmax.f32 %v8510_v10, %v3374_v30  ;;  %v9413_v57 = vmax.f32 %v8720_v34, %v8755_v53  ;;  %v5644_v48 = vld [vmem:[#allocation6 + $0x68] sm:$0xff]   ;;  %v5648_v47 = vld [vmem:[#allocation6 + $0xc0] sm:$0xff]   ;;  %v5651_v17 = vld [vmem:[#allocation6 + $0x50] sm:$0xff]  }
 0x70c   :  { %v3452_v11 = vrot.slane %v3422_v9, 1  ;;  %v9415_v23 = vmax.f32 %v8716_v3, %v8749_v5  ;;  %v3453_v16 = vrot.slane %v3423_v36, 1  ;;  %v5519_v2 = vunpack.i.h.bf16 %v5517_v27  ;;  %3948 = vmatpush2.bf16.msra.mxu0 %v5651_v17  ;;  %v5690_v17 = vld [vmem:[#allocation6 + $0x1b8] sm:$0xff]  }
 0x70d   :  { %v3546_v54 = vpack.c.bf16 %v9414_v1, %v9413_v57  ;;  %v3498_v21 = vsel %vm175_vm0, %v3454_v37, %v3456_v14  ;;  %v5518_v10 = vunpack.i.l.bf16 %v5517_v27  ;;  %v3451_v53 = vrot.slane %v3421_v26, 1  ;;  %3949 = vmatprep.subr.bf16.mxu0 %v9410_v20  ;;  %v5653_v27 = vld [vmem:[#allocation6 + $0x48] sm:$0xff]  }
 0x70e   :  { %v3545_v25 = vpack.c.bf16 %v9415_v23, %v3523_v33  ;;  %v3514_v62 = vmax.f32 %v3424_v7, %v3498_v21  ;;  %v3500_v34 = vsel %vm175_vm0, %v3452_v11, %v3454_v37  ;;  %v3544_v8 = vpack.c.bf16 %v3522_v39, %v3520_v38  ;;  %v5642_v7 = vld [vmem:[#allocation6 + $0x70] sm:$0xff]   ;;  %v5655_v37 = vld [vmem:[#allocation6 + $0x40] sm:$0xff]   ;;  %v5656_v21 = vld [vmem:[#allocation6 + $0x108] sm:$0xff]  }
 0x70f   :  { %3597 = vmatprep.subr.bf16.mxu1 %v3546_v54  ;;  %v3497_v3 = vsel %vm175_vm0, %v3453_v16, %v3455_v12  ;;  %v3512_v32 = vmax.f32 %v3422_v9, %v3500_v34  ;;  %v9416_v49 = vmax.f32 %v8384_v50, 0.0  ;;  %v3373_v33 = vsel %vm1592_vm4, %v5518_v10, %v5519_v2  ;;  %v5634_v12 = vld [vmem:[#allocation6 + $0x90] sm:$0xff]   ;;  %v5650_v9 = vld [vmem:[#allocation6 + $0xb8] sm:$0xff]  }
 0x710   :  { %3598 = vmatpush1.bf16.msra.mxu1 %v3545_v25  ;;  %v3499_v44 = vsel %vm175_vm0, %v3451_v53, %v3453_v16  ;;  %v3419_v59 = vmax.f32 %v8504_v63, %v3373_v33  ;;  %v3543_v19 = vpack.c.bf16 %v3521_v22, %v3519_v52  ;;  %v3542_v40 = vpack.c.bf16 %v3518_v6, %v3516_v56  ;;  %v5646_v56 = vld [vmem:[#allocation6 + $0xc8] sm:$0xff]   ;;  %v5657_v23 = vld [vmem:[#allocation6 + $0x170] sm:$0xff]   ;;  %v5663_v33 = vld [vmem:[#allocation6 + $0x158] sm:$0xff]  }
 0x711   :  { %v3420_v5 = vmax.f32 %v9416_v49, %v5519_v2  ;;  %3599 = vmatprep.subr.bf16.mxu1 %v3544_v8  ;;  %v3513_v42 = vmax.f32 %v3423_v36, %v3497_v3  ;;  %v3511_v39 = vmax.f32 %v3421_v26, %v3499_v44  ;;  %v3541_v50 = vpack.c.bf16 %v3517_v46, %v3515_v41  ;;  %v5638_v46 = vld [vmem:[#allocation6 + $0x80] sm:$0xff]   ;;  %v5652_v41 = vld [vmem:[#allocation6 + $0xb0] sm:$0xff]   ;;  %v5654_v36 = vld [vmem:[#allocation6 + $0xa8] sm:$0xff]  }
 0x712   :  { %v3449_v38 = vrot.slane %v3419_v59, 1  ;;  %v3540_v35 = vpack.c.bf16 %v3514_v62, %v3512_v32  ;;  %v9417_v29 = vrot.slane %v8623_v55, 1  ;;  %v9418_v43 = vrot.slane %v8630_v45, 1  ;;  %3950 = vmatpush2.bf16.msra.mxu0 %v5653_v27  ;;  %v5659_v62 = vld [vmem:[#allocation6 + $0x168] sm:$0xff]   ;;  %v5661_v3 = vld [vmem:[#allocation6 + $0x160] sm:$0xff]   ;;  %v5660_v49 = vld [vmem:[#allocation6 + $0xf8] sm:$0xff]  }
 0x713   :  { %v3450_v15 = vrot.slane %v3420_v5, 1  ;;  %v3539_v6 = vpack.c.bf16 %v3513_v42, %v3511_v39  ;;  %3951 = vmatprep.subr.bf16.mxu0 %v9410_v20  ;;  %v5662_v44 = vld [vmem:[#allocation6 + $0xf0] sm:$0xff]   ;;  %v5669_v42 = vld [vmem:[#allocation6 + $0x140] sm:$0xff]   ;;  %v5668_v39 = vld [vmem:[#allocation6 + $0xd8] sm:$0xff]  }
 0x714   :  { %3600 = vmatpush1.bf16.msra.mxu1 %v3543_v19  ;;  %v3501_v63 = vsel %vm175_vm0, %v3449_v38, %v3451_v53  ;;  %v3503_v58 = vsel %vm175_vm0, %v9418_v43, %v3449_v38  ;;  %v5658_v53 = vld [vmem:[#allocation6 + $0x100] sm:$0xff]   ;;  %v5664_v19 = vld [vmem:[#allocation6 + $0xe8] sm:$0xff]   ;;  %v5671_v38 = vld [vmem:[#allocation6 + $0x138] sm:$0xff]  }
 0x715   :  { %v3502_v13 = vsel %vm175_vm0, %v3450_v15, %v3452_v11  ;;  %v3504_v31 = vsel %vm175_vm0, %v9417_v29, %v3450_v15  ;;  %3601 = vmatprep.subr.bf16.mxu1 %v3542_v40  ;;  %v3509_v0 = vmax.f32 %v3419_v59, %v3501_v63  ;;  %v3507_v14 = vmax.f32 %v8630_v45, %v3503_v58  ;;  %v5628_v45 = vld [vmem:[%s9069_s7 + $0x8] sm:$0xff]   ;;  %v5666_v40 = vld [vmem:[#allocation6 + $0xe0] sm:$0xff]  }
 0x716   :  { %v3510_v22 = vmax.f32 %v3420_v5, %v3502_v13  ;;  %v3508_v52 = vmax.f32 %v8623_v55, %v3504_v31  ;;  %v5630_v55 = vld [vmem:[#allocation6 + $0xa0] sm:$0xff]   ;;  %3952 = vmatpush2.bf16.msra.mxu0 %v5655_v37  ;;  %v5665_v59 = vld [vmem:[#allocation6 + $0x150] sm:$0xff]   ;;  %v5667_v15 = vld [vmem:[#allocation6 + $0x148] sm:$0xff]  }
 0x717   :  { %v3537_v60 = vpack.c.bf16 %v3509_v0, %v3507_v14  ;;  %4223 = vmatprep.subr.bf16.mxu0 %v9410_v20  ;;  %v5670_v13 = vld [vmem:[#allocation6 + $0xd0] sm:$0xff]   ;;  %v5676_v58 = vld [vmem:[#allocation6 + $0x120] sm:$0xff]   ;;  %v5678_v14 = vld [vmem:[#allocation6 + $0x118] sm:$0xff]  }
 0x718   :  { %3602 = vmatpush1.bf16.msra.mxu1 %v3541_v50  ;;  %v3538_v28 = vpack.c.bf16 %v3510_v22, %v3508_v52  ;;  %v5673_v50 = vld [vmem:[#allocation6 + $0x198] sm:$0xff]   ;;  %v5672_v29 = vld [vmem:[#allocation6 + $0x130] sm:$0xff]   ;;  %v5674_v22 = vld [vmem:[#allocation6 + $0x128] sm:$0xff]  }
 0x719   :  { %3603 = vmatprep.subr.bf16.mxu1 %v3540_v35  ;;  %v5675_v31 = vld [vmem:[#allocation6 + $0x190] sm:$0xff]   ;;  %v5677_v52 = vld [vmem:[#allocation6 + $0x188] sm:$0xff]   ;;  %v5679_v0 = vld [vmem:[#allocation6 + $0x180] sm:$0xff]  }
 0x71a   :  { %v5692_v27 = vld [vmem:[#allocation6 + $0x1b0] sm:$0xff]   ;;  %v5694_v37 = vld [vmem:[#allocation6 + $0x1a8] sm:$0xff]  }
 0x71c   :  { %3604 = vmatpush1.bf16.msra.mxu1 %v3539_v6 }
 0x71d   :  { %3605 = vmatprep.subr.bf16.mxu1 %v3538_v28  ;;  %v5681_v28 = vld [vmem:[#allocation6 + $0x178] sm:$0xff]  }
 0x720   :  { %3606 = vmatpush1.bf16.msra.mxu1 %v3537_v60 }
 0x721   :  { %3800 = vmatprep.subr.bf16.mxu1 %v9410_v20 }
 0x723   :  { %4999 = vmatmul.mubr.msk.bf16.vlgmr.msra.gmra.mxu1 %vm3574_vm11, %v5627_v51 }
 0x724   :  { %3633 = vmatprep.mubr.bf16.mxu1 %v9410_v20  ;;  %3801 = vmatpush1.bf16.msra.mxu1 %v5630_v55  ;;  %v5680_v55 = vld [vmem:[#allocation6 + $0x110] sm:$0xff]  }
 0x725   :  { %3802 = vmatprep.subr.bf16.mxu1 %v9410_v20 }
 0x728   :  { %3803 = vmatpush1.bf16.msra.mxu1 %v5632_v4  ;;  %v5683_v4 = vld [vmem:[#allocation6 + $0x240] sm:$0xff]  }
 0x729   :  { %3804 = vmatprep.subr.bf16.mxu1 %v9410_v20 }
 0x72b   :  { %5000 = vmatmul.mubr.msk.bf16.gmra.mxu1 %vm3574_vm11, %v5628_v45 }
 0x72c   :  { %3643 = vmatprep.mubr.bf16.mxu1 %v9410_v20  ;;  %3805 = vmatpush1.bf16.msra.mxu1 %v5634_v12 }
 0x72d   :  { %3806 = vmatprep.subr.bf16.mxu1 %v9410_v20 }
 0x730   :  { %3807 = vmatpush1.bf16.msra.mxu1 %v5636_v24  ;;  %v5682_v24 = vld [vmem:[#allocation6 + $0x1d8] sm:$0xff]  }
 0x731   :  { %3808 = vmatprep.subr.bf16.mxu1 %v9410_v20 }
 0x733   :  { %5001 = vmatmul.mubr.msk.bf16.gmra.mxu1 %vm3574_vm11, %v5629_v18  ;;  %v5685_v18 = vld [vmem:[#allocation6 + $0x238] sm:$0xff]  }
 0x734   :  { %3809 = vmatpush1.bf16.msra.mxu1 %v5638_v46  ;;  %v5684_v46 = vld [vmem:[#allocation6 + $0x1d0] sm:$0xff]  }
 0x735   :  { %3810 = vmatprep.subr.bf16.mxu1 %v9410_v20 }
 0x738   :  { %3811 = vmatpush1.bf16.msra.mxu1 %v5640_v61  ;;  %v5687_v61 = vld [vmem:[#allocation6 + $0x230] sm:$0xff]  }
 0x739   :  { %3812 = vmatprep.subr.bf16.mxu1 %v9410_v20 }
 0x73c   :  { %3813 = vmatpush1.bf16.msra.mxu1 %v5642_v7  ;;  %v5686_v7 = vld [vmem:[#allocation6 + $0x1c8] sm:$0xff]  }
 0x73d   :  { %3814 = vmatprep.subr.bf16.mxu1 %v9410_v20 }
 0x740   :  { %3815 = vmatpush1.bf16.msra.mxu1 %v5644_v48  ;;  %v5689_v48 = vld [vmem:[#allocation6 + $0x228] sm:$0xff]  }
 0x741   :  { %3822 = vmatprep.subr.bf16.mxu1 %v9410_v20 }
 0x744   :  { %3823 = vmatpush2.bf16.msra.mxu1 %v5646_v56  ;;  %v5688_v56 = vld [vmem:[#allocation6 + $0x1c0] sm:$0xff]  }
 0x745   :  { %3824 = vmatprep.subr.bf16.mxu1 %v9410_v20 }
 0x748   :  { %3825 = vmatpush2.bf16.msra.mxu1 %v5648_v47  ;;  %v5691_v47 = vld [vmem:[#allocation6 + $0x220] sm:$0xff]  }
 0x749   :  { %3826 = vmatprep.subr.bf16.mxu1 %v9410_v20 }
 0x74c   :  { %3827 = vmatpush2.bf16.msra.mxu1 %v5650_v9  ;;  %v5693_v9 = vld [vmem:[#allocation6 + $0x218] sm:$0xff]  }
 0x74d   :  { %3828 = vmatprep.subr.bf16.mxu1 %v9410_v20 }
 0x750   :  { %3829 = vmatpush2.bf16.msra.mxu1 %v5652_v41  ;;  %v5695_v41 = vld [vmem:[#allocation6 + $0x210] sm:$0xff]  }
 0x751   :  { %3830 = vmatprep.subr.bf16.mxu1 %v9410_v20 }
 0x754   :  { %3831 = vmatpush2.bf16.msra.mxu1 %v5654_v36  ;;  %v5697_v36 = vld [vmem:[#allocation6 + $0x208] sm:$0xff]  }
 0x755   :  { %4069 = vmatprep.subr.bf16.mxu1 %v9410_v20 }
 0x7e3   :  { %v3625_v30 = vpop.f32.mrf.mxu1 }
 0x7e5   :  { %v3627_v11 = vpop.f32.mrf.mxu1 }
 0x7e7   :  { %v3629_v26 = vpop.f32.mrf.mxu1 }
 0x7e8   :  { %v3654_v57 = vpack.c.bf16 %v3629_v26, %v3625_v30  ;;  %v5696_v30 = vld [vmem:[#allocation6 + $0x1a0] sm:$0xff]  }
 0x7e9   :  { %v3631_v1 = vpop.f32.mrf.mxu1  ;;  %v5698_v26 = vld [vmem:[#allocation6 + $0x200] sm:$0xff]  }
 0x7ea   :  { %v3655_v54 = vpack.c.bf16 %v3631_v1, %v3627_v11  ;;  %v3715_v2 = vrot.slane %v3654_v57, 4  ;;  %v5699_v11 = vld [vmem:[#allocation6 + $0x268] sm:$0xff]   ;;  %v5700_v1 = vld [vmem:[#allocation6 + $0x1f8] sm:$0xff]  }
 0x7eb   :  { %v8918_v25 = vpop.f32.mrf.mxu1 }
 0x7ec   :  { %v3716_v16 = vrot.slane %v3655_v54, 4  ;;  %5029 = vmatprep.mubr.msk.bf16.mxu0 %vm3796_vm12, %v3655_v54  ;;  %v5703_v54 = vld [vmem:[#allocation6 + $0x258] sm:$0xff]  }
 0x7ed   :  { %3954 = vmatmul.mubr.bf16.vlgmr.msra.gmra.mxu0 %v3654_v57  ;;  %v3637_v10 = vpop.f32.mrf.mxu1  ;;  %v5701_v57 = vld [vmem:[#allocation6 + $0x260] sm:$0xff]  }
 0x7ee   :  { %5015 = vmatprep.mubr.msk.bf16.mxu1 %vm3796_vm12, %v3716_v16  ;;  %4224 = vmatpush1.bf16.msra.mxu0 %v5657_v23  ;;  %v5702_v23 = vld [vmem:[#allocation6 + $0x1f0] sm:$0xff]   ;;  %v5704_v16 = vld [vmem:[#allocation6 + $0x1e8] sm:$0xff]  }
 0x7ef   :  { %3833 = vmatmul.mubr.bf16.vlgmr.msra.gmra.mxu1 %v3715_v2  ;;  %4225 = vmatprep.subr.bf16.mxu0 %v9410_v20  ;;  %v8923_v34 = vpop.f32.mrf.mxu1 }
 0x7f0   :  { %4070 = vmatpush1.bf16.msra.mxu1 %v5656_v21  ;;  %v3656_v51 = vpack.c.bf16 %v8923_v34, %v8918_v25  ;;  %v5705_v25 = vld [vmem:[#allocation6 + $0x250] sm:$0xff]   ;;  %v5707_v21 = vld [vmem:[#allocation6 + $0x248] sm:$0xff]   ;;  %v5708_v34 = vld [vmem:[%s9072_s10 + $0x38] ss:$0 sps:$4 sm:$0xff]  }
 0x7f1   :  { %4071 = vmatprep.subr.bf16.mxu1 %v9410_v20  ;;  %v3641_v8 = vpop.f32.mrf.mxu1 }
 0x7f2   :  { %4226 = vmatpush1.bf16.msra.mxu0 %v5659_v62  ;;  %v3657_v32 = vpack.c.bf16 %v3641_v8, %v3637_v10  ;;  %v4139_v12 = vrot.slane %v3656_v51, 4  ;;  %v5706_v10 = vld [vmem:[#allocation6 + $0x1e0] sm:$0xff]   ;;  %v4648_v8 = vsel %vm3584_vm10, %v5708_v34, 0 }
 0x7f3   :  { %4227 = vmatprep.subr.bf16.mxu0 %v9410_v20  ;;  %v8941_v35 = vpop.f32.mrf.mxu1 }
 0x7f4   :  { %4072 = vmatpush1.bf16.msra.mxu1 %v5658_v53  ;;  %v4140_v5 = vrot.slane %v3657_v32, 4  ;;  %5043 = vmatprep.mubr.msk.bf16.mxu1 %vm3796_vm12, %v3657_v32  ;;  %v5801_v53 = vmov 0.0   ;;  %v5711_v32 = vld [vmem:[%s9072_s10 + $0x20] sm:$0xff]  }
 0x7f5   :  { %4073 = vmatprep.subr.bf16.mxu1 %v9410_v20  ;;  %v3647_v63 = vpop.f32.mrf.mxu1 }
 0x7f6   :  { %4228 = vmatpush1.bf16.msra.mxu0 %v5661_v3  ;;  %5057 = vmatprep.mubr.msk.bf16.mxu0 %vm3796_vm12, %v4140_v5  ;;  %v5710_v3 = vld [vmem:[%s9072_s10 + $0x28] sm:$0xff]   ;;  %v5713_v5 = vld [vmem:[%s9072_s10 + $0x10] sm:$0xff]  }
 0x7f7   :  { %4229 = vmatprep.subr.bf16.mxu0 %v9410_v20  ;;  %v8947_v43 = vpop.f32.mrf.mxu1 }
 0x7f8   :  { %4074 = vmatpush1.bf16.msra.mxu1 %v5660_v49  ;;  %v3658_v2 = vpack.c.bf16 %v8947_v43, %v8941_v35  ;;  %v5712_v49 = vld [vmem:[%s9072_s10 + $0x18] sm:$0xff]  }
 0x7f9   :  { %4075 = vmatprep.subr.bf16.mxu1 %v9410_v20  ;;  %v3651_v6 = vpop.f32.mrf.mxu1 }
 0x7fa   :  { %4230 = vmatpush1.bf16.msra.mxu0 %v5663_v33  ;;  %v3659_v60 = vpack.c.bf16 %v3651_v6, %v3647_v63  ;;  %v4442_v62 = vrot.slane %v3658_v2, 4  ;;  %v5714_v33 = vld [vmem:[%s9072_s10 + $0x8] sm:$0xff]  }
 0x7fb   :  { %4231 = vmatprep.subr.bf16.mxu0 %v9410_v20 }
 0x7fc   :  { %4076 = vmatpush1.bf16.msra.mxu1 %v5662_v44  ;;  %v4443_v45 = vrot.slane %v3659_v60, 4  ;;  %v5715_v44 = vld [vmem:[%s9072_s10] sm:$0xff]  }
 0x7fd   :  { %4077 = vmatprep.subr.bf16.mxu1 %v9410_v20 }
 0x7fe   :  { %4232 = vmatpush1.bf16.msra.mxu0 %v5665_v59  ;;  %v5716_v59 = vld [vmem:[%s9074_s12 + $0x28] ss:$0 sps:$4 sm:$0x33]  }
 0x7ff   :  { %4233 = vmatprep.subr.bf16.mxu0 %v9410_v20 }
 0x800   :  { %4078 = vmatpush1.bf16.msra.mxu1 %v5664_v19  ;;  %v4748_v19 = vsel %vm2313_vm5, %v5716_v59, 0 }
 0x801   :  { %4079 = vmatprep.subr.bf16.mxu1 %v9410_v20 }
 0x802   :  { %4234 = vmatpush1.bf16.msra.mxu0 %v5667_v15  ;;  %v5717_v15 = vld [vmem:[%s9074_s12 + $0x20] sm:$0xff]  }
 0x803   :  { %4235 = vmatprep.subr.bf16.mxu0 %v9410_v20 }
 0x804   :  { %4080 = vmatpush1.bf16.msra.mxu1 %v5666_v40  ;;  %v5718_v40 = vld [vmem:[%s9074_s12 + $0x18] sm:$0xff]  }
 0x805   :  { %4081 = vmatprep.subr.bf16.mxu1 %v9410_v20 }
 0x806   :  { %4236 = vmatpush1.bf16.msra.mxu0 %v5669_v42 }
 0x807   :  { %4237 = vmatprep.subr.bf16.mxu0 %v9410_v20 }
 0x808   :  { %4082 = vmatpush1.bf16.msra.mxu1 %v5668_v39  ;;  %v5719_v39 = vld [vmem:[%s9074_s12 + $0x10] sm:$0xff]  }
 0x809   :  { %4083 = vmatprep.subr.bf16.mxu1 %v9410_v20 }
 0x80a   :  { %4238 = vmatpush1.bf16.msra.mxu0 %v5671_v38 }
 0x80b   :  { %4245 = vmatprep.subr.bf16.mxu0 %v9410_v20 }
 0x80c   :  { %4084 = vmatpush1.bf16.msra.mxu1 %v5670_v13 }
 0x80d   :  { %4091 = vmatprep.subr.bf16.mxu1 %v9410_v20 }
 0x80e   :  { %4246 = vmatpush2.bf16.msra.mxu0 %v5673_v50 }
 0x80f   :  { %4247 = vmatprep.subr.bf16.mxu0 %v9410_v20 }
 0x810   :  { %4092 = vmatpush2.bf16.msra.mxu1 %v5672_v29 }
 0x811   :  { %4093 = vmatprep.subr.bf16.mxu1 %v9410_v20 }
 0x812   :  { %4248 = vmatpush2.bf16.msra.mxu0 %v5675_v31 }
 0x813   :  { %4249 = vmatprep.subr.bf16.mxu0 %v9410_v20 }
 0x814   :  { %4094 = vmatpush2.bf16.msra.mxu1 %v5674_v22 }
 0x815   :  { %4095 = vmatprep.subr.bf16.mxu1 %v9410_v20 }
 0x816   :  { %4250 = vmatpush2.bf16.msra.mxu0 %v5677_v52 }
 0x817   :  { %4251 = vmatprep.subr.bf16.mxu0 %v9410_v20 }
 0x818   :  { %4096 = vmatpush2.bf16.msra.mxu1 %v5676_v58 }
 0x819   :  { %4097 = vmatprep.subr.bf16.mxu1 %v9410_v20 }
 0x81a   :  { %4252 = vmatpush2.bf16.msra.mxu0 %v5679_v0 }
 0x81b   :  { %4253 = vmatprep.subr.bf16.mxu0 %v9410_v20 }
 0x81c   :  { %4098 = vmatpush2.bf16.msra.mxu1 %v5678_v14 }
 0x81d   :  { %4099 = vmatprep.subr.bf16.mxu1 %v9410_v20 }
 0x81e   :  { %4254 = vmatpush2.bf16.msra.mxu0 %v5681_v28 }
 0x81f   :  { %4526 = vmatprep.subr.bf16.mxu0 %v9410_v20 }
 0x820   :  { %4100 = vmatpush2.bf16.msra.mxu1 %v5680_v55 }
 0x821   :  { %4372 = vmatprep.subr.bf16.mxu1 %v9410_v20  ;;  %4256 = vmatmul.mubr.bf16.vlgmr.msra.gmra.mxu0 %v4139_v12 }
 0x822   :  { %4527 = vmatpush1.bf16.msra.mxu0 %v5683_v4  ;;  %5085 = vmatprep.mubr.msk.bf16.mxu0 %vm3796_vm12, %v4443_v45 }
 0x823   :  { %4102 = vmatmul.mubr.bf16.vlgmr.msra.gmra.mxu1 %v3656_v51  ;;  %4528 = vmatprep.subr.bf16.mxu0 %v9410_v20 }
 0x824   :  { %4373 = vmatpush1.bf16.msra.mxu1 %v5682_v24  ;;  %5071 = vmatprep.mubr.msk.bf16.mxu1 %vm3796_vm12, %v3659_v60 }
 0x825   :  { %4374 = vmatprep.subr.bf16.mxu1 %v9410_v20 }
 0x826   :  { %4529 = vmatpush1.bf16.msra.mxu0 %v5685_v18  ;;  %v5086_v18 = vld [vmem:[%s9071_s9] ss:$0 sm:$0xff] }
 0x827   :  { %4530 = vmatprep.subr.bf16.mxu0 %v9410_v20 }
 0x828   :  { %4375 = vmatpush1.bf16.msra.mxu1 %v5684_v46 }
 0x829   :  { %4376 = vmatprep.subr.bf16.mxu1 %v9410_v20 }
 0x82a   :  { %4531 = vmatpush1.bf16.msra.mxu0 %v5687_v61 }
 0x82b   :  { %4532 = vmatprep.subr.bf16.mxu0 %v9410_v20 }
 0x82c   :  { %4377 = vmatpush1.bf16.msra.mxu1 %v5686_v7 }
 0x82d   :  { %4378 = vmatprep.subr.bf16.mxu1 %v9410_v20 }
 0x82e   :  { %4533 = vmatpush1.bf16.msra.mxu0 %v5689_v48 }
 0x82f   :  { %4534 = vmatprep.subr.bf16.mxu0 %v9410_v20 }
 0x830   :  { %4379 = vmatpush1.bf16.msra.mxu1 %v5688_v56 }
 0x831   :  { %4380 = vmatprep.subr.bf16.mxu1 %v9410_v20 }
 0x832   :  { %4535 = vmatpush1.bf16.msra.mxu0 %v5691_v47 }
 0x833   :  { %4536 = vmatprep.subr.bf16.mxu0 %v9410_v20 }
 0x834   :  { %4381 = vmatpush1.bf16.msra.mxu1 %v5690_v17 }
 0x835   :  { %4382 = vmatprep.subr.bf16.mxu1 %v9410_v20 }
 0x836   :  { %4537 = vmatpush1.bf16.msra.mxu0 %v5693_v9 }
 0x837   :  { %4538 = vmatprep.subr.bf16.mxu0 %v9410_v20 }
 0x838   :  { %4383 = vmatpush1.bf16.msra.mxu1 %v5692_v27 }
 0x839   :  { %4384 = vmatprep.subr.bf16.mxu1 %v9410_v20 }
 0x83a   :  { %4539 = vmatpush1.bf16.msra.mxu0 %v5695_v41  ;;  %v5720_v41 = vld [vmem:[%s9074_s12 + $0x8] sm:$0xff]  }
 0x83b   :  { %4540 = vmatprep.subr.bf16.mxu0 %v9410_v20 }
 0x83c   :  { %4385 = vmatpush1.bf16.msra.mxu1 %v5694_v37  ;;  %v5721_v37 = vld [vmem:[%s9074_s12] sm:$0xff]  }
 0x83d   :  { %4386 = vmatprep.subr.bf16.mxu1 %v9410_v20 }
 0x83e   :  { %4541 = vmatpush1.bf16.msra.mxu0 %v5697_v36  ;;  %v5087_v36 = vld [vmem:[%s9073_s11] ss:$0 sm:$0xff] }
 0x83f   :  { %4548 = vmatprep.subr.bf16.mxu0 %v9410_v20 }
 0x840   :  { %4387 = vmatpush1.bf16.msra.mxu1 %v5696_v30 }
 0x841   :  { %4394 = vmatprep.subr.bf16.mxu1 %v9410_v20 }
 0x842   :  { %4549 = vmatpush2.bf16.msra.mxu0 %v5699_v11 }
 0x843   :  { %4550 = vmatprep.subr.bf16.mxu0 %v9410_v20 }
 0x844   :  { %4395 = vmatpush2.bf16.msra.mxu1 %v5698_v26 }
 0x845   :  { %4396 = vmatprep.subr.bf16.mxu1 %v9410_v20 }
 0x846   :  { %4551 = vmatpush2.bf16.msra.mxu0 %v5701_v57 }
 0x847   :  { %4552 = vmatprep.subr.bf16.mxu0 %v9410_v20 }
 0x848   :  { %4397 = vmatpush2.bf16.msra.mxu1 %v5700_v1 }
 0x849   :  { %4398 = vmatprep.subr.bf16.mxu1 %v9410_v20 }
 0x84a   :  { %4553 = vmatpush2.bf16.msra.mxu0 %v5703_v54 }
 0x84b   :  { %4554 = vmatprep.subr.bf16.mxu0 %v9410_v20 }
 0x84c   :  { %4399 = vmatpush2.bf16.msra.mxu1 %v5702_v23 }
 0x84d   :  { %4400 = vmatprep.subr.bf16.mxu1 %v9410_v20 }
 0x84e   :  { %4555 = vmatpush2.bf16.msra.mxu0 %v5705_v25  ;;  %v5097_v25 = vld [vmem:[%s9075_s13] ss:$0 sm:$0xff] }
 0x84f   :  { %4556 = vmatprep.subr.bf16.mxu0 %v9410_v20 }
 0x850   :  { %4401 = vmatpush2.bf16.msra.mxu1 %v5704_v16 }
 0x851   :  { %4402 = vmatprep.subr.bf16.mxu1 %v9410_v20  ;;  %v5709_v20 = vld [vmem:[%s9072_s10 + $0x30] sm:$0xff]  }
 0x852   :  { %4557 = vmatpush2.bf16.msra.mxu0 %v5707_v21 }
 0x853   :  { %5141 = vmatprep.subr.bf16.mxu0 %v5801_v53 }
 0x854   :  { %4403 = vmatpush2.bf16.msra.mxu1 %v5706_v10 }
 0x855   :  { %4559 = vmatmul.mubr.bf16.vlgmr.msra.gmra.mxu0 %v4442_v62  ;;  %5121 = vmatprep.subr.bf16.mxu1 %v5801_v53 }
 0x856   :  { %5153 = vmatprep.mubr.msk.bf16.mxu0 %vm5802_vm13, %v5801_v53  ;;  %5142 = vmatpush3.bf16.msra.mxu0 %v4748_v19 }
 0x857   :  { %4405 = vmatmul.mubr.bf16.vlgmr.msra.gmra.mxu1 %v3658_v2  ;;  %5143 = vmatprep.subr.bf16.mxu0 %v5801_v53 }
 0x858   :  { %5122 = vmatpush3.bf16.msra.mxu1 %v4648_v8  ;;  %5137 = vmatprep.mubr.msk.bf16.mxu1 %vm5802_vm13, %v5801_v53 }
 0x859   :  { %5123 = vmatprep.subr.bf16.mxu1 %v5801_v53 }
 0x85a   :  { %5144 = vmatpush3.bf16.msra.mxu0 %v5717_v15 }
 0x85b   :  { %5145 = vmatprep.subr.bf16.mxu0 %v5801_v53 }
 0x85c   :  { %5124 = vmatpush3.bf16.msra.mxu1 %v5709_v20 }
 0x85d   :  { %5125 = vmatprep.subr.bf16.mxu1 %v5801_v53 }
 0x85e   :  { %5146 = vmatpush3.bf16.msra.mxu0 %v5718_v40 }
 0x85f   :  { %5147 = vmatprep.subr.bf16.mxu0 %v5801_v53 }
 0x860   :  { %5126 = vmatpush3.bf16.msra.mxu1 %v5710_v3 }
 0x861   :  { %5127 = vmatprep.subr.bf16.mxu1 %v5801_v53 }
 0x862   :  { %5148 = vmatpush3.bf16.msra.mxu0 %v5719_v39 }
 0x863   :  { %5149 = vmatprep.subr.bf16.mxu0 %v5801_v53 }
 0x864   :  { %5128 = vmatpush3.bf16.msra.mxu1 %v5711_v32 }
 0x865   :  { %5129 = vmatprep.subr.bf16.mxu1 %v5801_v53 }
 0x866   :  { %5150 = vmatpush3.bf16.msra.mxu0 %v5720_v41 }
 0x867   :  { %5151 = vmatprep.subr.bf16.mxu0 %v5801_v53 }
 0x868   :  { %5130 = vmatpush3.bf16.msra.mxu1 %v5712_v49 }
 0x869   :  { %5131 = vmatprep.subr.bf16.mxu1 %v5801_v53 }
 0x86a   :  { %5152 = vmatpush3.bf16.msra.mxu0 %v5721_v37 }
 0x86c   :  { %5132 = vmatpush3.bf16.msra.mxu1 %v5713_v5 }
 0x86d   :  { %5133 = vmatprep.subr.bf16.mxu1 %v5801_v53 }
 0x870   :  { %5134 = vmatpush3.bf16.msra.mxu1 %v5714_v33 }
 0x871   :  { %5135 = vmatprep.subr.bf16.mxu1 %v5801_v53 }
 0x874   :  { %5136 = vmatpush3.bf16.msra.mxu1 %v5715_v44 }
 0x8ad   :  { %v3955_v42 = vpop.f32.mrf.mxu0 }
 0x8af   :  { %v3834_v38 = vpop.f32.mrf.mxu1  ;;  %v3957_v13 = vpop.f32.mrf.mxu0 }
 0x8b0   :  { %v3956_v50 = vadd.f32 %v3955_v42, %v3834_v38 }
 0x8b1   :  { %v3836_v35 = vpop.f32.mrf.mxu1  ;;  %v3958_v29 = vpop.f32.mrf.mxu0 }
 0x8b3   :  { %v3837_v31 = vpop.f32.mrf.mxu1  ;;  %v3959_v63 = vpop.f32.mrf.mxu0 }
 0x8b5   :  { %v3838_v22 = vpop.f32.mrf.mxu1 }
 0x8e1   :  { %v4257_v52 = vpop.f32.mrf.mxu0 }
 0x8e3   :  { %v4103_v43 = vpop.f32.mrf.mxu1  ;;  %v4259_v58 = vpop.f32.mrf.mxu0 }
 0x8e4   :  { %v4109_v51 = vadd.f32 %v4103_v43, %v3956_v50 }
 0x8e5   :  { %v4105_v0 = vpop.f32.mrf.mxu1  ;;  %v4260_v6 = vpop.f32.mrf.mxu0 }
 0x8e6   :  { %v4263_v4 = vadd.f32 %v4257_v52, %v4109_v51 }
 0x8e7   :  { %v4106_v14 = vpop.f32.mrf.mxu1  ;;  %v4261_v28 = vpop.f32.mrf.mxu0 }
 0x8e9   :  { %v4107_v60 = vpop.f32.mrf.mxu1 }
 0x915   :  { %v4560_v55 = vpop.f32.mrf.mxu0 }
 0x917   :  { %v4406_v45 = vpop.f32.mrf.mxu1  ;;  %v4562_v12 = vpop.f32.mrf.mxu0 }
 0x918   :  { %v4412_v24 = vadd.f32 %v4406_v45, %v4263_v4 }
 0x919   :  { %v4408_v46 = vpop.f32.mrf.mxu1  ;;  %v4563_v61 = vpop.f32.mrf.mxu0 }
 0x91a   :  { %v4566_v7 = vadd.f32 %v4560_v55, %v4412_v24 }
 0x91b   :  { %v4409_v48 = vpop.f32.mrf.mxu1  ;;  %v4564_v56 = vpop.f32.mrf.mxu0 }
 0x91c   :  { %v4574_v47 = vadd.f32 %v5086_v18, %v4566_v7 }
 0x91d   :  { %v4410_v17 = vpop.f32.mrf.mxu1 }
 0x91e   :  { %v4575_v9 = vmax.f32 %v4574_v47, 0.0 }
 0x920   :  { %v4576_v27 = vpack.c.bf16 %v4575_v9, %v4575_v9 }
 0x922   :  { %5138 = vmatmul.mubr.msk.bf16.vlgmr.msra.gmra.mxu1 %vm3574_vm11, %v4576_v27 }
 0x9e2   :  { %v4684_v30 = vpop.f32.mrf.mxu1 }
 0x9e3   :  { %v4685_v11 = vadd.f32 %v5087_v36, %v4684_v30 }
 0x9e4   :  { %v5139_v26 = vpop.f32.mrf.mxu1 }
 0x9e5   :  { %v4690_v57 = vmax.f32 %v4685_v11, 0.0 }
 0x9e6   :  { %v4687_v1 = vpop.f32.mrf.mxu1 }
 0x9e7   :  { %v4691_v54 = vpack.c.bf16 %v4690_v57, %v4690_v57 }
 0x9e8   :  { %v5140_v23 = vpop.f32.mrf.mxu1 }
 0x9e9   :  { %5154 = vmatmul.mubr.msk.bf16.vlgmr.msra.gmra.mxu0 %vm4743_vm14, %v4691_v54 }
 0xaa9   :  { %v4784_v16 = vpop.f32.mrf.mxu0 }
 0xaaa   :  { %v4785_v21 = vadd.f32 %v5097_v25, %v4784_v16 }
 0xaab   :  { %v5155_v2 = vpop.f32.mrf.mxu0 }
 0xaac   :  { %v4791_v10 = vsel %vm4790_vm15, %v4785_v21, -inf }
 0xaad   :  { %4792 = vmax.xlane.f32.xlu1 %v4791_v10  ;;  %v4787_v62 = vpop.f32.mrf.mxu0 }
 0xaaf   :  { %v5156_v34 = vpop.f32.mrf.mxu0 }
 0xb36   :  { %v4793_v53 = vpop.xlane.xlu1 %4792 }
 0xb37   :  { %v4794_v8 = vsub.f32 %v4785_v21, %v4793_v53 }
 0xb39   :  { %v4795_v20 = vmul.f32 1.442695, %v4794_v8 }
 0xb3b   :  { %5722 = vpow2.f32 %v4795_v20 }
 0xb48   :  { %v5723_v3 = vpop.eup %5722 }
 0xb49   :  { %v4797_v32 = vsel %vm4790_vm15, %v5723_v3, 0.0 }
 0xb4a   :  { %4798 = vadd.xlane.f32.xlu0 %v4797_v32 }
 0xbd3   :  { %v4799_v49 = vpop.xlane.xlu0 %4798 }
 0xbd4   :  { %5724 = vrcp.f32 %v4799_v49 }
 0xbe1   :  { %v5725_v5 = vpop.eup %5724 }
 0xbe2   :  { %v4801_v33 = vmul.f32 %v5725_v5, %v4799_v49 }
 0xbe4   :  { %v4802_v44 = vsub.f32 2.0, %v4801_v33 }
 0xbe6   :  { %v4803_v59 = vmul.f32 %v5725_v5, %v4802_v44 }
 0xbe8   :  { %v4804_v19 = vmul.f32 %v5723_v3, %v4803_v59 }
 0xbea   :  { %4805 = vst.msk [vmem:[%s9076_s14] sm:$0xff] %vm4790_vm15, %v4804_v19 }
 0xbeb   :  { %4810 = vsyncpa [#allocation3], 1 }
 0xbec   :  { %4811 = vsyncpa [#allocation5], 1 }

</bundles_post_ra>
